<compile_context>
chip_gen: v6e
topology: v6e:2x2x1
jax: 0.10.0
libtpu: 0.0.40
codegen_flags: <defaults>
</compile_context>

<pallas_src>
import jax
import jax.numpy as jnp
from jax.experimental import pallas as pl
from jax.experimental.pallas import tpu as pltpu

LEAK = 0.2
BN_EPS = 1e-5
MXU_DTYPE = jnp.bfloat16                      # matmul operand / activation dtype

CFG = ((3, 64), (64, 128), (128, 256), (256, 512))   # (Cin, Cout) per block
STRIDES = (2, 2, 2, 1)


def _round_up(x, m):
    return ((x + m - 1) // m) * m


def _vmem_limit_bytes():
    """Per-generation VMEM budget: 3/4 of physical, capped at 100 MiB.
    Falls back to 48 MiB (safe on v7x's 64 MiB/TC as well as v5e/v6e)."""
    try:
        cap = getattr(pltpu.get_tpu_info(), "vmem_capacity_bytes", None)
        if cap:
            return int(min(cap * 3 // 4, 100 * 1024 * 1024))
    except Exception:
        pass
    return 48 * 1024 * 1024


VMEM_LIMIT = _vmem_limit_bytes()


# ---------------------------------------------------------------------------
# Full-K GEMM (+ folded-BN bias + LeakyReLU) kernel: one MXU dot per M tile
# ---------------------------------------------------------------------------
def _gemm_bias_lrelu_kernel(p_ref, w_ref, b_ref, o_ref):
    y = jnp.dot(p_ref[...], w_ref[...], preferred_element_type=jnp.float32)
    y = y + b_ref[...]                       # BN scale already folded into w
    o_ref[...] = jnp.where(y > 0, y, LEAK * y).astype(o_ref.dtype)   # f32 epilogue


def fused_conv_bn_lrelu(patches, w, b, n_out, *, tm_max=1024, out_dtype=MXU_DTYPE):
    """LeakyReLU(patches[M,Kp] @ w[Kp,Np] + b[1,Np])[:, :n_out].

    Grid is 1-D over M tiles only.  The weight / bias block indices never
    change, so they are DMA'd into VMEM once and stay resident for the whole
    layer; each tile does one whole-K dot (no K-axis accumulator)."""
    M, Kp = patches.shape
    Kw, Np = w.shape
    assert Kp == Kw and b.shape == (1, Np)

    # Largest tile that fits, but split >=2 ways when M allows so both
    # TensorCores of a v7x megacore get work on the "parallel" axis.
    m8 = _round_up(M, 8)
    tm = min(tm_max, max(8, _round_up((m8 + 1) // 2, 8)))
    Mp = _round_up(M, tm)
    if Mp != M:
        # Residual row pad (< tm rows); K padding is already built into patches.
        patches = jnp.pad(patches, ((0, Mp - M), (0, 0)))

    out = pl.pallas_call(
        _gemm_bias_lrelu_kernel,
        out_shape=jax.ShapeDtypeStruct((Mp, Np), out_dtype),
        grid_spec=pltpu.PrefetchScalarGridSpec(
            num_scalar_prefetch=0,
            grid=(Mp // tm,),
            in_specs=[
                pl.BlockSpec((tm, Kp), lambda i: (i, 0)),   # activation tile
                pl.BlockSpec((Kp, Np), lambda i: (0, 0)),   # resident weight (one DMA)
                pl.BlockSpec((1, Np), lambda i: (0, 0)),    # folded-BN bias
            ],
            out_specs=pl.BlockSpec((tm, Np), lambda i: (i, 0)),
        ),
        compiler_params=pltpu.CompilerParams(
            dimension_semantics=("parallel",),
            vmem_limit_bytes=VMEM_LIMIT,
        ),
    )(patches, w, b)
    return out[:M, :n_out]


# ---------------------------------------------------------------------------
# Fused AdaptiveAvgPool2d(1) + 1x1 conv + LeakyReLU + 1x1 conv + Sigmoid
# ---------------------------------------------------------------------------
def _pool_head_kernel(x_ref, w1_ref, b1_ref, w2_ref, b2_ref, o_ref):
    pooled = jnp.mean(x_ref[...].astype(jnp.float32), axis=1)          # [N, C]
    h = jnp.dot(pooled.astype(w1_ref.dtype), w1_ref[...],
                preferred_element_type=jnp.float32) + b1_ref[...]
    h = jnp.where(h > 0, h, LEAK * h)                                  # LeakyReLU(0.2)
    z = jnp.dot(h.astype(w2_ref.dtype), w2_ref[...],
                preferred_element_type=jnp.float32) + b2_ref[...]
    ez = jnp.exp(-jnp.abs(z))                                          # stable sigmoid
    o_ref[...] = jnp.where(z >= 0, 1.0 / (1.0 + ez), ez / (1.0 + ez))


def pool_and_head(x_nlc, head, n_out=1):
    # TODO(synk): for large inputs, fuse the global average pool into the last
    # conv GEMM's epilogue instead of re-reading the [N,H*W,512] activation;
    # for small batches this single fused kernel is latency-bound anyway.
    N, L, C = x_nlc.shape
    w1, b1, w2, b2 = head["w1"], head["b1"], head["w2"], head["b2"]
    H1 = w1.shape[1]
    NOUT = w2.shape[1]                      # padded to 128 -> lane-dense store
    out = pl.pallas_call(
        _pool_head_kernel,
        out_shape=jax.ShapeDtypeStruct((N, NOUT), jnp.float32),
        grid=(1,),
        in_specs=[
            pl.BlockSpec((N, L, C), lambda i: (0, 0, 0)),
            pl.BlockSpec((C, H1), lambda i: (0, 0)),
            pl.BlockSpec((1, H1), lambda i: (0, 0)),
            pl.BlockSpec((H1, NOUT), lambda i: (0, 0)),
            pl.BlockSpec((1, NOUT), lambda i: (0, 0)),
        ],
        out_specs=pl.BlockSpec((N, NOUT), lambda i: (0, 0)),
        compiler_params=pltpu.CompilerParams(
            dimension_semantics=("arbitrary",),
            vmem_limit_bytes=VMEM_LIMIT,
        ),
    )(x_nlc, w1, b1, w2, b2)
    return out[:, :n_out]


# ---------------------------------------------------------------------------
# Glue: im2col (K-padded at construction), BN folding, one-time param prep
# ---------------------------------------------------------------------------
def im2col_3x3(x_nhwc, stride, k_pad):
    """3x3 / pad=1 patch extraction in (kh, kw, Cin) order.  The K padding is
    emitted directly by the concatenate so no extra HBM pad pass is needed."""
    N, H, W, C = x_nhwc.shape
    Hout = (H + 2 - 3) // stride + 1
    Wout = (W + 2 - 3) // stride + 1
    xp = jnp.pad(x_nhwc, ((0, 0), (1, 1), (1, 1), (0, 0)))
    cols = [xp[:, dy:dy + stride * Hout:stride, dx:dx + stride * Wout:stride, :]
            for dy in range(3) for dx in range(3)]
    if k_pad:
        cols.append(jnp.zeros((N, Hout, Wout, k_pad), x_nhwc.dtype))
    patches = jnp.concatenate(cols, axis=-1)            # [N, Ho, Wo, 9C + k_pad]
    return patches.reshape(N * Hout * Wout, 9 * C + k_pad), Hout, Wout


def fold_bn_into_weights(w_mat, conv_b, gamma, beta, mean, var):
    """Fold eval-mode BatchNorm into the conv: scale into weights, rest into bias."""
    scale = gamma / jnp.sqrt(var + BN_EPS)                 # [Cout]
    w_folded = w_mat * scale[None, :]                      # [9*Cin, Cout]
    bias = (conv_b - mean) * scale + beta                  # [Cout]
    return w_folded, bias.reshape(1, -1)


def prepare_params(params):
    """One-time host-side prep: fold BN, pad K/N to tile-friendly extents,
    cast matmul operands to bf16.  Reused across forward calls."""
    blocks = []
    for i, (cin, cout) in enumerate(CFG):
        p = params[f"block{i}"]
        w_f, b_f = fold_bn_into_weights(p["w_mat"], p["conv_b"], p["gamma"],
                                        p["beta"], p["mean"], p["var"])
        K = 9 * cin
        Kp = _round_up(K, 128) if K >= 128 else _round_up(K, 16)   # 27->32, 576->640
        Np = _round_up(cout, 128)
        blocks.append({
            "w": jnp.pad(w_f, ((0, Kp - K), (0, Np - cout))).astype(MXU_DTYPE),
            "b": jnp.pad(b_f, ((0, 0), (0, Np - cout))).astype(jnp.float32),
        })
    npad = 128 - params["w6"].shape[1]
    head = {
        "w1": params["w5"].astype(MXU_DTYPE),
        "b1": params["b5"].astype(jnp.float32),
        "w2": jnp.pad(params["w6"], ((0, 0), (0, npad))).astype(MXU_DTYPE),
        "b2": jnp.pad(params["b6"], ((0, 0), (0, npad))).astype(jnp.float32),
    }
    return {"blocks": blocks, "head": head}


def init_params(key):
    params = {}
    for i, (cin, cout) in enumerate(CFG):
        key, k1, k2, k3, k4, k5, k6 = jax.random.split(key, 7)
        w = jax.random.normal(k1, (cout, cin, 3, 3), jnp.float32) / jnp.sqrt(9.0 * cin)
        b = 0.01 * jax.random.normal(k2, (cout,), jnp.float32)
        gamma = 1.0 + 0.1 * jax.random.normal(k3, (cout,), jnp.float32)
        beta = 0.1 * jax.random.normal(k4, (cout,), jnp.float32)
        mean = 0.1 * jax.random.normal(k5, (cout,), jnp.float32)
        var = 0.5 + jax.random.uniform(k6, (cout,), jnp.float32)
        # [Cout,Cin,kh,kw] -> [kh,kw,Cin,Cout] -> [9*Cin,Cout] (im2col order)
        w_mat = jnp.transpose(w, (2, 3, 1, 0)).reshape(9 * cin, cout)
        params[f"block{i}"] = dict(w_mat=w_mat, conv_b=b, gamma=gamma,
                                   beta=beta, mean=mean, var=var)
    key, k1, k2, k3, k4 = jax.random.split(key, 5)
    params["w5"] = jax.random.normal(k1, (512, 1024), jnp.float32) / jnp.sqrt(512.0)
    params["b5"] = 0.01 * jax.random.normal(k2, (1, 1024), jnp.float32)
    params["w6"] = jax.random.normal(k3, (1024, 1), jnp.float32) / jnp.sqrt(1024.0)
    params["b6"] = 0.01 * jax.random.normal(k4, (1, 1), jnp.float32)
    return params


# ---------------------------------------------------------------------------
# Forward pass (Pallas) and a pure-XLA f32 reference for tolerance checking
# ---------------------------------------------------------------------------
def discriminator_forward(x_nchw, prep):
    x = jnp.transpose(x_nchw, (0, 2, 3, 1)).astype(MXU_DTYPE)        # NHWC bf16
    N = x.shape[0]
    for i, stride in enumerate(STRIDES):
        cin, cout = CFG[i]
        blk = prep["blocks"][i]
        Kp = blk["w"].shape[0]
        patches, Hout, Wout = im2col_3x3(x, stride, Kp - 9 * cin)
        out = fused_conv_bn_lrelu(patches, blk["w"], blk["b"], cout)
        x = out.reshape(N, Hout, Wout, cout)
    _, H, W, C = x.shape
    y = pool_and_head(x.reshape(N, H * W, C), prep["head"], n_out=1)  # [N, 1]
    return y.reshape(-1)                                              # .view(-1)


def reference_forward(x_nchw, params):
    """Eval-mode f32 reference (XLA convs) to validate the bf16 Pallas path."""
    x = x_nchw
    for i, s in enumerate(STRIDES):
        p = params[f"block{i}"]
        cin, cout = CFG[i]
        w = jnp.transpose(p["w_mat"].reshape(3, 3, cin, cout), (3, 2, 0, 1))  # OIHW
        y = jax.lax.conv_general_dilated(
            x, w, (s, s), ((1, 1), (1, 1)),
            dimension_numbers=("NCHW", "OIHW", "NCHW"))
        y = y + p["conv_b"][None, :, None, None]
        scale = p["gamma"] / jnp.sqrt(p["var"] + BN_EPS)
        y = (y - p["mean"][None, :, None, None]) * scale[None, :, None, None] \
            + p["beta"][None, :, None, None]
        x = jnp.where(y > 0, y, LEAK * y)
    pooled = jnp.mean(x, axis=(2, 3))                                  # [N, 512]
    h = pooled @ params["w5"] + params["b5"]
    h = jnp.where(h > 0, h, LEAK * h)
    z = h @ params["w6"] + params["b6"]
    return jax.nn.sigmoid(z).reshape(-1)


if __name__ == "__main__":
    key = jax.random.PRNGKey(0)
    key, kx = jax.random.split(key)
    x = jax.random.normal(kx, (2, 3, 16, 16), jnp.float32)   # NCHW, like PyTorch
    params = init_params(key)
    prep = prepare_params(params)            # one-time: BN fold + pad + bf16 cast

    fwd = jax.jit(discriminator_forward)
    y = fwd(x, prep)
    jax.block_until_ready(y)

    assert y.shape == (2,), y.shape
    assert bool(jnp.all((y >= 0.0) & (y <= 1.0)))
    y_ref = reference_forward(x, params)
    assert bool(jnp.allclose(y, y_ref, atol=0.08)), (y, y_ref)
    print("KERNEL_OK")
</pallas_src>

<mosaic_0001>
module attributes {stable_mosaic.version = 11 : i64} {
  func.func @_gemm_bias_lrelu_kernel(%arg0: i32, %arg1: memref<64x32xbf16, #tpu.memory_space<vmem>>, %arg2: memref<32x128xbf16, #tpu.memory_space<vmem>>, %arg3: memref<1x128xf32, #tpu.memory_space<vmem>>, %arg4: memref<64x128xbf16, #tpu.memory_space<vmem>>) attributes {dimension_semantics = [#tpu.dimension_semantics<parallel>], iteration_bounds = array<i64: 2>, scalar_prefetch = 0 : i64, scratch_operands = 0 : i64, tpu.core_type = #tpu.core_type<tc>, window_params = [{transform_indices = @transform_0, window_bounds = array<i64: 64, 32>}, {pipeline_mode = #tpu.pipeline_mode<synchronous>, transform_indices = @transform_1, window_bounds = array<i64: 32, 128>}, {pipeline_mode = #tpu.pipeline_mode<synchronous>, transform_indices = @transform_2, window_bounds = array<i64: 1, 128>}, {transform_indices = @transform_3, window_bounds = array<i64: 64, 128>}]} {
    %c0 = arith.constant 0 : index
    %c0_0 = arith.constant 0 : index
    %0 = vector.load %arg1[%c0, %c0_0] : memref<64x32xbf16, #tpu.memory_space<vmem>>, vector<64x32xbf16>
    %c0_1 = arith.constant 0 : index
    %c0_2 = arith.constant 0 : index
    %1 = vector.load %arg2[%c0_1, %c0_2] : memref<32x128xbf16, #tpu.memory_space<vmem>>, vector<32x128xbf16>
    %cst = arith.constant dense<0.000000e+00> : vector<64x128xf32>
    %2 = tpu.matmul %0, %1, %cst {dimension_numbers = #tpu.dot_dimension_numbers<[1], [0], [0], [1], [0, 0, 1, 1], [], []>} : vector<64x32xbf16>, vector<32x128xbf16>, vector<64x128xf32> -> vector<64x128xf32>
    %c0_3 = arith.constant 0 : index
    %c0_4 = arith.constant 0 : index
    %3 = vector.load %arg3[%c0_3, %c0_4] : memref<1x128xf32, #tpu.memory_space<vmem>>, vector<1x128xf32>
    %4 = vector.broadcast %3 : vector<1x128xf32> to vector<64x128xf32>
    %5 = arith.addf %2, %4 : vector<64x128xf32>
    %cst_5 = arith.constant 0.000000e+00 : f32
    %6 = vector.broadcast %cst_5 : f32 to vector<64x128xf32>
    %7 = arith.cmpf ogt, %5, %6 : vector<64x128xf32>
    %cst_6 = arith.constant 2.000000e-01 : f32
    %8 = vector.broadcast %cst_6 : f32 to vector<64x128xf32>
    %9 = arith.mulf %8, %5 : vector<64x128xf32>
    %10 = arith.select %7, %5, %9 : vector<64x128xi1>, vector<64x128xf32>
    %11 = arith.truncf %10 : vector<64x128xf32> to vector<64x128xbf16>
    %c0_7 = arith.constant 0 : index
    %c0_8 = arith.constant 0 : index
    %12 = vector.load %arg4[%c0_7, %c0_8] : memref<64x128xbf16, #tpu.memory_space<vmem>>, vector<64x128xbf16>
    tpu.vector_store %arg4[%c0_7, %c0_8], %11 {strides = array<i32>} : memref<64x128xbf16, #tpu.memory_space<vmem>>, vector<64x128xbf16>,
    return
  }
  func.func @transform_0(%arg0: i32) -> (i32, i32) {
    %c0_i32 = arith.constant 0 : i32
    %c0_i32_0 = arith.constant 0 : i32
    return %arg0, %c0_i32 : i32, i32
  }
  func.func @transform_1(%arg0: i32) -> (i32, i32) {
    %c0_i32 = arith.constant 0 : i32
    %c0_i32_0 = arith.constant 0 : i32
    %c0_i32_1 = arith.constant 0 : i32
    return %c0_i32, %c0_i32_0 : i32, i32
  }
  func.func @transform_2(%arg0: i32) -> (i32, i32) {
    %c0_i32 = arith.constant 0 : i32
    %c0_i32_0 = arith.constant 0 : i32
    %c0_i32_1 = arith.constant 0 : i32
    return %c0_i32, %c0_i32_0 : i32, i32
  }
  func.func @transform_3(%arg0: i32) -> (i32, i32) {
    %c0_i32 = arith.constant 0 : i32
    %c0_i32_0 = arith.constant 0 : i32
    return %arg0, %c0_i32 : i32, i32
  }
}

module attributes {stable_mosaic.version = 11 : i64} {
  func.func @_gemm_bias_lrelu_kernel(%arg0: i32, %arg1: memref<16x640xbf16, #tpu.memory_space<vmem>>, %arg2: memref<640x128xbf16, #tpu.memory_space<vmem>>, %arg3: memref<1x128xf32, #tpu.memory_space<vmem>>, %arg4: memref<16x128xbf16, #tpu.memory_space<vmem>>) attributes {dimension_semantics = [#tpu.dimension_semantics<parallel>], iteration_bounds = array<i64: 2>, scalar_prefetch = 0 : i64, scratch_operands = 0 : i64, tpu.core_type = #tpu.core_type<tc>, window_params = [{transform_indices = @transform_0, window_bounds = array<i64: 16, 640>}, {pipeline_mode = #tpu.pipeline_mode<synchronous>, transform_indices = @transform_1, window_bounds = array<i64: 640, 128>}, {pipeline_mode = #tpu.pipeline_mode<synchronous>, transform_indices = @transform_2, window_bounds = array<i64: 1, 128>}, {transform_indices = @transform_3, window_bounds = array<i64: 16, 128>}]} {
    %c0 = arith.constant 0 : index
    %c0_0 = arith.constant 0 : index
    %0 = vector.load %arg1[%c0, %c0_0] : memref<16x640xbf16, #tpu.memory_space<vmem>>, vector<16x640xbf16>
    %c0_1 = arith.constant 0 : index
    %c0_2 = arith.constant 0 : index
    %1 = vector.load %arg2[%c0_1, %c0_2] : memref<640x128xbf16, #tpu.memory_space<vmem>>, vector<640x128xbf16>
    %cst = arith.constant dense<0.000000e+00> : vector<16x128xf32>
    %2 = tpu.matmul %0, %1, %cst {dimension_numbers = #tpu.dot_dimension_numbers<[1], [0], [0], [1], [0, 0, 1, 1], [], []>} : vector<16x640xbf16>, vector<640x128xbf16>, vector<16x128xf32> -> vector<16x128xf32>
    %c0_3 = arith.constant 0 : index
    %c0_4 = arith.constant 0 : index
    %3 = vector.load %arg3[%c0_3, %c0_4] : memref<1x128xf32, #tpu.memory_space<vmem>>, vector<1x128xf32>
    %4 = vector.broadcast %3 : vector<1x128xf32> to vector<16x128xf32>
    %5 = arith.addf %2, %4 : vector<16x128xf32>
    %cst_5 = arith.constant 0.000000e+00 : f32
    %6 = vector.broadcast %cst_5 : f32 to vector<16x128xf32>
    %7 = arith.cmpf ogt, %5, %6 : vector<16x128xf32>
    %cst_6 = arith.constant 2.000000e-01 : f32
    %8 = vector.broadcast %cst_6 : f32 to vector<16x128xf32>
    %9 = arith.mulf %8, %5 : vector<16x128xf32>
    %10 = arith.select %7, %5, %9 : vector<16x128xi1>, vector<16x128xf32>
    %11 = arith.truncf %10 : vector<16x128xf32> to vector<16x128xbf16>
    %c0_7 = arith.constant 0 : index
    %c0_8 = arith.constant 0 : index
    %12 = vector.load %arg4[%c0_7, %c0_8] : memref<16x128xbf16, #tpu.memory_space<vmem>>, vector<16x128xbf16>
    tpu.vector_store %arg4[%c0_7, %c0_8], %11 {strides = array<i32>} : memref<16x128xbf16, #tpu.memory_space<vmem>>, vector<16x128xbf16>,
    return
  }
  func.func @transform_0(%arg0: i32) -> (i32, i32) {
    %c0_i32 = arith.constant 0 : i32
    %c0_i32_0 = arith.constant 0 : i32
    return %arg0, %c0_i32 : i32, i32
  }
  func.func @transform_1(%arg0: i32) -> (i32, i32) {
    %c0_i32 = arith.constant 0 : i32
    %c0_i32_0 = arith.constant 0 : i32
    %c0_i32_1 = arith.constant 0 : i32
    return %c0_i32, %c0_i32_0 : i32, i32
  }
  func.func @transform_2(%arg0: i32) -> (i32, i32) {
    %c0_i32 = arith.constant 0 : i32
    %c0_i32_0 = arith.constant 0 : i32
    %c0_i32_1 = arith.constant 0 : i32
    return %c0_i32, %c0_i32_0 : i32, i32
  }
  func.func @transform_3(%arg0: i32) -> (i32, i32) {
    %c0_i32 = arith.constant 0 : i32
    %c0_i32_0 = arith.constant 0 : i32
    return %arg0, %c0_i32 : i32, i32
  }
}

module attributes {stable_mosaic.version = 11 : i64} {
  func.func @_gemm_bias_lrelu_kernel(%arg0: i32, %arg1: memref<8x1152xbf16, #tpu.memory_space<vmem>>, %arg2: memref<1152x256xbf16, #tpu.memory_space<vmem>>, %arg3: memref<1x256xf32, #tpu.memory_space<vmem>>, %arg4: memref<8x256xbf16, #tpu.memory_space<vmem>>) attributes {dimension_semantics = [#tpu.dimension_semantics<parallel>], iteration_bounds = array<i64: 1>, scalar_prefetch = 0 : i64, scratch_operands = 0 : i64, tpu.core_type = #tpu.core_type<tc>, window_params = [{transform_indices = @transform_0, window_bounds = array<i64: 8, 1152>}, {pipeline_mode = #tpu.pipeline_mode<synchronous>, transform_indices = @transform_1, window_bounds = array<i64: 1152, 256>}, {pipeline_mode = #tpu.pipeline_mode<synchronous>, transform_indices = @transform_2, window_bounds = array<i64: 1, 256>}, {transform_indices = @transform_3, window_bounds = array<i64: 8, 256>}]} {
    %c0 = arith.constant 0 : index
    %c0_0 = arith.constant 0 : index
    %0 = vector.load %arg1[%c0, %c0_0] : memref<8x1152xbf16, #tpu.memory_space<vmem>>, vector<8x1152xbf16>
    %c0_1 = arith.constant 0 : index
    %c0_2 = arith.constant 0 : index
    %1 = vector.load %arg2[%c0_1, %c0_2] : memref<1152x256xbf16, #tpu.memory_space<vmem>>, vector<1152x256xbf16>
    %cst = arith.constant dense<0.000000e+00> : vector<8x256xf32>
    %2 = tpu.matmul %0, %1, %cst {dimension_numbers = #tpu.dot_dimension_numbers<[1], [0], [0], [1], [0, 0, 1, 1], [], []>} : vector<8x1152xbf16>, vector<1152x256xbf16>, vector<8x256xf32> -> vector<8x256xf32>
    %c0_3 = arith.constant 0 : index
    %c0_4 = arith.constant 0 : index
    %3 = vector.load %arg3[%c0_3, %c0_4] : memref<1x256xf32, #tpu.memory_space<vmem>>, vector<1x256xf32>
    %4 = vector.broadcast %3 : vector<1x256xf32> to vector<8x256xf32>
    %5 = arith.addf %2, %4 : vector<8x256xf32>
    %cst_5 = arith.constant 0.000000e+00 : f32
    %6 = vector.broadcast %cst_5 : f32 to vector<8x256xf32>
    %7 = arith.cmpf ogt, %5, %6 : vector<8x256xf32>
    %cst_6 = arith.constant 2.000000e-01 : f32
    %8 = vector.broadcast %cst_6 : f32 to vector<8x256xf32>
    %9 = arith.mulf %8, %5 : vector<8x256xf32>
    %10 = arith.select %7, %5, %9 : vector<8x256xi1>, vector<8x256xf32>
    %11 = arith.truncf %10 : vector<8x256xf32> to vector<8x256xbf16>
    %c0_7 = arith.constant 0 : index
    %c0_8 = arith.constant 0 : index
    %12 = vector.load %arg4[%c0_7, %c0_8] : memref<8x256xbf16, #tpu.memory_space<vmem>>, vector<8x256xbf16>
    tpu.vector_store %arg4[%c0_7, %c0_8], %11 {strides = array<i32>} : memref<8x256xbf16, #tpu.memory_space<vmem>>, vector<8x256xbf16>,
    return
  }
  func.func @transform_0(%arg0: i32) -> (i32, i32) {
    %c0_i32 = arith.constant 0 : i32
    %c0_i32_0 = arith.constant 0 : i32
    return %arg0, %c0_i32 : i32, i32
  }
  func.func @transform_1(%arg0: i32) -> (i32, i32) {
    %c0_i32 = arith.constant 0 : i32
    %c0_i32_0 = arith.constant 0 : i32
    %c0_i32_1 = arith.constant 0 : i32
    return %c0_i32, %c0_i32_0 : i32, i32
  }
  func.func @transform_2(%arg0: i32) -> (i32, i32) {
    %c0_i32 = arith.constant 0 : i32
    %c0_i32_0 = arith.constant 0 : i32
    %c0_i32_1 = arith.constant 0 : i32
    return %c0_i32, %c0_i32_0 : i32, i32
  }
  func.func @transform_3(%arg0: i32) -> (i32, i32) {
    %c0_i32 = arith.constant 0 : i32
    %c0_i32_0 = arith.constant 0 : i32
    return %arg0, %c0_i32 : i32, i32
  }
}

module attributes {stable_mosaic.version = 11 : i64} {
  func.func @_gemm_bias_lrelu_kernel(%arg0: i32, %arg1: memref<8x2304xbf16, #tpu.memory_space<vmem>>, %arg2: memref<2304x512xbf16, #tpu.memory_space<vmem>>, %arg3: memref<1x512xf32, #tpu.memory_space<vmem>>, %arg4: memref<8x512xbf16, #tpu.memory_space<vmem>>) attributes {dimension_semantics = [#tpu.dimension_semantics<parallel>], iteration_bounds = array<i64: 1>, scalar_prefetch = 0 : i64, scratch_operands = 0 : i64, tpu.core_type = #tpu.core_type<tc>, window_params = [{transform_indices = @transform_0, window_bounds = array<i64: 8, 2304>}, {pipeline_mode = #tpu.pipeline_mode<synchronous>, transform_indices = @transform_1, window_bounds = array<i64: 2304, 512>}, {pipeline_mode = #tpu.pipeline_mode<synchronous>, transform_indices = @transform_2, window_bounds = array<i64: 1, 512>}, {transform_indices = @transform_3, window_bounds = array<i64: 8, 512>}]} {
    %c0 = arith.constant 0 : index
    %c0_0 = arith.constant 0 : index
    %0 = vector.load %arg1[%c0, %c0_0] : memref<8x2304xbf16, #tpu.memory_space<vmem>>, vector<8x2304xbf16>
    %c0_1 = arith.constant 0 : index
    %c0_2 = arith.constant 0 : index
    %1 = vector.load %arg2[%c0_1, %c0_2] : memref<2304x512xbf16, #tpu.memory_space<vmem>>, vector<2304x512xbf16>
    %cst = arith.constant dense<0.000000e+00> : vector<8x512xf32>
    %2 = tpu.matmul %0, %1, %cst {dimension_numbers = #tpu.dot_dimension_numbers<[1], [0], [0], [1], [0, 0, 1, 1], [], []>} : vector<8x2304xbf16>, vector<2304x512xbf16>, vector<8x512xf32> -> vector<8x512xf32>
    %c0_3 = arith.constant 0 : index
    %c0_4 = arith.constant 0 : index
    %3 = vector.load %arg3[%c0_3, %c0_4] : memref<1x512xf32, #tpu.memory_space<vmem>>, vector<1x512xf32>
    %4 = vector.broadcast %3 : vector<1x512xf32> to vector<8x512xf32>
    %5 = arith.addf %2, %4 : vector<8x512xf32>
    %cst_5 = arith.constant 0.000000e+00 : f32
    %6 = vector.broadcast %cst_5 : f32 to vector<8x512xf32>
    %7 = arith.cmpf ogt, %5, %6 : vector<8x512xf32>
    %cst_6 = arith.constant 2.000000e-01 : f32
    %8 = vector.broadcast %cst_6 : f32 to vector<8x512xf32>
    %9 = arith.mulf %8, %5 : vector<8x512xf32>
    %10 = arith.select %7, %5, %9 : vector<8x512xi1>, vector<8x512xf32>
    %11 = arith.truncf %10 : vector<8x512xf32> to vector<8x512xbf16>
    %c0_7 = arith.constant 0 : index
    %c0_8 = arith.constant 0 : index
    %12 = vector.load %arg4[%c0_7, %c0_8] : memref<8x512xbf16, #tpu.memory_space<vmem>>, vector<8x512xbf16>
    tpu.vector_store %arg4[%c0_7, %c0_8], %11 {strides = array<i32>} : memref<8x512xbf16, #tpu.memory_space<vmem>>, vector<8x512xbf16>,
    return
  }
  func.func @transform_0(%arg0: i32) -> (i32, i32) {
    %c0_i32 = arith.constant 0 : i32
    %c0_i32_0 = arith.constant 0 : i32
    return %arg0, %c0_i32 : i32, i32
  }
  func.func @transform_1(%arg0: i32) -> (i32, i32) {
    %c0_i32 = arith.constant 0 : i32
    %c0_i32_0 = arith.constant 0 : i32
    %c0_i32_1 = arith.constant 0 : i32
    return %c0_i32, %c0_i32_0 : i32, i32
  }
  func.func @transform_2(%arg0: i32) -> (i32, i32) {
    %c0_i32 = arith.constant 0 : i32
    %c0_i32_0 = arith.constant 0 : i32
    %c0_i32_1 = arith.constant 0 : i32
    return %c0_i32, %c0_i32_0 : i32, i32
  }
  func.func @transform_3(%arg0: i32) -> (i32, i32) {
    %c0_i32 = arith.constant 0 : i32
    %c0_i32_0 = arith.constant 0 : i32
    return %arg0, %c0_i32 : i32, i32
  }
}

module attributes {stable_mosaic.version = 11 : i64} {
  func.func @_pool_head_kernel(%arg0: i32, %arg1: memref<2x4x512xbf16, #tpu.memory_space<vmem>>, %arg2: memref<512x1024xbf16, #tpu.memory_space<vmem>>, %arg3: memref<1x1024xf32, #tpu.memory_space<vmem>>, %arg4: memref<1024x128xbf16, #tpu.memory_space<vmem>>, %arg5: memref<1x128xf32, #tpu.memory_space<vmem>>, %arg6: memref<2x128xf32, #tpu.memory_space<vmem>>) attributes {dimension_semantics = [#tpu.dimension_semantics<arbitrary>], iteration_bounds = array<i64: 1>, scalar_prefetch = 0 : i64, scratch_operands = 0 : i64, tpu.core_type = #tpu.core_type<tc>, window_params = [{pipeline_mode = #tpu.pipeline_mode<synchronous>, transform_indices = @transform_0, window_bounds = array<i64: 2, 4, 512>}, {pipeline_mode = #tpu.pipeline_mode<synchronous>, transform_indices = @transform_1, window_bounds = array<i64: 512, 1024>}, {pipeline_mode = #tpu.pipeline_mode<synchronous>, transform_indices = @transform_2, window_bounds = array<i64: 1, 1024>}, {pipeline_mode = #tpu.pipeline_mode<synchronous>, transform_indices = @transform_3, window_bounds = array<i64: 1024, 128>}, {pipeline_mode = #tpu.pipeline_mode<synchronous>, transform_indices = @transform_4, window_bounds = array<i64: 1, 128>}, {pipeline_mode = #tpu.pipeline_mode<synchronous>, transform_indices = @transform_5, window_bounds = array<i64: 2, 128>}]} {
    %c0 = arith.constant 0 : index
    %c0_0 = arith.constant 0 : index
    %c0_1 = arith.constant 0 : index
    %0 = vector.load %arg1[%c0, %c0_0, %c0_1] : memref<2x4x512xbf16, #tpu.memory_space<vmem>>, vector<2x4x512xbf16>
    %1 = arith.extf %0 : vector<2x4x512xbf16> to vector<2x4x512xf32>
    %cst = arith.constant dense<0.000000e+00> : vector<2x512xf32>
    %2 = vector.multi_reduction <add>, %1, %cst [1] : vector<2x4x512xf32> to vector<2x512xf32>
    %cst_2 = arith.constant 4.000000e+00 : f32
    %3 = vector.broadcast %cst_2 : f32 to vector<2x512xf32>
    %4 = arith.divf %2, %3 : vector<2x512xf32>
    %5 = arith.truncf %4 : vector<2x512xf32> to vector<2x512xbf16>
    %c0_3 = arith.constant 0 : index
    %c0_4 = arith.constant 0 : index
    %6 = vector.load %arg2[%c0_3, %c0_4] : memref<512x1024xbf16, #tpu.memory_space<vmem>>, vector<512x1024xbf16>
    %cst_5 = arith.constant dense<0.000000e+00> : vector<2x1024xf32>
    %7 = tpu.matmul %5, %6, %cst_5 {dimension_numbers = #tpu.dot_dimension_numbers<[1], [0], [0], [1], [0, 0, 1, 1], [], []>} : vector<2x512xbf16>, vector<512x1024xbf16>, vector<2x1024xf32> -> vector<2x1024xf32>
    %c0_6 = arith.constant 0 : index
    %c0_7 = arith.constant 0 : index
    %8 = vector.load %arg3[%c0_6, %c0_7] : memref<1x1024xf32, #tpu.memory_space<vmem>>, vector<1x1024xf32>
    %9 = vector.broadcast %8 : vector<1x1024xf32> to vector<2x1024xf32>
    %10 = arith.addf %7, %9 : vector<2x1024xf32>
    %cst_8 = arith.constant 0.000000e+00 : f32
    %11 = vector.broadcast %cst_8 : f32 to vector<2x1024xf32>
    %12 = arith.cmpf ogt, %10, %11 : vector<2x1024xf32>
    %cst_9 = arith.constant 2.000000e-01 : f32
    %13 = vector.broadcast %cst_9 : f32 to vector<2x1024xf32>
    %14 = arith.mulf %13, %10 : vector<2x1024xf32>
    %15 = arith.select %12, %10, %14 : vector<2x1024xi1>, vector<2x1024xf32>
    %16 = arith.truncf %15 : vector<2x1024xf32> to vector<2x1024xbf16>
    %c0_10 = arith.constant 0 : index
    %c0_11 = arith.constant 0 : index
    %17 = vector.load %arg4[%c0_10, %c0_11] : memref<1024x128xbf16, #tpu.memory_space<vmem>>, vector<1024x128xbf16>
    %cst_12 = arith.constant dense<0.000000e+00> : vector<2x128xf32>
    %18 = tpu.matmul %16, %17, %cst_12 {dimension_numbers = #tpu.dot_dimension_numbers<[1], [0], [0], [1], [0, 0, 1, 1], [], []>} : vector<2x1024xbf16>, vector<1024x128xbf16>, vector<2x128xf32> -> vector<2x128xf32>
    %c0_13 = arith.constant 0 : index
    %c0_14 = arith.constant 0 : index
    %19 = vector.load %arg5[%c0_13, %c0_14] : memref<1x128xf32, #tpu.memory_space<vmem>>, vector<1x128xf32>
    %20 = vector.broadcast %19 : vector<1x128xf32> to vector<2x128xf32>
    %21 = arith.addf %18, %20 : vector<2x128xf32>
    %22 = math.absf %21 : vector<2x128xf32>
    %cst_15 = arith.constant 0.000000e+00 : f32
    %23 = vector.broadcast %cst_15 : f32 to vector<2x128xf32>
    %24 = arith.subf %23, %22 : vector<2x128xf32>
    %25 = math.exp %24 : vector<2x128xf32>
    %cst_16 = arith.constant 0.000000e+00 : f32
    %26 = vector.broadcast %cst_16 : f32 to vector<2x128xf32>
    %27 = arith.cmpf oge, %21, %26 : vector<2x128xf32>
    %cst_17 = arith.constant 1.000000e+00 : f32
    %28 = vector.broadcast %cst_17 : f32 to vector<2x128xf32>
    %29 = arith.addf %28, %25 : vector<2x128xf32>
    %cst_18 = arith.constant 1.000000e+00 : f32
    %30 = vector.broadcast %cst_18 : f32 to vector<2x128xf32>
    %31 = arith.divf %30, %29 : vector<2x128xf32>
    %cst_19 = arith.constant 1.000000e+00 : f32
    %32 = vector.broadcast %cst_19 : f32 to vector<2x128xf32>
    %33 = arith.addf %32, %25 : vector<2x128xf32>
    %34 = arith.divf %25, %33 : vector<2x128xf32>
    %35 = arith.select %27, %31, %34 : vector<2x128xi1>, vector<2x128xf32>
    %c0_20 = arith.constant 0 : index
    %c0_21 = arith.constant 0 : index
    %36 = vector.load %arg6[%c0_20, %c0_21] : memref<2x128xf32, #tpu.memory_space<vmem>>, vector<2x128xf32>
    tpu.vector_store %arg6[%c0_20, %c0_21], %35 {strides = array<i32>} : memref<2x128xf32, #tpu.memory_space<vmem>>, vector<2x128xf32>,
    return
  }
  func.func @transform_0(%arg0: i32) -> (i32, i32, i32) {
    %c0_i32 = arith.constant 0 : i32
    %c0_i32_0 = arith.constant 0 : i32
    %c0_i32_1 = arith.constant 0 : i32
    %c0_i32_2 = arith.constant 0 : i32
    return %c0_i32, %c0_i32_0, %c0_i32_1 : i32, i32, i32
  }
  func.func @transform_1(%arg0: i32) -> (i32, i32) {
    %c0_i32 = arith.constant 0 : i32
    %c0_i32_0 = arith.constant 0 : i32
    %c0_i32_1 = arith.constant 0 : i32
    return %c0_i32, %c0_i32_0 : i32, i32
  }
  func.func @transform_2(%arg0: i32) -> (i32, i32) {
    %c0_i32 = arith.constant 0 : i32
    %c0_i32_0 = arith.constant 0 : i32
    %c0_i32_1 = arith.constant 0 : i32
    return %c0_i32, %c0_i32_0 : i32, i32
  }
  func.func @transform_3(%arg0: i32) -> (i32, i32) {
    %c0_i32 = arith.constant 0 : i32
    %c0_i32_0 = arith.constant 0 : i32
    %c0_i32_1 = arith.constant 0 : i32
    return %c0_i32, %c0_i32_0 : i32, i32
  }
  func.func @transform_4(%arg0: i32) -> (i32, i32) {
    %c0_i32 = arith.constant 0 : i32
    %c0_i32_0 = arith.constant 0 : i32
    %c0_i32_1 = arith.constant 0 : i32
    return %c0_i32, %c0_i32_0 : i32, i32
  }
  func.func @transform_5(%arg0: i32) -> (i32, i32) {
    %c0_i32 = arith.constant 0 : i32
    %c0_i32_0 = arith.constant 0 : i32
    %c0_i32_1 = arith.constant 0 : i32
    return %c0_i32, %c0_i32_0 : i32, i32
  }
}

</mosaic_0001>

<bundles_post_ra>
// kernel: discriminator_forward.6
= control target key start
LH: loop header
LB: loop body
LE: loop exit
PB: predicated region body
PF: predicated region fallthrough
CT: control target
= control target key end

     0   :  { %8 = vsyncpa [#allocation3], 0  ;;  %s1176_s0 = inlined_call_operand.vmem [shape: bf16[32,640], index: 0, kind: input, shape index: {}]   ;;  %s1177_s1 = inlined_call_operand.hbm [shape: bf16[640,128], index: 1, kind: input, shape index: {}]   ;;  %s1178_s2 = inlined_call_operand.hbm [shape: f32[1,128], index: 2, kind: input, shape index: {}]   ;;  %s1179_s3 = inlined_call_operand.vmem [shape: bf16[32,128], index: 3, kind: output, shape index: {}]  }
   0x1   :  { %9 = vsyncpa [#allocation5], 0  ;;  %s1100_s12 = smov 0  }
   0x2 LB: > { %s782_s13 = sadd.s32 4294967295, %s1072_s12   ;;  %p784_p0 = scmp.ge.s32.totalorder %s1072_s12, 1  ;;  %s1072_s12 = sphi %s1100_s12, %s15_s12  }
   0x3   : > { %p114_p1 = scmp.lt.s32.totalorder %s1072_s12, 3  ;;  %s1074_s14 = smov [#allocation2]  }
   0x4   : > { %s126_s15 = sshll.u32 %s1074_s14, 4  ;;  %p1114_p3 = scmp.eq.s32.totalorder %s782_s13, 0  ;;  %s127_s15 = int_to_ptr.vmem [resolvable:$true] %s126_s15 }
   0x5   : > { %p1108_p2 = pnand %p784_p0, %p114_p1  ;;  %s1075_s18 = smov [#allocation4]  }
   0x6   : > { %s140_s19 = sshll.u32 %s1075_s18, 4  ;;  %s1017_s21 = scalar_lea.vmem %s127_s15, 5120  ;;  %s141_s19 = int_to_ptr.vmem [resolvable:$true] %s140_s19 }
   0x7   : > { %p934_p4 = pneg %p1108_p2  ;;  %p1018_p7 = scmp.ne.s32.totalorder %s127_s15, %s1017_s21 }
   0x8   : > { %p1025_p10 = scmp.lt.s32.totalorder %s127_s15, %s127_s15  ;;  %p1026_p11 = scmp.lt.s32.totalorder %s1017_s21, %s1017_s21 }
   0x9   : > { %p1122_p5 = pnand %p1114_p3, %p934_p4 }
   0xa   : > { %p1027_p12 = por %p1026_p11, %p1025_p10 }
   0xb   : > { %p1008_p6 = pneg %p1122_p5 }
   0xd   : > { %p1020_p8 = pnand %p1018_p7, %p1008_p6 }
   0xf   : > { %p1021_p9 = pneg %p1020_p8 }
  0x11   : > { %p1028_p13 = pnand %p1027_p12, %p1021_p9 }
  0x13   : > { %1031 = shalt.err (!%p1028_p13)
}
  0x14   : > { %s1076_s22 = smov 64   ;;  %s1077_s23 = smov 4  }
  0x15   : > { %937 = dma.hbm_to_vmem [thread:$0]  (!%p1122_p5), %s1177_s1, 5120, %s127_s15, [#allocation3], %s1076_s22, %s1076_s22, %s1077_s23  }
  0x16   : > { %s1043_s26 = scalar_lea.vmem %s141_s19, 16  ;;  %s1050_s27 = scalar_lea.vmem %s141_s19, 32 }
  0x17   : > { %p1044_p0 = scmp.ne.s32.totalorder %s141_s19, %s1043_s26  ;;  %p1051_p7 = scmp.lt.s32.totalorder %s141_s19, %s141_s19 }
  0x18   : > { %p1052_p8 = scmp.lt.s32.totalorder %s1050_s27, %s1043_s26 }
  0x19   : > { %p1046_p1 = pnand %p1044_p0, %p1008_p6 }
  0x1a   : > { %p1053_p9 = por %p1052_p8, %p1051_p7 }
  0x1b   : > { %p1047_p4 = pneg %p1046_p1 }
  0x1d   : > { %p1054_p10 = pnand %p1053_p9, %p1047_p4 }
  0x1f   : > { %1057 = shalt.err (!%p1054_p10)
}
  0x20   : > { %940 = dma.hbm_to_vmem [thread:$0]  (!%p1122_p5), %s1178_s2, 16, %s141_s19, [#allocation5]  }
  0x21   : > { %163 = sbr.rel (%p1108_p2) target bundleno = 311 (0x137), region = 32 }
  0x26   : > { %1063 = dma.done.wait (%p1114_p3), [#allocation3], 5120  }
  0x27   : > { %1065 = vsyncadd (%p1114_p3), [#allocation3], 4294962176 }
  0x28   : > { %1067 = dma.done.wait (%p1114_p3), [#allocation5], 16  }
  0x29   : > { %1069 = vsyncadd (%p1114_p3), [#allocation5], 4294967280  ;;  %v959_v0 = vld [vmem:[#allocation2 + $0x78] sm:$0xff]   ;;  %v963_v4 = vld [vmem:[#allocation2 + $0x70] sm:$0xff]   ;;  %s791_s30 = sshll.u32 %s782_s13, 1  ;;  %v1078_v33 = vmov 0.0  }
  0x2a   : > { %v960_v1 = vld [vmem:[#allocation2 + $0x38] sm:$0xff]   ;;  %852 = vmatprep.subr.bf16.mxu0 %v959_v0  ;;  %v964_v5 = vld [vmem:[#allocation2 + $0x30] sm:$0xff]   ;;  %v967_v8 = vld [vmem:[#allocation2 + $0x68] sm:$0xff]   ;;  %p193_p2 = scmp.lt.s32.totalorder %s791_s30, 3  ;;  %vm1079_vm0 = vmmov 0  }
  0x2b   : > { %v961_v2 = vld [vmem:[#allocation2 + $0xf8] sm:$0xff]   ;;  %853 = vmatpush3.bf16.msra.mxu0 %v960_v1  ;;  %v965_v6 = vld [vmem:[#allocation2 + $0xf0] sm:$0xff]   ;;  %v968_v9 = vld [vmem:[#allocation2 + $0x28] sm:$0xff]  }
  0x2c   : > { %v962_v3 = vld [vmem:[#allocation2 + $0xb8] sm:$0xff]   ;;  %874 = vmatprep.subr.bf16.mxu1 %v961_v2  ;;  %854 = vmatprep.subr.bf16.mxu0 %v963_v4  ;;  %v966_v7 = vld [vmem:[#allocation2 + $0xb0] sm:$0xff]   ;;  %v969_v10 = vld [vmem:[#allocation2 + $0xe8] sm:$0xff]   ;;  %s1184_s30 = smov (!%p193_p2, %s791_s30), 3 }
  0x2d   : > { %875 = vmatpush3.bf16.msra.mxu1 %v962_v3  ;;  %v970_v11 = vld [vmem:[#allocation2 + $0xa8] sm:$0xff]   ;;  %v971_v12 = vld [vmem:[#allocation2 + $0x60] sm:$0xff]   ;;  %v975_v16 = vld [vmem:[#allocation2 + $0x58] sm:$0xff]   ;;  %s925_s4 = smul.u32 20, %s1184_s30  ;;  %s794_s8 = sshll.u32 %s1184_s30, 2 }
  0x2e   : > { %876 = vmatprep.subr.bf16.mxu1 %v965_v6  ;;  %v972_v13 = vld [vmem:[#allocation2 + $0x20] sm:$0xff]   ;;  %v976_v17 = vld [vmem:[#allocation2 + $0x18] sm:$0xff]   ;;  %v979_v20 = vld [vmem:[#allocation2 + $0x50] sm:$0xff]   ;;  %s203_s11 = scalar_lea.vmem %s1179_s3, %s794_s8 }
  0x2f   : > { %855 = vmatpush3.bf16.msra.mxu0 %v964_v5  ;;  %v973_v14 = vld [vmem:[#allocation2 + $0xe0] sm:$0xff]   ;;  %v977_v18 = vld [vmem:[#allocation2 + $0xd8] sm:$0xff]   ;;  %v980_v21 = vld [vmem:[#allocation2 + $0x10] sm:$0xff]   ;;  %s1162_s7 = scalar_lea.vmem %s1176_s0, %s925_s4 }
  0x30   : > { %856 = vmatprep.subr.bf16.mxu0 %v967_v8  ;;  %v974_v15 = vld [vmem:[#allocation2 + $0xa0] sm:$0xff]   ;;  %v978_v19 = vld [vmem:[#allocation2 + $0x98] sm:$0xff]   ;;  %v981_v22 = vld [vmem:[#allocation2 + $0xd0] sm:$0xff]  }
  0x31   : > { %877 = vmatpush3.bf16.msra.mxu1 %v966_v7  ;;  %v982_v23 = vld [vmem:[#allocation2 + $0x90] sm:$0xff]   ;;  %v983_v24 = vld [vmem:[#allocation2 + $0x48] sm:$0xff]   ;;  %v987_v28 = vld [vmem:[#allocation2 + $0x40] sm:$0xff]  }
  0x32   : > { %878 = vmatprep.subr.bf16.mxu1 %v969_v10  ;;  %v984_v25 = vld [vmem:[#allocation2 + $0x8] sm:$0xff]   ;;  %v988_v29 = vld [vmem:[#allocation2] sm:$0xff]   ;;  %v997_v37 = vld [vmem:[#allocation2 + $0x138] sm:$0xff]  }
  0x33   : > { %857 = vmatpush3.bf16.msra.mxu0 %v968_v9  ;;  %v985_v26 = vld [vmem:[#allocation2 + $0xc8] sm:$0xff]   ;;  %v989_v30 = vld [vmem:[#allocation2 + $0xc0] sm:$0xff]   ;;  %v998_v38 = vld [vmem:[#allocation2 + $0x130] sm:$0xff]  }
  0x34   : > { %858 = vmatprep.subr.bf16.mxu0 %v971_v12  ;;  %v986_v27 = vld [vmem:[#allocation2 + $0x88] sm:$0xff]   ;;  %v990_v31 = vld [vmem:[%s1162_s7] ss:$20 sps:$4 sm:$0xff]   ;;  %v992_v32 = vld [vmem:[%s1162_s7 + $0x4] ss:$20 sps:$4 sm:$0xff]  }
  0x35   : > { %879 = vmatpush3.bf16.msra.mxu1 %v970_v11  ;;  %v993_v34 = vld [vmem:[#allocation2 + $0x80] sm:$0xff]   ;;  %597 = vmatprep.mubr.bf16.mxu0 %v992_v32  ;;  %v994_v35 = vld [vmem:[%s1162_s7 + $0x8] ss:$20 sps:$4 sm:$0xff]   ;;  %v1002_v42 = vld [vmem:[#allocation2 + $0x110] sm:$0xff]  }
  0x36   : > { %880 = vmatprep.subr.bf16.mxu1 %v973_v14  ;;  %v996_v36 = vld [vmem:[%s1162_s7 + $0xc] ss:$20 sps:$4 sm:$0xff]   ;;  %v1001_v41 = vld [vmem:[#allocation2 + $0x118] sm:$0xff]   ;;  %v1005_v45 = vld [vmem:[%s1162_s7 + $0x10] ss:$20 sps:$4 sm:$0xff]  }
  0x37   : > { %859 = vmatpush3.bf16.msra.mxu0 %v972_v13  ;;  %638 = vmatprep.mubr.bf16.mxu1 %v996_v36  ;;  %v999_v39 = vld [vmem:[#allocation2 + $0x128] sm:$0xff]   ;;  %v1000_v40 = vld [vmem:[#allocation2 + $0x120] sm:$0xff]  }
  0x38   : > { %860 = vmatprep.subr.bf16.mxu0 %v975_v16  ;;  %v1003_v43 = vld [vmem:[#allocation2 + $0x108] sm:$0xff]   ;;  %v1004_v44 = vld [vmem:[#allocation2 + $0x100] sm:$0xff]  }
  0x39   : > { %881 = vmatpush3.bf16.msra.mxu1 %v974_v15  ;;  %v795_v52 = vld [vmem:[#allocation4] ss:$0 sm:$0xff] }
  0x3a   : > { %882 = vmatprep.subr.bf16.mxu1 %v977_v18 }
  0x3b   : > { %861 = vmatpush3.bf16.msra.mxu0 %v976_v17 }
  0x3c   : > { %862 = vmatprep.subr.bf16.mxu0 %v979_v20 }
  0x3d   : > { %883 = vmatpush3.bf16.msra.mxu1 %v978_v19 }
  0x3e   : > { %884 = vmatprep.subr.bf16.mxu1 %v981_v22 }
  0x3f   : > { %863 = vmatpush3.bf16.msra.mxu0 %v980_v21 }
  0x40   : > { %864 = vmatprep.subr.bf16.mxu0 %v983_v24 }
  0x41   : > { %885 = vmatpush3.bf16.msra.mxu1 %v982_v23 }
  0x42   : > { %886 = vmatprep.subr.bf16.mxu1 %v985_v26 }
  0x43   : > { %865 = vmatpush3.bf16.msra.mxu0 %v984_v25 }
  0x44   : > { %866 = vmatprep.subr.bf16.mxu0 %v987_v28 }
  0x45   : > { %887 = vmatpush3.bf16.msra.mxu1 %v986_v27 }
  0x46   : > { %888 = vmatprep.subr.bf16.mxu1 %v989_v30 }
  0x47   : > { %867 = vmatpush3.bf16.msra.mxu0 %v988_v29 }
  0x48   : > { %905 = vmatprep.subr.bf16.mxu0 %v1078_v33 }
  0x49   : > { %889 = vmatpush3.bf16.msra.mxu1 %v993_v34 }
  0x4a   : > { %598 = vmatmul.mubr.bf16.vlgmr.msra.gmra.mxu0 %v990_v31 }
  0x4b   : > { %921 = vmatprep.mubr.msk.bf16.mxu0 %vm1079_vm0, %v1078_v33  ;;  %906 = vmatpush3.bf16.msra.mxu0 %v997_v37 }
  0x4c   : > { %639 = vmatmul.mubr.bf16.vlgmr.msra.gmra.mxu1 %v994_v35  ;;  %907 = vmatprep.subr.bf16.mxu0 %v1078_v33 }
  0x4f   : > { %908 = vmatpush3.bf16.msra.mxu0 %v998_v38 }
  0x50   : > { %909 = vmatprep.subr.bf16.mxu0 %v1078_v33 }
  0x53   : > { %910 = vmatpush3.bf16.msra.mxu0 %v999_v39 }
  0x54   : > { %911 = vmatprep.subr.bf16.mxu0 %v1078_v33 }
  0x57   : > { %912 = vmatpush3.bf16.msra.mxu0 %v1000_v40 }
  0x58   : > { %913 = vmatprep.subr.bf16.mxu0 %v1078_v33 }
  0x5b   : > { %914 = vmatpush3.bf16.msra.mxu0 %v1001_v41 }
  0x5c   : > { %915 = vmatprep.subr.bf16.mxu0 %v1078_v33 }
  0x5f   : > { %916 = vmatpush3.bf16.msra.mxu0 %v1002_v42 }
  0x60   : > { %917 = vmatprep.subr.bf16.mxu0 %v1078_v33 }
  0x63   : > { %918 = vmatpush3.bf16.msra.mxu0 %v1003_v43 }
  0x64   : > { %919 = vmatprep.subr.bf16.mxu0 %v1078_v33 }
  0x67   : > { %920 = vmatpush3.bf16.msra.mxu0 %v1004_v44 }
  0x6a   : > { %922 = vmatmul.mubr.bf16.vlgmr.msra.gmra.mxu0 %v1005_v45 }
 0x10a   : > { %v868_v46 = vpop.f32.mrf.mxu0 }
 0x10c   : > { %v869_v47 = vpop.f32.mrf.mxu0  ;;  %v890_v48 = vpop.f32.mrf.mxu1 }
 0x10d   : > { %v870_v51 = vadd.f32 %v869_v47, %v868_v46 }
 0x10e   : > { %v871_v49 = vpop.f32.mrf.mxu0  ;;  %v891_v50 = vpop.f32.mrf.mxu1 }
 0x10f   : > { %v600_v55 = vadd.f32 %v870_v51, %v795_v52  ;;  %v892_v56 = vadd.f32 %v891_v50, %v890_v48 }
 0x110   : > { %v872_v53 = vpop.f32.mrf.mxu0  ;;  %v893_v54 = vpop.f32.mrf.mxu1 }
 0x111   : > { %v873_v57 = vadd.f32 %v872_v53, %v871_v49  ;;  %v641_v61 = vadd.f32 %v892_v56, %v600_v55 }
 0x112   : > { %v894_v58 = vpop.f32.mrf.mxu1 }
 0x113   : > { %v603_v59 = vadd.f32 %v873_v57, %v795_v52  ;;  %v895_v60 = vadd.f32 %v894_v58, %v893_v54 }
 0x115   : > { %v644_v1 = vadd.f32 %v895_v60, %v603_v59 }
 0x12a   : > { %v681_v62 = vpop.f32.mrf.mxu0 }
 0x12b   : > { %v682_v63 = vadd.f32 %v681_v62, %v641_v61 }
 0x12c   : > { %v923_v0 = vpop.f32.mrf.mxu0 }
 0x12d   : > { %v690_v3 = vmul.f32 0.2, %v682_v63  ;;  %vm688_vm1 = vcmp.gt.f32.partialorder %v682_v63, 0.0 }
 0x12e   : > { %v684_v2 = vpop.f32.mrf.mxu0 }
 0x12f   : > { %v685_v4 = vadd.f32 %v684_v2, %v644_v1  ;;  %v692_v7 = vsel %vm688_vm1, %v682_v63, %v690_v3 }
 0x130   : > { %v924_v5 = vpop.f32.mrf.mxu0 }
 0x131   : > { %vm689_vm2 = vcmp.gt.f32.partialorder %v685_v4, 0.0  ;;  %v691_v6 = vmul.f32 0.2, %v685_v4 }
 0x133   : > { %v693_v8 = vsel %vm689_vm2, %v685_v4, %v691_v6 }
 0x134   : > { %v850_v9 = vpack.c.bf16 %v693_v8, %v692_v7 }
 0x136   : > { %851 = vst [vmem:[%s203_s11] sm:$0xff] %v850_v9  }
 0x137 PF: > { %s15_s12 = sadd.s32 1, %s1072_s12  }
 0x138   : > { %p12_p3 = scmp.ge.s32.totalorder %s15_s12, 4  }
 0x13a   :  { %14 = sbr.rel (!%p12_p3) target bundleno = 2 (0x2), region = 71 }
 0x13f   :  { %726 = vsyncpa [#allocation3], 1 }
 0x140   :  { %728 = vsyncpa [#allocation3 + $0x1], 1 }
 0x141   :  { %729 = vsyncpa [#allocation5], 1 }

// kernel: discriminator_forward.5
= control target key start
LH: loop header
LB: loop body
LE: loop exit
PB: predicated region body
PF: predicated region fallthrough
CT: control target
= control target key end

     0   :  { %8 = vsyncpa [#allocation3], 0  ;;  %s762_s0 = inlined_call_operand.vmem [shape: bf16[128,32], index: 0, kind: input, shape index: {}]   ;;  %s763_s1 = inlined_call_operand.hbm [shape: bf16[32,128], index: 1, kind: input, shape index: {}]   ;;  %s764_s2 = inlined_call_operand.hbm [shape: f32[1,128], index: 2, kind: input, shape index: {}]   ;;  %s765_s3 = inlined_call_operand.vmem [shape: bf16[128,128], index: 3, kind: output, shape index: {}]  }
   0x1   :  { %9 = vsyncpa [#allocation5], 0  ;;  %s690_s12 = smov 0  }
   0x2 LB: > { %s474_s13 = sadd.s32 4294967295, %s664_s12   ;;  %p476_p0 = scmp.ge.s32.totalorder %s664_s12, 1  ;;  %s664_s12 = sphi %s690_s12, %s15_s12  }
   0x3   : > { %p114_p1 = scmp.lt.s32.totalorder %s664_s12, 3  ;;  %s666_s14 = smov [#allocation2]  }
   0x4   : > { %s126_s15 = sshll.u32 %s666_s14, 4  ;;  %p704_p3 = scmp.eq.s32.totalorder %s474_s13, 0  ;;  %s127_s15 = int_to_ptr.vmem [resolvable:$true] %s126_s15 }
   0x5   : > { %p698_p2 = pnand %p476_p0, %p114_p1  ;;  %s667_s18 = smov [#allocation4]  }
   0x6   : > { %s140_s19 = sshll.u32 %s667_s18, 4  ;;  %s609_s21 = scalar_lea.vmem %s127_s15, 256  ;;  %s141_s19 = int_to_ptr.vmem [resolvable:$true] %s140_s19 }
   0x7   : > { %p569_p4 = pneg %p698_p2  ;;  %p610_p7 = scmp.ne.s32.totalorder %s127_s15, %s609_s21 }
   0x8   : > { %p617_p10 = scmp.lt.s32.totalorder %s127_s15, %s127_s15  ;;  %p618_p11 = scmp.lt.s32.totalorder %s609_s21, %s609_s21 }
   0x9   : > { %p712_p5 = pnand %p704_p3, %p569_p4 }
   0xa   : > { %p619_p12 = por %p618_p11, %p617_p10 }
   0xb   : > { %p600_p6 = pneg %p712_p5 }
   0xd   : > { %p612_p8 = pnand %p610_p7, %p600_p6 }
   0xf   : > { %p613_p9 = pneg %p612_p8 }
  0x11   : > { %p620_p13 = pnand %p619_p12, %p613_p9 }
  0x13   : > { %623 = shalt.err (!%p620_p13)
}
  0x14   : > { %s668_s22 = smov 64   ;;  %s669_s23 = smov 4  }
  0x15   : > { %572 = dma.hbm_to_vmem [thread:$0]  (!%p712_p5), %s763_s1, 256, %s127_s15, [#allocation3], %s668_s22, %s668_s22, %s669_s23  }
  0x16   : > { %s635_s26 = scalar_lea.vmem %s141_s19, 16  ;;  %s642_s27 = scalar_lea.vmem %s141_s19, 32 }
  0x17   : > { %p636_p0 = scmp.ne.s32.totalorder %s141_s19, %s635_s26  ;;  %p643_p7 = scmp.lt.s32.totalorder %s141_s19, %s141_s19 }
  0x18   : > { %p644_p8 = scmp.lt.s32.totalorder %s642_s27, %s635_s26 }
  0x19   : > { %p638_p1 = pnand %p636_p0, %p600_p6 }
  0x1a   : > { %p645_p9 = por %p644_p8, %p643_p7 }
  0x1b   : > { %p639_p4 = pneg %p638_p1 }
  0x1d   : > { %p646_p10 = pnand %p645_p9, %p639_p4 }
  0x1f   : > { %649 = shalt.err (!%p646_p10)
}
  0x20   : > { %575 = dma.hbm_to_vmem [thread:$0]  (!%p712_p5), %s764_s2, 16, %s141_s19, [#allocation5]  }
  0x21   : > { %162 = sbr.rel (%p698_p2) target bundleno = 259 (0x103), region = 32 }
  0x26   : > { %655 = dma.done.wait (%p704_p3), [#allocation3], 256  }
  0x27   : > { %657 = vsyncadd (%p704_p3), [#allocation3], 4294967040 }
  0x28   : > { %659 = dma.done.wait (%p704_p3), [#allocation5], 16  }
  0x29   : > { %661 = vsyncadd (%p704_p3), [#allocation5], 4294967280  ;;  %s483_s30 = sshll.u32 %s474_s13, 3  ;;  %v592_v0 = vld [vmem:[#allocation2 + $0x8] sm:$0xff]   ;;  %v593_v1 = vld [vmem:[#allocation2] sm:$0xff]   ;;  %vm254_vm0 = vcmask 261120  }
  0x2a   : > { %p191_p6 = scmp.lt.s32.totalorder %s483_s30, 15  ;;  %545 = vmatprep.subr.bf16.mxu0 %v592_v0  ;;  %557 = vmatprep.subr.bf16.mxu1 %v592_v0  ;;  %v487_v6 = vld [vmem:[#allocation4] ss:$0 sm:$0xff] }
  0x2b   : > { %546 = vmatpush3.bf16.msra.mxu0 %v592_v0  ;;  %559 = vmatpush3.bf16.msra.mxu1 %v592_v0 }
  0x2c   : > { %s770_s30 = smov (!%p191_p6, %s483_s30), 15  ;;  %547 = vmatprep.subr.bf16.mxu0 %v593_v1  ;;  %558 = vmatprep.subr.bf16.mxu1 %v593_v1 }
  0x2d   : > { %s484_s4 = sshll.u32 %s770_s30, 2 }
  0x2e   : > { %s194_s7 = scalar_lea.vmem %s762_s0, %s484_s4  ;;  %s200_s10 = scalar_lea.vmem %s765_s3, %s484_s4 }
  0x2f   : > { %v594_v2 = vld [vmem:[%s194_s7] sm:$0xff]   ;;  %v595_v3 = vld [vmem:[%s194_s7 + $0x10] sm:$0xff]   ;;  %v596_v4 = vld [vmem:[%s194_s7 + $0x8] sm:$0xff]   ;;  %548 = vmatpush3.bf16.msra.mxu0 %v593_v1  ;;  %560 = vmatpush3.bf16.msra.mxu1 %v593_v1 }
  0x30   : > { %549 = vmatprep.mubr.msk.bf16.mxu0 %vm254_vm0, %v594_v2  ;;  %553 = vmatprep.mubr.msk.bf16.mxu1 %vm254_vm0, %v595_v3  ;;  %v597_v5 = vld [vmem:[%s194_s7 + $0x18] sm:$0xff]  }
  0x32   : > { %550 = vmatmul.mubr.msk.bf16.vlgmr.msra.gmra.mxu0 %vm254_vm0, %v596_v4  ;;  %554 = vmatmul.mubr.msk.bf16.vlgmr.msra.gmra.mxu1 %vm254_vm0, %v597_v5 }
  0xf2   : > { %v551_v7 = vpop.f32.mrf.mxu0  ;;  %v555_v8 = vpop.f32.mrf.mxu1 }
  0xf3   : > { %v310_v9 = vadd.f32 %v551_v7, %v487_v6  ;;  %v326_v10 = vadd.f32 %v555_v8, %v487_v6 }
  0xf4   : > { %v301_v11 = vpop.f32.mrf.mxu0  ;;  %v317_v12 = vpop.f32.mrf.mxu1 }
  0xf5   : > { %vm334_vm1 = vcmp.gt.f32.partialorder %v310_v9, 0.0  ;;  %v342_v13 = vmul.f32 0.2, %v310_v9  ;;  %vm338_vm2 = vcmp.gt.f32.partialorder %v326_v10, 0.0  ;;  %v346_v14 = vmul.f32 0.2, %v326_v10 }
  0xf6   : > { %v302_v15 = vadd.f32 %v487_v6, %v301_v11  ;;  %v552_v16 = vpop.f32.mrf.mxu0  ;;  %v556_v17 = vpop.f32.mrf.mxu1  ;;  %v318_v18 = vadd.f32 %v487_v6, %v317_v12 }
  0xf7   : > { %v313_v19 = vadd.f32 %v552_v16, %v487_v6  ;;  %v329_v20 = vadd.f32 %v556_v17, %v487_v6  ;;  %v350_v21 = vsel %vm334_vm1, %v310_v9, %v342_v13  ;;  %v354_v22 = vsel %vm338_vm2, %v326_v10, %v346_v14 }
  0xf8   : > { %v304_v23 = vpop.f32.mrf.mxu0  ;;  %v320_v24 = vpop.f32.mrf.mxu1  ;;  %vm332_vm5 = vcmp.gt.f32.partialorder %v302_v15, 0.0  ;;  %v340_v27 = vmul.f32 0.2, %v302_v15  ;;  %vm336_vm6 = vcmp.gt.f32.partialorder %v318_v18, 0.0  ;;  %v344_v30 = vmul.f32 0.2, %v318_v18 }
  0xf9   : > { %vm335_vm3 = vcmp.gt.f32.partialorder %v313_v19, 0.0  ;;  %v343_v25 = vmul.f32 0.2, %v313_v19  ;;  %vm339_vm4 = vcmp.gt.f32.partialorder %v329_v20, 0.0  ;;  %v347_v26 = vmul.f32 0.2, %v329_v20 }
  0xfa   : > { %v305_v28 = vadd.f32 %v487_v6, %v304_v23  ;;  %v321_v29 = vadd.f32 %v487_v6, %v320_v24  ;;  %v348_v37 = vsel %vm332_vm5, %v302_v15, %v340_v27  ;;  %v352_v39 = vsel %vm336_vm6, %v318_v18, %v344_v30 }
  0xfb   : > { %v351_v31 = vsel %vm335_vm3, %v313_v19, %v343_v25  ;;  %v355_v32 = vsel %vm339_vm4, %v329_v20, %v347_v26 }
  0xfc   : > { %v524_v33 = vpack.c.bf16 %v351_v31, %v350_v21  ;;  %v534_v34 = vpack.c.bf16 %v355_v32, %v354_v22  ;;  %vm333_vm7 = vcmp.gt.f32.partialorder %v305_v28, 0.0  ;;  %v341_v35 = vmul.f32 0.2, %v305_v28 }
  0xfd   : > { %vm337_vm8 = vcmp.gt.f32.partialorder %v321_v29, 0.0  ;;  %v345_v36 = vmul.f32 0.2, %v321_v29 }
  0xfe   : > { %536 = vst [vmem:[%s200_s10 + $0x8] sm:$0xff] %v524_v33   ;;  %538 = vst [vmem:[%s200_s10 + $0x18] sm:$0xff] %v534_v34   ;;  %v349_v38 = vsel %vm333_vm7, %v305_v28, %v341_v35 }
  0xff   : > { %v519_v40 = vpack.c.bf16 %v349_v38, %v348_v37  ;;  %v353_v41 = vsel %vm337_vm8, %v321_v29, %v345_v36 }
 0x100   : > { %v529_v42 = vpack.c.bf16 %v353_v41, %v352_v39 }
 0x101   : > { %520 = vst [vmem:[%s200_s10] sm:$0xff] %v519_v40  }
 0x102   : > { %537 = vst [vmem:[%s200_s10 + $0x10] sm:$0xff] %v529_v42  }
 0x103 PF: > { %s15_s12 = sadd.s32 1, %s664_s12  }
 0x104   : > { %p12_p2 = scmp.ge.s32.totalorder %s15_s12, 4  }
 0x106   :  { %14 = sbr.rel (!%p12_p2) target bundleno = 2 (0x2), region = 71 }
 0x10b   :  { %418 = vsyncpa [#allocation3], 1 }
 0x10c   :  { %420 = vsyncpa [#allocation3 + $0x1], 1 }
 0x10d   :  { %421 = vsyncpa [#allocation5], 1 }

// kernel: discriminator_forward.7
= control target key start
LH: loop header
LB: loop body
LE: loop exit
PB: predicated region body
PF: predicated region fallthrough
CT: control target
= control target key end

     0   :  { %8 = vsyncpa [#allocation3], 0  ;;  %s1670_s0 = inlined_call_operand.vmem [shape: bf16[8,1152], index: 0, kind: input, shape index: {}]   ;;  %s1671_s1 = inlined_call_operand.hbm [shape: bf16[1152,256], index: 1, kind: input, shape index: {}]   ;;  %s1672_s2 = inlined_call_operand.hbm [shape: f32[1,256], index: 2, kind: input, shape index: {}]   ;;  %s1673_s3 = inlined_call_operand.vmem [shape: bf16[8,256], index: 3, kind: output, shape index: {}]  }
   0x1   :  { %9 = vsyncpa [#allocation5], 0  ;;  %s1609_s12 = smov [#allocation2]  }
   0x2   :  { %s17_s13 = sshll.u32 %s1609_s12, 4  ;;  %s18_s13 = int_to_ptr.vmem [resolvable:$true] %s17_s13 }
   0x3   :  { %s1573_s14 = scalar_lea.vmem %s18_s13, 18432  ;;  %p1578_p1 = scmp.lt.s32.totalorder %s18_s13, %s18_s13 }
   0x4   :  { %p1574_p0 = scmp.ne.s32.totalorder %s18_s13, %s1573_s14  ;;  %p1579_p2 = scmp.lt.s32.totalorder %s1573_s14, %s1573_s14 }
   0x6   :  { %p1580_p3 = por %p1579_p2, %p1578_p1 }
   0x8   :  { %p1581_p4 = pnand %p1580_p3, %p1574_p0 }
   0xa   :  { %1584 = shalt.err (!%p1581_p4)
}
   0xb   :  { %s1610_s15 = smov 128   ;;  %s1611_s16 = smov 8  }
   0xc   :  { %23 = dma.hbm_to_vmem [thread:$0]  %s1671_s1, 18432, %s18_s13, [#allocation3], %s1610_s15, %s1610_s15, %s1611_s16  }
   0xd   :  { %s1612_s19 = smov [#allocation4]  }
   0xe   :  { %s30_s20 = sshll.u32 %s1612_s19, 4  ;;  %s31_s20 = int_to_ptr.vmem [resolvable:$true] %s30_s20 }
   0xf   :  { %s1593_s21 = scalar_lea.vmem %s31_s20, 32  ;;  %p1598_p6 = scmp.lt.s32.totalorder %s31_s20, %s31_s20 }
  0x10   :  { %p1594_p5 = scmp.ne.s32.totalorder %s31_s20, %s1593_s21  ;;  %p1599_p7 = scmp.lt.s32.totalorder %s1593_s21, %s1593_s21 }
  0x12   :  { %p1600_p8 = por %p1599_p7, %p1598_p6 }
  0x14   :  { %p1601_p9 = pnand %p1600_p8, %p1594_p5 }
  0x16   :  { %1604 = shalt.err (!%p1601_p9)
}
  0x17   :  { %33 = dma.hbm_to_vmem [thread:$0]  %s1672_s2, 32, %s31_s20, [#allocation5]  }
  0x18   :  { %1605 = dma.done.wait [#allocation3], 18432  }
  0x19   :  { %1606 = vsyncadd [#allocation3], 4294948864 }
  0x1a   :  { %1607 = dma.done.wait [#allocation5], 32  }
  0x1b   :  { %1608 = vsyncadd [#allocation5], 4294967264  ;;  %v1340_v0 = vld [vmem:[#allocation2 + $0x74] ss:$8 sps:$4 sm:$0xff]   ;;  %v1342_v1 = vld [vmem:[#allocation2 + $0x70] ss:$8 sps:$4 sm:$0xff]  }
  0x1c   :  { %954 = vmatprep.subr.bf16.mxu0 %v1340_v0  ;;  %v1343_v2 = vld [vmem:[#allocation2 + $0x174] ss:$8 sps:$4 sm:$0xff]   ;;  %v1345_v3 = vld [vmem:[#allocation2 + $0x170] ss:$8 sps:$4 sm:$0xff]   ;;  %v1346_v4 = vld [vmem:[#allocation2 + $0x64] ss:$8 sps:$4 sm:$0xff]  }
  0x1d   :  { %955 = vmatpush1.bf16.msra.mxu0 %v1342_v1  ;;  %v1348_v5 = vld [vmem:[#allocation2 + $0x60] ss:$8 sps:$4 sm:$0xff]   ;;  %995 = vmatprep.subr.bf16.mxu1 %v1343_v2  ;;  %v1349_v6 = vld [vmem:[#allocation2 + $0x164] ss:$8 sps:$4 sm:$0xff]   ;;  %v1352_v8 = vld [vmem:[#allocation2 + $0x54] ss:$8 sps:$4 sm:$0xff]  }
  0x1e   :  { %996 = vmatpush1.bf16.msra.mxu1 %v1345_v3  ;;  %956 = vmatprep.subr.bf16.mxu0 %v1346_v4  ;;  %v1351_v7 = vld [vmem:[#allocation2 + $0x160] ss:$8 sps:$4 sm:$0xff]   ;;  %v1354_v9 = vld [vmem:[#allocation2 + $0x50] ss:$8 sps:$4 sm:$0xff]   ;;  %v1355_v10 = vld [vmem:[#allocation2 + $0x154] ss:$8 sps:$4 sm:$0xff]  }
  0x1f   :  { %997 = vmatprep.subr.bf16.mxu1 %v1349_v6  ;;  %v1358_v11 = vld [vmem:[#allocation2 + $0x44] ss:$8 sps:$4 sm:$0xff]   ;;  %v1357_v12 = vld [vmem:[#allocation2 + $0x150] ss:$8 sps:$4 sm:$0xff]   ;;  %v1360_v14 = vld [vmem:[#allocation2 + $0x40] ss:$8 sps:$4 sm:$0xff]  }
  0x20   :  { %v1361_v13 = vld [vmem:[#allocation2 + $0x144] ss:$8 sps:$4 sm:$0xff]   ;;  %v1364_v15 = vld [vmem:[#allocation2 + $0x34] ss:$8 sps:$4 sm:$0xff]   ;;  %v1363_v16 = vld [vmem:[#allocation2 + $0x140] ss:$8 sps:$4 sm:$0xff]  }
  0x21   :  { %957 = vmatpush1.bf16.msra.mxu0 %v1348_v5  ;;  %v1367_v17 = vld [vmem:[#allocation2 + $0x134] ss:$8 sps:$4 sm:$0xff]   ;;  %v1366_v18 = vld [vmem:[#allocation2 + $0x30] ss:$8 sps:$4 sm:$0xff]   ;;  %v1370_v19 = vld [vmem:[#allocation2 + $0x24] ss:$8 sps:$4 sm:$0xff]  }
  0x22   :  { %958 = vmatprep.subr.bf16.mxu0 %v1352_v8  ;;  %998 = vmatpush1.bf16.msra.mxu1 %v1351_v7  ;;  %v1369_v20 = vld [vmem:[#allocation2 + $0x130] ss:$8 sps:$4 sm:$0xff]   ;;  %v1373_v21 = vld [vmem:[#allocation2 + $0x124] ss:$8 sps:$4 sm:$0xff]   ;;  %v1372_v22 = vld [vmem:[#allocation2 + $0x20] ss:$8 sps:$4 sm:$0xff]  }
  0x23   :  { %999 = vmatprep.subr.bf16.mxu1 %v1355_v10  ;;  %v1376_v23 = vld [vmem:[#allocation2 + $0x14] ss:$8 sps:$4 sm:$0xff]   ;;  %v1375_v24 = vld [vmem:[#allocation2 + $0x120] ss:$8 sps:$4 sm:$0xff]   ;;  %v1378_v26 = vld [vmem:[#allocation2 + $0x10] ss:$8 sps:$4 sm:$0xff]  }
  0x24   :  { %v1379_v25 = vld [vmem:[#allocation2 + $0x114] ss:$8 sps:$4 sm:$0xff]   ;;  %v1382_v27 = vld [vmem:[#allocation2 + $0x4] ss:$8 sps:$4 sm:$0xff]   ;;  %v1381_v28 = vld [vmem:[#allocation2 + $0x110] ss:$8 sps:$4 sm:$0xff]  }
  0x25   :  { %959 = vmatpush1.bf16.msra.mxu0 %v1354_v9  ;;  %v1385_v29 = vld [vmem:[#allocation2 + $0x104] ss:$8 sps:$4 sm:$0xff]   ;;  %v1384_v30 = vld [vmem:[#allocation2] ss:$8 sps:$4 sm:$0xff]   ;;  %v1388_v31 = vld [vmem:[#allocation2 + $0xf4] ss:$8 sps:$4 sm:$0xff]  }
  0x26   :  { %960 = vmatprep.subr.bf16.mxu0 %v1358_v11  ;;  %1000 = vmatpush1.bf16.msra.mxu1 %v1357_v12  ;;  %v1387_v32 = vld [vmem:[#allocation2 + $0x100] ss:$8 sps:$4 sm:$0xff]   ;;  %v1391_v33 = vld [vmem:[#allocation2 + $0x1f4] ss:$8 sps:$4 sm:$0xff]   ;;  %v1390_v34 = vld [vmem:[#allocation2 + $0xf0] ss:$8 sps:$4 sm:$0xff]  }
  0x27   :  { %1001 = vmatprep.subr.bf16.mxu1 %v1361_v13  ;;  %v1394_v35 = vld [vmem:[#allocation2 + $0xe4] ss:$8 sps:$4 sm:$0xff]   ;;  %v1393_v36 = vld [vmem:[#allocation2 + $0x1f0] ss:$8 sps:$4 sm:$0xff]   ;;  %v1396_v38 = vld [vmem:[#allocation2 + $0xe0] ss:$8 sps:$4 sm:$0xff]  }
  0x28   :  { %v1397_v37 = vld [vmem:[#allocation2 + $0x1e4] ss:$8 sps:$4 sm:$0xff]   ;;  %v1400_v39 = vld [vmem:[#allocation2 + $0xd4] ss:$8 sps:$4 sm:$0xff]   ;;  %v1399_v40 = vld [vmem:[#allocation2 + $0x1e0] ss:$8 sps:$4 sm:$0xff]  }
  0x29   :  { %961 = vmatpush1.bf16.msra.mxu0 %v1360_v14  ;;  %v1403_v41 = vld [vmem:[#allocation2 + $0x1d4] ss:$8 sps:$4 sm:$0xff]   ;;  %v1402_v42 = vld [vmem:[#allocation2 + $0xd0] ss:$8 sps:$4 sm:$0xff]   ;;  %v1406_v43 = vld [vmem:[#allocation2 + $0xc4] ss:$8 sps:$4 sm:$0xff]  }
  0x2a   :  { %962 = vmatprep.subr.bf16.mxu0 %v1364_v15  ;;  %1002 = vmatpush1.bf16.msra.mxu1 %v1363_v16  ;;  %v1405_v44 = vld [vmem:[#allocation2 + $0x1d0] ss:$8 sps:$4 sm:$0xff]   ;;  %v1409_v45 = vld [vmem:[#allocation2 + $0x1c4] ss:$8 sps:$4 sm:$0xff]   ;;  %v1408_v47 = vld [vmem:[#allocation2 + $0xc0] ss:$8 sps:$4 sm:$0xff]  }
  0x2b   :  { %1003 = vmatprep.subr.bf16.mxu1 %v1367_v17  ;;  %v41_v46 = vld [vmem:[%s1670_s0] sm:$0xff]  ;;  %v1412_v49 = vld [vmem:[#allocation2 + $0xb4] ss:$8 sps:$4 sm:$0xff]   ;;  %v42_v50 = vld [vmem:[%s1670_s0 + $0x8] sm:$0xff] }
  0x2c   :  { %v1181_v48 = vcombine.high %v41_v46, %v41_v46  ;;  %v1411_v51 = vld [vmem:[#allocation2 + $0x1c0] ss:$8 sps:$4 sm:$0xff]   ;;  %v1183_v52 = vcombine.high %v42_v50, %v42_v50  ;;  %v1415_v53 = vld [vmem:[#allocation2 + $0x1b4] ss:$8 sps:$4 sm:$0xff]   ;;  %v1414_v54 = vld [vmem:[#allocation2 + $0xb0] ss:$8 sps:$4 sm:$0xff]   ;;  %v1180_v5 = vcombine.low %v41_v46, %v41_v46  ;;  %v1182_v8 = vcombine.low %v42_v50, %v42_v50 }
  0x2d   :  { %963 = vmatpush1.bf16.msra.mxu0 %v1366_v18  ;;  %v1418_v55 = vld [vmem:[#allocation2 + $0xa4] ss:$8 sps:$4 sm:$0xff]   ;;  %v1417_v56 = vld [vmem:[#allocation2 + $0x1b0] ss:$8 sps:$4 sm:$0xff]   ;;  %v1420_v58 = vld [vmem:[#allocation2 + $0xa0] ss:$8 sps:$4 sm:$0xff]  }
  0x2e   :  { %964 = vmatprep.subr.bf16.mxu0 %v1370_v19  ;;  %1004 = vmatpush1.bf16.msra.mxu1 %v1369_v20  ;;  %v1421_v57 = vld [vmem:[#allocation2 + $0x1a4] ss:$8 sps:$4 sm:$0xff]   ;;  %v1424_v59 = vld [vmem:[#allocation2 + $0x94] ss:$8 sps:$4 sm:$0xff]   ;;  %v1423_v60 = vld [vmem:[#allocation2 + $0x1a0] ss:$8 sps:$4 sm:$0xff]  }
  0x2f   :  { %1005 = vmatprep.subr.bf16.mxu1 %v1373_v21  ;;  %986 = vmatprep.mubr.bf16.mxu0 %v1181_v48  ;;  %v1427_v61 = vld [vmem:[#allocation2 + $0x194] ss:$8 sps:$4 sm:$0xff]   ;;  %v1426_v62 = vld [vmem:[#allocation2 + $0x90] ss:$8 sps:$4 sm:$0xff]   ;;  %v1430_v63 = vld [vmem:[#allocation2 + $0x84] ss:$8 sps:$4 sm:$0xff]  }
  0x30   :  { %1027 = vmatprep.mubr.bf16.mxu1 %v1183_v52  ;;  %v1429_v0 = vld [vmem:[#allocation2 + $0x190] ss:$8 sps:$4 sm:$0xff]   ;;  %v1433_v1 = vld [vmem:[#allocation2 + $0x184] ss:$8 sps:$4 sm:$0xff]   ;;  %v1432_v2 = vld [vmem:[#allocation2 + $0x80] ss:$8 sps:$4 sm:$0xff]  }
  0x31   :  { %965 = vmatpush1.bf16.msra.mxu0 %v1372_v22  ;;  %v1440_v3 = vld [vmem:[#allocation2 + $0x274] ss:$8 sps:$4 sm:$0xff]   ;;  %v1437_v4 = vld [vmem:[#allocation2 + $0x180] ss:$8 sps:$4 sm:$0xff]   ;;  %v1438_v7 = vld [vmem:[#allocation2 + $0x270] ss:$8 sps:$4 sm:$0xff]  }
  0x32   :  { %966 = vmatprep.subr.bf16.mxu0 %v1376_v23  ;;  %1006 = vmatpush1.bf16.msra.mxu1 %v1375_v24  ;;  %v1445_v6 = vld [vmem:[#allocation2 + $0x374] ss:$8 sps:$4 sm:$0xff]   ;;  %v1448_v9 = vld [vmem:[#allocation2 + $0x264] ss:$8 sps:$4 sm:$0xff]   ;;  %v1443_v10 = vld [vmem:[#allocation2 + $0x370] ss:$8 sps:$4 sm:$0xff]  }
  0x33   :  { %1007 = vmatprep.subr.bf16.mxu1 %v1379_v25  ;;  %v1451_v11 = vld [vmem:[#allocation2 + $0x364] ss:$8 sps:$4 sm:$0xff]   ;;  %v1446_v12 = vld [vmem:[#allocation2 + $0x260] ss:$8 sps:$4 sm:$0xff]   ;;  %v1454_v13 = vld [vmem:[#allocation2 + $0x254] ss:$8 sps:$4 sm:$0xff]  }
  0x34   :  { %v1449_v14 = vld [vmem:[#allocation2 + $0x360] ss:$8 sps:$4 sm:$0xff]   ;;  %v1457_v15 = vld [vmem:[#allocation2 + $0x354] ss:$8 sps:$4 sm:$0xff]   ;;  %v1452_v16 = vld [vmem:[#allocation2 + $0x250] ss:$8 sps:$4 sm:$0xff]  }
  0x35   :  { %967 = vmatpush1.bf16.msra.mxu0 %v1378_v26  ;;  %v1460_v17 = vld [vmem:[#allocation2 + $0x244] ss:$8 sps:$4 sm:$0xff]   ;;  %v1455_v18 = vld [vmem:[#allocation2 + $0x350] ss:$8 sps:$4 sm:$0xff]   ;;  %v1458_v20 = vld [vmem:[#allocation2 + $0x240] ss:$8 sps:$4 sm:$0xff]  }
  0x36   :  { %968 = vmatprep.subr.bf16.mxu0 %v1382_v27  ;;  %1008 = vmatpush1.bf16.msra.mxu1 %v1381_v28  ;;  %v1463_v19 = vld [vmem:[#allocation2 + $0x344] ss:$8 sps:$4 sm:$0xff]   ;;  %v1466_v21 = vld [vmem:[#allocation2 + $0x234] ss:$8 sps:$4 sm:$0xff]   ;;  %v1461_v22 = vld [vmem:[#allocation2 + $0x340] ss:$8 sps:$4 sm:$0xff]  }
  0x37   :  { %1009 = vmatprep.subr.bf16.mxu1 %v1385_v29  ;;  %v1469_v23 = vld [vmem:[#allocation2 + $0x334] ss:$8 sps:$4 sm:$0xff]   ;;  %v1464_v24 = vld [vmem:[#allocation2 + $0x230] ss:$8 sps:$4 sm:$0xff]   ;;  %v1472_v25 = vld [vmem:[#allocation2 + $0x224] ss:$8 sps:$4 sm:$0xff]  }
  0x38   :  { %v1467_v26 = vld [vmem:[#allocation2 + $0x330] ss:$8 sps:$4 sm:$0xff]   ;;  %v1475_v27 = vld [vmem:[#allocation2 + $0x324] ss:$8 sps:$4 sm:$0xff]   ;;  %v1470_v28 = vld [vmem:[#allocation2 + $0x220] ss:$8 sps:$4 sm:$0xff]  }
  0x39   :  { %969 = vmatpush1.bf16.msra.mxu0 %v1384_v30  ;;  %v1478_v29 = vld [vmem:[#allocation2 + $0x214] ss:$8 sps:$4 sm:$0xff]   ;;  %v1473_v30 = vld [vmem:[#allocation2 + $0x320] ss:$8 sps:$4 sm:$0xff]   ;;  %v1491_v46 = vld [vmem:[#allocation2 + $0x3f0] ss:$8 sps:$4 sm:$0xff]  }
  0x3a   :  { %970 = vmatprep.subr.bf16.mxu0 %v1388_v31  ;;  %1010 = vmatpush1.bf16.msra.mxu1 %v1387_v32  ;;  %v1481_v31 = vld [vmem:[#allocation2 + $0x314] ss:$8 sps:$4 sm:$0xff]   ;;  %v1494_v48 = vld [vmem:[#allocation2 + $0x2e0] ss:$8 sps:$4 sm:$0xff]   ;;  %v1500_v52 = vld [vmem:[#allocation2 + $0x2d0] ss:$8 sps:$4 sm:$0xff]  }
  0x3b   :  { %1011 = vmatprep.subr.bf16.mxu1 %v1391_v33  ;;  %v1649_v32 = vld [vmem:[%s1670_s0 + $0x10] sm:$0xff]  ;;  %v1497_v50 = vld [vmem:[#allocation2 + $0x3e0] ss:$8 sps:$4 sm:$0xff]  }
  0x3c   :  { %v1476_v33 = vld [vmem:[#allocation2 + $0x210] ss:$8 sps:$4 sm:$0xff]  }
  0x3d   :  { %971 = vmatpush2.bf16.msra.mxu0 %v1390_v34  ;;  %v1185_v34 = vcombine.high %v1649_v32, %v1649_v32 }
  0x3e   :  { %972 = vmatprep.subr.bf16.mxu0 %v1394_v35  ;;  %1012 = vmatpush2.bf16.msra.mxu1 %v1393_v36  ;;  %v1656_v35 = vld [vmem:[%s1670_s0 + $0x18] sm:$0xff]  ;;  %v1484_v36 = vld [vmem:[#allocation2 + $0x204] ss:$8 sps:$4 sm:$0xff]  }
  0x3f   :  { %1013 = vmatprep.subr.bf16.mxu1 %v1397_v37  ;;  %v1187_v37 = vcombine.high %v1656_v35, %v1656_v35 }
  0x41   :  { %973 = vmatpush2.bf16.msra.mxu0 %v1396_v38  ;;  %v1479_v38 = vld [vmem:[#allocation2 + $0x310] ss:$8 sps:$4 sm:$0xff]  }
  0x42   :  { %974 = vmatprep.subr.bf16.mxu0 %v1400_v39  ;;  %1014 = vmatpush2.bf16.msra.mxu1 %v1399_v40  ;;  %v1487_v39 = vld [vmem:[#allocation2 + $0x304] ss:$8 sps:$4 sm:$0xff]   ;;  %v1482_v40 = vld [vmem:[#allocation2 + $0x200] ss:$8 sps:$4 sm:$0xff]  }
  0x43   :  { %1015 = vmatprep.subr.bf16.mxu1 %v1403_v41  ;;  %v1490_v41 = vld [vmem:[#allocation2 + $0x2f4] ss:$8 sps:$4 sm:$0xff]  }
  0x45   :  { %975 = vmatpush2.bf16.msra.mxu0 %v1402_v42  ;;  %v1485_v42 = vld [vmem:[#allocation2 + $0x300] ss:$8 sps:$4 sm:$0xff]  }
  0x46   :  { %976 = vmatprep.subr.bf16.mxu0 %v1406_v43  ;;  %1016 = vmatpush2.bf16.msra.mxu1 %v1405_v44  ;;  %v1493_v43 = vld [vmem:[#allocation2 + $0x3f4] ss:$8 sps:$4 sm:$0xff]   ;;  %v1488_v44 = vld [vmem:[#allocation2 + $0x2f0] ss:$8 sps:$4 sm:$0xff]  }
  0x47   :  { %1017 = vmatprep.subr.bf16.mxu1 %v1409_v45  ;;  %v1496_v45 = vld [vmem:[#allocation2 + $0x2e4] ss:$8 sps:$4 sm:$0xff]  }
  0x49   :  { %977 = vmatpush2.bf16.msra.mxu0 %v1408_v47  ;;  %v1499_v47 = vld [vmem:[#allocation2 + $0x3e4] ss:$8 sps:$4 sm:$0xff]  }
  0x4a   :  { %978 = vmatprep.subr.bf16.mxu0 %v1412_v49  ;;  %1018 = vmatpush2.bf16.msra.mxu1 %v1411_v51  ;;  %v1502_v49 = vld [vmem:[#allocation2 + $0x2d4] ss:$8 sps:$4 sm:$0xff]  }
  0x4b   :  { %1019 = vmatprep.subr.bf16.mxu1 %v1415_v53  ;;  %v1505_v51 = vld [vmem:[#allocation2 + $0x3d4] ss:$8 sps:$4 sm:$0xff]   ;;  %v1508_v53 = vld [vmem:[#allocation2 + $0x2c4] ss:$8 sps:$4 sm:$0xff]  }
  0x4d   :  { %979 = vmatpush2.bf16.msra.mxu0 %v1414_v54  ;;  %v1503_v54 = vld [vmem:[#allocation2 + $0x3d0] ss:$8 sps:$4 sm:$0xff]  }
  0x4e   :  { %980 = vmatprep.subr.bf16.mxu0 %v1418_v55  ;;  %1020 = vmatpush2.bf16.msra.mxu1 %v1417_v56  ;;  %v1511_v55 = vld [vmem:[#allocation2 + $0x3c4] ss:$8 sps:$4 sm:$0xff]   ;;  %v1506_v56 = vld [vmem:[#allocation2 + $0x2c0] ss:$8 sps:$4 sm:$0xff]  }
  0x4f   :  { %1021 = vmatprep.subr.bf16.mxu1 %v1421_v57  ;;  %v1514_v57 = vld [vmem:[#allocation2 + $0x2b4] ss:$8 sps:$4 sm:$0xff]  }
  0x51   :  { %981 = vmatpush2.bf16.msra.mxu0 %v1420_v58  ;;  %v1509_v58 = vld [vmem:[#allocation2 + $0x3c0] ss:$8 sps:$4 sm:$0xff]  }
  0x52   :  { %982 = vmatprep.subr.bf16.mxu0 %v1424_v59  ;;  %1022 = vmatpush2.bf16.msra.mxu1 %v1423_v60  ;;  %v1517_v59 = vld [vmem:[#allocation2 + $0x3b4] ss:$8 sps:$4 sm:$0xff]   ;;  %v1512_v60 = vld [vmem:[#allocation2 + $0x2b0] ss:$8 sps:$4 sm:$0xff]  }
  0x53   :  { %1023 = vmatprep.subr.bf16.mxu1 %v1427_v61  ;;  %v1520_v61 = vld [vmem:[#allocation2 + $0x2a4] ss:$8 sps:$4 sm:$0xff]  }
  0x55   :  { %983 = vmatpush2.bf16.msra.mxu0 %v1426_v62  ;;  %v1515_v62 = vld [vmem:[#allocation2 + $0x3b0] ss:$8 sps:$4 sm:$0xff]  }
  0x56   :  { %984 = vmatprep.subr.bf16.mxu0 %v1430_v63  ;;  %1024 = vmatpush2.bf16.msra.mxu1 %v1429_v0  ;;  %v1523_v63 = vld [vmem:[#allocation2 + $0x3a4] ss:$8 sps:$4 sm:$0xff]   ;;  %v1518_v0 = vld [vmem:[#allocation2 + $0x2a0] ss:$8 sps:$4 sm:$0xff]  }
  0x57   :  { %1025 = vmatprep.subr.bf16.mxu1 %v1433_v1  ;;  %v1526_v1 = vld [vmem:[#allocation2 + $0x294] ss:$8 sps:$4 sm:$0xff]  }
  0x59   :  { %985 = vmatpush2.bf16.msra.mxu0 %v1432_v2  ;;  %v1521_v2 = vld [vmem:[#allocation2 + $0x3a0] ss:$8 sps:$4 sm:$0xff]  }
  0x5a   :  { %1036 = vmatprep.subr.bf16.mxu0 %v1440_v3  ;;  %1026 = vmatpush2.bf16.msra.mxu1 %v1437_v4  ;;  %v1529_v3 = vld [vmem:[#allocation2 + $0x394] ss:$8 sps:$4 sm:$0xff]   ;;  %v1524_v4 = vld [vmem:[#allocation2 + $0x290] ss:$8 sps:$4 sm:$0xff]  }
  0x5b   :  { %1077 = vmatprep.subr.bf16.mxu1 %v1445_v6  ;;  %v1527_v6 = vld [vmem:[#allocation2 + $0x390] ss:$8 sps:$4 sm:$0xff]  }
  0x5c   :  { %987 = vmatmul.mubr.bf16.vlgmr.msra.gmra.mxu0 %v1180_v5  ;;  %v1532_v5 = vld [vmem:[#allocation2 + $0x284] ss:$8 sps:$4 sm:$0xff]  }
  0x5d   :  { %1037 = vmatpush1.bf16.msra.mxu0 %v1438_v7  ;;  %1028 = vmatmul.mubr.bf16.vlgmr.msra.gmra.mxu1 %v1182_v8  ;;  %v1535_v7 = vld [vmem:[#allocation2 + $0x384] ss:$8 sps:$4 sm:$0xff]   ;;  %v1530_v8 = vld [vmem:[#allocation2 + $0x280] ss:$8 sps:$4 sm:$0xff]  }
  0x5e   :  { %1038 = vmatprep.subr.bf16.mxu0 %v1448_v9  ;;  %1078 = vmatpush1.bf16.msra.mxu1 %v1443_v10  ;;  %v1540_v9 = vld [vmem:[#allocation2 + $0x474] ss:$8 sps:$4 sm:$0xff]   ;;  %v1533_v10 = vld [vmem:[#allocation2 + $0x380] ss:$8 sps:$4 sm:$0xff]  }
  0x5f   :  { %1079 = vmatprep.subr.bf16.mxu1 %v1451_v11  ;;  %1068 = vmatprep.mubr.bf16.mxu0 %v1185_v34  ;;  %v1184_v11 = vcombine.low %v1649_v32, %v1649_v32 }
  0x60   :  { %1109 = vmatprep.mubr.bf16.mxu1 %v1187_v37 }
  0x61   :  { %1039 = vmatpush1.bf16.msra.mxu0 %v1446_v12  ;;  %v1538_v12 = vld [vmem:[#allocation2 + $0x470] ss:$8 sps:$4 sm:$0xff]  }
  0x62   :  { %1040 = vmatprep.subr.bf16.mxu0 %v1454_v13  ;;  %1080 = vmatpush1.bf16.msra.mxu1 %v1449_v14  ;;  %v1186_v13 = vcombine.low %v1656_v35, %v1656_v35  ;;  %v1545_v14 = vld [vmem:[#allocation2 + $0x464] ss:$8 sps:$4 sm:$0xff]  }
  0x63   :  { %1081 = vmatprep.subr.bf16.mxu1 %v1457_v15  ;;  %v1543_v15 = vld [vmem:[#allocation2 + $0x460] ss:$8 sps:$4 sm:$0xff]  }
  0x65   :  { %1041 = vmatpush1.bf16.msra.mxu0 %v1452_v16  ;;  %v1613_v16 = vmov 0  }
  0x66   :  { %1042 = vmatprep.subr.bf16.mxu0 %v1460_v17  ;;  %1082 = vmatpush1.bf16.msra.mxu1 %v1455_v18  ;;  %v1548_v17 = vld [vmem:[#allocation2 + $0x454] ss:$8 sps:$4 sm:$0xff]   ;;  %v1546_v18 = vld [vmem:[#allocation2 + $0x450] ss:$8 sps:$4 sm:$0xff]  }
  0x67   :  { %1083 = vmatprep.subr.bf16.mxu1 %v1463_v19  ;;  %v1551_v19 = vld [vmem:[#allocation2 + $0x444] ss:$8 sps:$4 sm:$0xff]  }
  0x69   :  { %1043 = vmatpush1.bf16.msra.mxu0 %v1458_v20  ;;  %v1549_v20 = vld [vmem:[#allocation2 + $0x440] ss:$8 sps:$4 sm:$0xff]  }
  0x6a   :  { %1044 = vmatprep.subr.bf16.mxu0 %v1466_v21  ;;  %1084 = vmatpush1.bf16.msra.mxu1 %v1461_v22  ;;  %v1554_v21 = vld [vmem:[#allocation2 + $0x434] ss:$8 sps:$4 sm:$0xff]   ;;  %v1552_v22 = vld [vmem:[#allocation2 + $0x430] ss:$8 sps:$4 sm:$0xff]  }
  0x6b   :  { %1085 = vmatprep.subr.bf16.mxu1 %v1469_v23  ;;  %v1557_v23 = vld [vmem:[#allocation2 + $0x424] ss:$8 sps:$4 sm:$0xff]  }
  0x6d   :  { %1045 = vmatpush1.bf16.msra.mxu0 %v1464_v24  ;;  %v1555_v24 = vld [vmem:[#allocation2 + $0x420] ss:$8 sps:$4 sm:$0xff]  }
  0x6e   :  { %1046 = vmatprep.subr.bf16.mxu0 %v1472_v25  ;;  %1086 = vmatpush1.bf16.msra.mxu1 %v1467_v26  ;;  %v1560_v25 = vld [vmem:[#allocation2 + $0x414] ss:$8 sps:$4 sm:$0xff]   ;;  %v1558_v26 = vld [vmem:[#allocation2 + $0x410] ss:$8 sps:$4 sm:$0xff]  }
  0x6f   :  { %1087 = vmatprep.subr.bf16.mxu1 %v1475_v27  ;;  %v1563_v27 = vld [vmem:[#allocation2 + $0x404] ss:$8 sps:$4 sm:$0xff]  }
  0x71   :  { %1047 = vmatpush1.bf16.msra.mxu0 %v1470_v28  ;;  %v1561_v28 = vld [vmem:[#allocation2 + $0x400] ss:$8 sps:$4 sm:$0xff]  }
  0x72   :  { %1048 = vmatprep.subr.bf16.mxu0 %v1478_v29  ;;  %1088 = vmatpush1.bf16.msra.mxu1 %v1473_v30  ;;  %v1564_v29 = vld [vmem:[%s1670_s0 + $0x20] ss:$0 sps:$4 sm:$0xff]   ;;  %v192_v30 = vlaneseq }
  0x73   :  { %1089 = vmatprep.subr.bf16.mxu1 %v1481_v31 }
  0x74   :  { %v193_v31 = vshrl.u32 %v192_v30, 7 }
  0x75   :  { %1049 = vmatpush1.bf16.msra.mxu0 %v1476_v33  ;;  %v190_v33 = vld [vmem:[#allocation4] sm:$0x3] }
  0x76   :  { %1050 = vmatprep.subr.bf16.mxu0 %v1484_v36  ;;  %1090 = vmatpush1.bf16.msra.mxu1 %v1479_v38  ;;  %v194_v32 = vsub.s32 0, %v193_v31  ;;  %v198_v34 = vsub.s32 1, %v193_v31 }
  0x77   :  { %1091 = vmatprep.subr.bf16.mxu1 %v1487_v39 }
  0x78   :  { %v195_v35 = vrot.slane %v190_v33, %v194_v32  ;;  %v199_v36 = vrot.slane %v190_v33, %v198_v34 }
  0x79   :  { %1051 = vmatpush1.bf16.msra.mxu0 %v1482_v40 }
  0x7a   :  { %1052 = vmatprep.subr.bf16.mxu0 %v1490_v41  ;;  %1092 = vmatpush1.bf16.msra.mxu1 %v1485_v42 }
  0x7b   :  { %1093 = vmatprep.subr.bf16.mxu1 %v1493_v43 }
  0x7d   :  { %1053 = vmatpush2.bf16.msra.mxu0 %v1488_v44 }
  0x7e   :  { %1054 = vmatprep.subr.bf16.mxu0 %v1496_v45  ;;  %1094 = vmatpush2.bf16.msra.mxu1 %v1491_v46 }
  0x7f   :  { %1095 = vmatprep.subr.bf16.mxu1 %v1499_v47 }
  0x81   :  { %1055 = vmatpush2.bf16.msra.mxu0 %v1494_v48 }
  0x82   :  { %1056 = vmatprep.subr.bf16.mxu0 %v1502_v49  ;;  %1096 = vmatpush2.bf16.msra.mxu1 %v1497_v50 }
  0x83   :  { %1097 = vmatprep.subr.bf16.mxu1 %v1505_v51 }
  0x85   :  { %1057 = vmatpush2.bf16.msra.mxu0 %v1500_v52 }
  0x86   :  { %1058 = vmatprep.subr.bf16.mxu0 %v1508_v53  ;;  %1098 = vmatpush2.bf16.msra.mxu1 %v1503_v54 }
  0x87   :  { %1099 = vmatprep.subr.bf16.mxu1 %v1511_v55 }
  0x89   :  { %1059 = vmatpush2.bf16.msra.mxu0 %v1506_v56 }
  0x8a   :  { %1060 = vmatprep.subr.bf16.mxu0 %v1514_v57  ;;  %1100 = vmatpush2.bf16.msra.mxu1 %v1509_v58 }
  0x8b   :  { %1101 = vmatprep.subr.bf16.mxu1 %v1517_v59 }
  0x8d   :  { %1061 = vmatpush2.bf16.msra.mxu0 %v1512_v60 }
  0x8e   :  { %1062 = vmatprep.subr.bf16.mxu0 %v1520_v61  ;;  %1102 = vmatpush2.bf16.msra.mxu1 %v1515_v62 }
  0x8f   :  { %1103 = vmatprep.subr.bf16.mxu1 %v1523_v63 }
  0x91   :  { %1063 = vmatpush2.bf16.msra.mxu0 %v1518_v0 }
  0x92   :  { %1064 = vmatprep.subr.bf16.mxu0 %v1526_v1  ;;  %1104 = vmatpush2.bf16.msra.mxu1 %v1521_v2 }
  0x93   :  { %1105 = vmatprep.subr.bf16.mxu1 %v1529_v3 }
  0x95   :  { %1065 = vmatpush2.bf16.msra.mxu0 %v1524_v4 }
  0x96   :  { %1066 = vmatprep.subr.bf16.mxu0 %v1532_v5  ;;  %1106 = vmatpush2.bf16.msra.mxu1 %v1527_v6 }
  0x97   :  { %1107 = vmatprep.subr.bf16.mxu1 %v1535_v7 }
  0x99   :  { %1067 = vmatpush2.bf16.msra.mxu0 %v1530_v8 }
  0x9a   :  { %1118 = vmatprep.subr.bf16.mxu0 %v1540_v9  ;;  %1108 = vmatpush2.bf16.msra.mxu1 %v1533_v10 }
  0x9c   :  { %1069 = vmatmul.mubr.bf16.vlgmr.msra.gmra.mxu0 %v1184_v11 }
  0x9d   :  { %1119 = vmatpush1.bf16.msra.mxu0 %v1538_v12  ;;  %1150 = vmatprep.mubr.bf16.mxu0 %v1613_v16 }
  0x9e   :  { %1110 = vmatmul.mubr.bf16.vlgmr.msra.gmra.mxu1 %v1186_v13  ;;  %1120 = vmatprep.subr.bf16.mxu0 %v1545_v14 }
  0xa1   :  { %1121 = vmatpush1.bf16.msra.mxu0 %v1543_v15 }
  0xa2   :  { %1122 = vmatprep.subr.bf16.mxu0 %v1548_v17 }
  0xa5   :  { %1123 = vmatpush1.bf16.msra.mxu0 %v1546_v18 }
  0xa6   :  { %1124 = vmatprep.subr.bf16.mxu0 %v1551_v19 }
  0xa9   :  { %1125 = vmatpush1.bf16.msra.mxu0 %v1549_v20 }
  0xaa   :  { %1126 = vmatprep.subr.bf16.mxu0 %v1554_v21 }
  0xad   :  { %1127 = vmatpush1.bf16.msra.mxu0 %v1552_v22 }
  0xae   :  { %1128 = vmatprep.subr.bf16.mxu0 %v1557_v23 }
  0xb1   :  { %1129 = vmatpush1.bf16.msra.mxu0 %v1555_v24 }
  0xb2   :  { %1130 = vmatprep.subr.bf16.mxu0 %v1560_v25 }
  0xb5   :  { %1131 = vmatpush1.bf16.msra.mxu0 %v1558_v26 }
  0xb6   :  { %1132 = vmatprep.subr.bf16.mxu0 %v1563_v27 }
  0xb9   :  { %1133 = vmatpush1.bf16.msra.mxu0 %v1561_v28 }
  0xbc   :  { %1151 = vmatmul.mubr.bf16.vlgmr.msra.gmra.mxu0 %v1564_v29 }
 0x11c   :  { %v988_v37 = vpop.f32.mrf.mxu0 }
 0x11d   :  { %v989_v38 = vadd.f32 %v988_v37, %v195_v35  ;;  %v1029_v40 = vpop.f32.mrf.mxu1 }
 0x11e   :  { %v990_v39 = vpop.f32.mrf.mxu0 }
 0x11f   :  { %v991_v41 = vadd.f32 %v990_v39, %v199_v36  ;;  %v1030_v42 = vadd.f32 %v1029_v40, %v989_v38  ;;  %v1031_v44 = vpop.f32.mrf.mxu1 }
 0x120   :  { %v992_v43 = vpop.f32.mrf.mxu0 }
 0x121   :  { %v1032_v45 = vadd.f32 %v1031_v44, %v991_v41  ;;  %v1033_v47 = vpop.f32.mrf.mxu1 }
 0x122   :  { %v993_v46 = vpop.f32.mrf.mxu0 }
 0x123   :  { %v1034_v48 = vpop.f32.mrf.mxu1 }
 0x15c   :  { %v1070_v49 = vpop.f32.mrf.mxu0 }
 0x15d   :  { %v1071_v57 = vadd.f32 %v1070_v49, %v1030_v42 }
 0x15e   :  { %v1072_v50 = vpop.f32.mrf.mxu0  ;;  %v1111_v51 = vpop.f32.mrf.mxu1 }
 0x15f   :  { %v1073_v58 = vadd.f32 %v1072_v50, %v1032_v45  ;;  %v1112_v59 = vadd.f32 %v1111_v51, %v1071_v57 }
 0x160   :  { %v1074_v52 = vpop.f32.mrf.mxu0  ;;  %v1113_v53 = vpop.f32.mrf.mxu1 }
 0x161   :  { %v1114_v61 = vadd.f32 %v1113_v53, %v1073_v58 }
 0x162   :  { %v1075_v54 = vpop.f32.mrf.mxu0  ;;  %v1115_v55 = vpop.f32.mrf.mxu1 }
 0x164   :  { %v1116_v56 = vpop.f32.mrf.mxu1 }
 0x17c   :  { %v1152_v60 = vpop.f32.mrf.mxu0 }
 0x17d   :  { %v1153_v62 = vadd.f32 %v1152_v60, %v1112_v59 }
 0x17e   :  { %v1154_v63 = vpop.f32.mrf.mxu0 }
 0x17f   :  { %v1161_v0 = vmul.f32 0.2, %v1153_v62  ;;  %v1155_v1 = vadd.f32 %v1154_v63, %v1114_v61  ;;  %vm1159_vm0 = vcmp.gt.f32.partialorder %v1153_v62, 0.0 }
 0x180   :  { %v1156_v2 = vpop.f32.mrf.mxu0 }
 0x181   :  { %vm1160_vm1 = vcmp.gt.f32.partialorder %v1155_v1, 0.0  ;;  %v1162_v3 = vmul.f32 0.2, %v1155_v1  ;;  %v1163_v5 = vsel %vm1159_vm0, %v1153_v62, %v1161_v0 }
 0x182   :  { %v1157_v4 = vpop.f32.mrf.mxu0 }
 0x183   :  { %v1164_v6 = vsel %vm1160_vm1, %v1155_v1, %v1162_v3 }
 0x184   :  { %v1334_v7 = vpack.c.bf16 %v1164_v6, %v1163_v5 }
 0x186   :  { %1173 = vst [vmem:[%s1673_s3] sm:$0xff] %v1334_v7 }
 0x187   :  { %1178 = vsyncpa [#allocation3], 1 }
 0x188   :  { %1179 = vsyncpa [#allocation5], 1 }

// kernel: discriminator_forward.9
= control target key start
LH: loop header
LB: loop body
LE: loop exit
PB: predicated region body
PF: predicated region fallthrough
CT: control target
= control target key end

     0   :  { %vm39_vm0 = vcmask 1043456   ;;  %vm427_vm1 = vcmask 1041409   ;;  %s4396_s1 = inlined_call_operand.vmem [shape: bf16[512,1024], index: 1, kind: input, shape index: {}]   ;;  %s4397_s0 = inlined_call_operand.vmem [shape: bf16[2,4,512], index: 0, kind: input, shape index: {}]   ;;  %s4398_s3 = inlined_call_operand.vmem [shape: bf16[1024,128], index: 3, kind: input, shape index: {}]   ;;  %s4399_s2 = inlined_call_operand.vmem [shape: f32[1,1024], index: 2, kind: input, shape index: {}]   ;;  %s4400_s4 = inlined_call_operand.vmem [shape: f32[1,128], index: 4, kind: input, shape index: {}]   ;;  %s4401_s5 = inlined_call_operand.vmem [shape: f32[2,128], index: 5, kind: output, shape index: {}]  }
   0x1   :  { %v169_v0 = vld [vmem:[%s4396_s1 + $0x1c0] sm:$0xff] }
   0x2   :  { %v173_v1 = vld [vmem:[%s4396_s1 + $0x1e0] sm:$0xff] }
   0x3   :  { %v297_v2 = vld [vmem:[%s4396_s1 + $0x5c0] sm:$0xff]  ;;  %v2831_v3 = vcombine.high %v169_v0, %v173_v1  ;;  %v2830_v5 = vcombine.low %v169_v0, %v173_v1 }
   0x4   :  { %v301_v4 = vld [vmem:[%s4396_s1 + $0x5e0] sm:$0xff] }
   0x5   :  { %v161_v6 = vld [vmem:[%s4396_s1 + $0x180] sm:$0xff]  ;;  %v2959_v8 = vcombine.high %v297_v2, %v301_v4  ;;  %v2958_v9 = vcombine.low %v297_v2, %v301_v4  ;;  %1720 = vmatprep.subr.bf16.mxu0 %v2831_v3 }
   0x6   :  { %v165_v7 = vld [vmem:[%s4396_s1 + $0x1a0] sm:$0xff]  ;;  %1721 = vmatpush1.bf16.msra.mxu0 %v2830_v5  ;;  %v22_v5 = vld [vmem:[%s4397_s0 + $0x8] sm:$0xff] }
   0x7   :  { %v2823_v10 = vcombine.high %v161_v6, %v165_v7  ;;  %v289_v11 = vld [vmem:[%s4396_s1 + $0x580] sm:$0xff]  ;;  %1761 = vmatprep.subr.bf16.mxu1 %v2959_v8  ;;  %v2822_v18 = vcombine.low %v161_v6, %v165_v7 }
   0x8   :  { %v293_v12 = vld [vmem:[%s4396_s1 + $0x5a0] sm:$0xff]  ;;  %1762 = vmatpush1.bf16.msra.mxu1 %v2958_v9  ;;  %v25_v9 = vunpack.c.l.bf16 %v22_v5 }
   0x9   :  { %v153_v13 = vld [vmem:[%s4396_s1 + $0x140] sm:$0xff]  ;;  %v2951_v14 = vcombine.high %v289_v11, %v293_v12  ;;  %1722 = vmatprep.subr.bf16.mxu0 %v2823_v10  ;;  %v2950_v19 = vcombine.low %v289_v11, %v293_v12 }
   0xa   :  { %v157_v15 = vld [vmem:[%s4396_s1 + $0x160] sm:$0xff]  ;;  %1723 = vmatpush1.bf16.msra.mxu0 %v2822_v18 }
   0xb   :  { %v281_v16 = vld [vmem:[%s4396_s1 + $0x540] sm:$0xff]  ;;  %v2815_v20 = vcombine.high %v153_v13, %v157_v15  ;;  %1763 = vmatprep.subr.bf16.mxu1 %v2951_v14  ;;  %v2814_v26 = vcombine.low %v153_v13, %v157_v15  ;;  %v26_v13 = vunpack.c.h.bf16 %v22_v5  ;;  %v33_v15 = vcombine.high %v25_v9, %v25_v9 }
   0xc   :  { %v285_v17 = vld [vmem:[%s4396_s1 + $0x560] sm:$0xff]  ;;  %1764 = vmatpush1.bf16.msra.mxu1 %v2950_v19 }
   0xd   :  { %v2943_v21 = vcombine.high %v281_v16, %v285_v17  ;;  %v145_v22 = vld [vmem:[%s4396_s1 + $0x100] sm:$0xff]  ;;  %1724 = vmatprep.subr.bf16.mxu0 %v2815_v20  ;;  %v2942_v27 = vcombine.low %v281_v16, %v285_v17  ;;  %v68_v17 = vsel %vm39_vm0, %v25_v9, 0.0  ;;  %v34_v19 = vcombine.high %v26_v13, %v26_v13 }
   0xe   :  { %v149_v23 = vld [vmem:[%s4396_s1 + $0x120] sm:$0xff]  ;;  %1725 = vmatpush1.bf16.msra.mxu0 %v2814_v26 }
   0xf   :  { %v273_v24 = vld [vmem:[%s4396_s1 + $0x500] sm:$0xff]  ;;  %v2807_v28 = vcombine.high %v145_v22, %v149_v23  ;;  %1765 = vmatprep.subr.bf16.mxu1 %v2943_v21  ;;  %v2806_v34 = vcombine.low %v145_v22, %v149_v23  ;;  %v69_v21 = vrot.slane %v68_v17, 4  ;;  %v75_v23 = vsel %vm39_vm0, %v33_v15, 0.0 }
  0x10   :  { %v277_v25 = vld [vmem:[%s4396_s1 + $0x520] sm:$0xff]  ;;  %1766 = vmatpush1.bf16.msra.mxu1 %v2942_v27 }
  0x11   :  { %v2935_v29 = vcombine.high %v273_v24, %v277_v25  ;;  %v137_v30 = vld [vmem:[%s4396_s1 + $0xc0] sm:$0xff]  ;;  %1726 = vmatprep.subr.bf16.mxu0 %v2807_v28  ;;  %v2934_v35 = vcombine.low %v273_v24, %v277_v25  ;;  %v82_v25 = vsel %vm39_vm0, %v26_v13, 0.0 }
  0x12   :  { %v141_v31 = vld [vmem:[%s4396_s1 + $0xe0] sm:$0xff]  ;;  %1727 = vmatpush1.bf16.msra.mxu0 %v2806_v34 }
  0x13   :  { %v265_v32 = vld [vmem:[%s4396_s1 + $0x4c0] sm:$0xff]  ;;  %v2799_v36 = vcombine.high %v137_v30, %v141_v31  ;;  %1767 = vmatprep.subr.bf16.mxu1 %v2935_v29  ;;  %v2798_v42 = vcombine.low %v137_v30, %v141_v31  ;;  %v76_v29 = vrot.slane %v75_v23, 4  ;;  %v89_v31 = vsel %vm39_vm0, %v34_v19, 0.0 }
  0x14   :  { %v269_v33 = vld [vmem:[%s4396_s1 + $0x4e0] sm:$0xff]  ;;  %1768 = vmatpush1.bf16.msra.mxu1 %v2934_v35  ;;  %v70_v35 = vadd.f32 %v69_v21, %v68_v17 }
  0x15   :  { %v2927_v37 = vcombine.high %v265_v32, %v269_v33  ;;  %v129_v38 = vld [vmem:[%s4396_s1 + $0x80] sm:$0xff]  ;;  %1728 = vmatprep.subr.bf16.mxu0 %v2799_v36  ;;  %v2926_v46 = vcombine.low %v265_v32, %v269_v33  ;;  %v90_v33 = vrot.slane %v89_v31, 4 }
  0x16   :  { %v133_v39 = vld [vmem:[%s4396_s1 + $0xa0] sm:$0xff]  ;;  %1729 = vmatpush1.bf16.msra.mxu0 %v2798_v42 }
  0x17   :  { %v257_v40 = vld [vmem:[%s4396_s1 + $0x480] sm:$0xff]  ;;  %v2791_v47 = vcombine.high %v129_v38, %v133_v39  ;;  %1769 = vmatprep.subr.bf16.mxu1 %v2927_v37  ;;  %v2790_v55 = vcombine.low %v129_v38, %v133_v39  ;;  %v77_v37 = vadd.f32 %v76_v29, %v75_v23  ;;  %v83_v39 = vrot.slane %v82_v25, 4 }
  0x18   :  { %v261_v41 = vld [vmem:[%s4396_s1 + $0x4a0] sm:$0xff]  ;;  %1770 = vmatpush1.bf16.msra.mxu1 %v2926_v46  ;;  %v91_v42 = vadd.f32 %v90_v33, %v89_v31 }
  0x19   :  { %v3356_v43 = vld [vmem:[%s4396_s1 + $0x40] sm:$0xff]  ;;  %v2919_v51 = vcombine.high %v257_v40, %v261_v41  ;;  %v2918_v56 = vcombine.low %v257_v40, %v261_v41  ;;  %1730 = vmatprep.subr.bf16.mxu0 %v2791_v47  ;;  %v78_v47 = vrot.slane %v77_v37, 2 }
  0x1a   :  { %v3361_v44 = vld [vmem:[%s4396_s1 + $0x60] sm:$0xff]  ;;  %1731 = vmatpush1.bf16.msra.mxu0 %v2790_v55 }
  0x1b   :  { %v3366_v45 = vld [vmem:[%s4396_s1 + $0x440] sm:$0xff]  ;;  %v2783_v57 = vcombine.high %v3356_v43, %v3361_v44  ;;  %v2782_v62 = vcombine.low %v3356_v43, %v3361_v44  ;;  %1771 = vmatprep.subr.bf16.mxu1 %v2919_v51 }
  0x1c   :  { %v3371_v48 = vld [vmem:[%s4396_s1 + $0x460] sm:$0xff]  ;;  %1772 = vmatpush1.bf16.msra.mxu1 %v2918_v56 }
  0x1d   :  { %v3376_v49 = vld [vmem:[%s4396_s1] sm:$0xff]  ;;  %v2911_v61 = vcombine.high %v3366_v45, %v3371_v48  ;;  %v2910_v63 = vcombine.low %v3366_v45, %v3371_v48  ;;  %1732 = vmatprep.subr.bf16.mxu0 %v2783_v57  ;;  %v92_v57 = vrot.slane %v91_v42, 2 }
  0x1e   :  { %v3381_v50 = vld [vmem:[%s4396_s1 + $0x20] sm:$0xff]  ;;  %1733 = vmatpush1.bf16.msra.mxu0 %v2782_v62 }
  0x1f   :  { %v3386_v52 = vld [vmem:[%s4396_s1 + $0x400] sm:$0xff]  ;;  %v2775_v0 = vcombine.high %v3376_v49, %v3381_v50  ;;  %v2774_v2 = vcombine.low %v3376_v49, %v3381_v50  ;;  %1773 = vmatprep.subr.bf16.mxu1 %v2911_v61  ;;  %v84_v49 = vadd.f32 %v83_v39, %v82_v25  ;;  %v71_v61 = vrot.slane %v70_v35, 2 }
  0x20   :  { %v3391_v53 = vld [vmem:[%s4396_s1 + $0x420] sm:$0xff]  ;;  %1774 = vmatpush1.bf16.msra.mxu1 %v2910_v63  ;;  %v79_v63 = vadd.f32 %v78_v47, %v77_v37 }
  0x21   :  { %v3396_v54 = vld [vmem:[%s4396_s1 + $0x3c0] sm:$0xff]  ;;  %v2903_v1 = vcombine.high %v3386_v52, %v3391_v53  ;;  %v2902_v3 = vcombine.low %v3386_v52, %v3391_v53  ;;  %1734 = vmatprep.subr.bf16.mxu0 %v2775_v0 }
  0x22   :  { %v3403_v58 = vld [vmem:[%s4396_s1 + $0x3e0] sm:$0xff]  ;;  %1735 = vmatpush1.bf16.msra.mxu0 %v2774_v2 }
  0x23   :  { %v3408_v59 = vld [vmem:[%s4396_s1 + $0x7c0] sm:$0xff]  ;;  %v2895_v6 = vcombine.high %v3396_v54, %v3403_v58  ;;  %v2894_v10 = vcombine.low %v3396_v54, %v3403_v58  ;;  %1775 = vmatprep.subr.bf16.mxu1 %v2903_v1  ;;  %v85_v1 = vrot.slane %v84_v49, 2 }
  0x24   :  { %v3413_v60 = vld [vmem:[%s4396_s1 + $0x7e0] sm:$0xff]  ;;  %1776 = vmatpush1.bf16.msra.mxu1 %v2902_v3 }
  0x25   :  { %v21_v4 = vld [vmem:[%s4397_s0] sm:$0xff]  ;;  %v3023_v7 = vcombine.high %v3408_v59, %v3413_v60  ;;  %v3022_v11 = vcombine.low %v3408_v59, %v3413_v60  ;;  %1736 = vmatprep.subr.bf16.mxu0 %v2895_v6  ;;  %v80_v6 = vrot.slane %v79_v63, 1 }
  0x26   :  { %v23_v8 = vunpack.c.l.bf16 %v21_v4  ;;  %v24_v12 = vunpack.c.h.bf16 %v21_v4  ;;  %v3452_v26 = vld [vmem:[%s4396_s1 + $0x380] sm:$0xff]  ;;  %1737 = vmatpush2.bf16.msra.mxu0 %v2894_v10  ;;  %v86_v10 = vadd.f32 %v85_v1, %v84_v49 }
  0x27   :  { %v3457_v27 = vld [vmem:[%s4396_s1 + $0x3a0] sm:$0xff]  ;;  %1777 = vmatprep.subr.bf16.mxu1 %v3023_v7  ;;  %v81_v58 = vadd.f32 %v80_v6, %v79_v63 }
  0x28   :  { %v31_v14 = vcombine.high %v23_v8, %v23_v8  ;;  %v40_v16 = vsel %vm39_vm0, %v23_v8, 0.0  ;;  %v32_v18 = vcombine.high %v24_v12, %v24_v12  ;;  %v54_v24 = vsel %vm39_vm0, %v24_v12, 0.0  ;;  %v353_v44 = vld [vmem:[%s4396_s1 + $0x780] sm:$0xff]  ;;  %1778 = vmatpush2.bf16.msra.mxu1 %v3022_v11 }
  0x29   :  { %v41_v20 = vrot.slane %v40_v16, 4  ;;  %v55_v38 = vrot.slane %v54_v24, 4  ;;  %v2887_v40 = vcombine.high %v3452_v26, %v3457_v27  ;;  %v357_v45 = vld [vmem:[%s4396_s1 + $0x7a0] sm:$0xff]  ;;  %v2886_v50 = vcombine.low %v3452_v26, %v3457_v27 }
  0x2a   :  { %v47_v22 = vsel %vm39_vm0, %v31_v14, 0.0  ;;  %v61_v30 = vsel %vm39_vm0, %v32_v18, 0.0  ;;  %v3474_v51 = vld [vmem:[%s4396_s1 + $0x340] sm:$0xff]  ;;  %v3015_v2 = vcombine.high %v353_v44, %v357_v45  ;;  %v3014_v4 = vcombine.low %v353_v44, %v357_v45 }
  0x2b   :  { %v48_v28 = vrot.slane %v47_v22, 4  ;;  %v62_v32 = vrot.slane %v61_v30, 4  ;;  %v42_v34 = vadd.f32 %v41_v20, %v40_v16  ;;  %v56_v48 = vadd.f32 %v55_v38, %v54_v24  ;;  %v3479_v55 = vld [vmem:[%s4396_s1 + $0x360] sm:$0xff]  ;;  %1738 = vmatprep.subr.bf16.mxu0 %v2887_v40 }
  0x2c   :  { %v93_v8 = vadd.f32 %v92_v57, %v91_v42  ;;  %v2879_v9 = vcombine.high %v3474_v51, %v3479_v55  ;;  %v345_v52 = vld [vmem:[%s4396_s1 + $0x740] sm:$0xff]  ;;  %v72_v16 = vadd.f32 %v71_v61, %v70_v35  ;;  %1779 = vmatprep.subr.bf16.mxu1 %v3015_v2  ;;  %v2878_v19 = vcombine.low %v3474_v51, %v3479_v55 }
  0x2d   :  { %v49_v36 = vadd.f32 %v48_v28, %v47_v22  ;;  %v63_v41 = vadd.f32 %v62_v32, %v61_v30  ;;  %v43_v43 = vrot.slane %v42_v34, 2  ;;  %v57_v0 = vrot.slane %v56_v48, 2  ;;  %v349_v53 = vld [vmem:[%s4396_s1 + $0x760] sm:$0xff]  ;;  %1739 = vmatpush2.bf16.msra.mxu0 %v2886_v50  ;;  %1780 = vmatpush2.bf16.msra.mxu1 %v3014_v4 }
  0x2e   :  { %v3501_v7 = vld [vmem:[%s4396_s1 + $0x300] sm:$0xff]  ;;  %v94_v15 = vrot.slane %v93_v8, 1  ;;  %v3007_v18 = vcombine.high %v345_v52, %v349_v53  ;;  %v3006_v22 = vcombine.low %v345_v52, %v349_v53  ;;  %v102_v24 = vmul.f32 0.25, %v81_v58  ;;  %1740 = vmatprep.subr.bf16.mxu0 %v2879_v9 }
  0x2f   :  { %v50_v46 = vrot.slane %v49_v36, 2  ;;  %v64_v56 = vrot.slane %v63_v41, 2  ;;  %v44_v12 = vadd.f32 %v43_v43, %v42_v34  ;;  %v3506_v13 = vld [vmem:[%s4396_s1 + $0x320] sm:$0xff]  ;;  %v58_v17 = vadd.f32 %v57_v0, %v56_v48 }
  0x30   :  { %v95_v21 = vadd.f32 %v94_v15, %v93_v8  ;;  %v2871_v23 = vcombine.high %v3501_v7, %v3506_v13  ;;  %v337_v59 = vld [vmem:[%s4396_s1 + $0x700] sm:$0xff]  ;;  %v73_v30 = vrot.slane %v72_v16, 1  ;;  %v110_v32 = vpack.c.bf16 %v102_v24, %v102_v24  ;;  %1781 = vmatprep.subr.bf16.mxu1 %v3007_v18 }
  0x31   :  { %v51_v62 = vadd.f32 %v50_v46, %v49_v36  ;;  %v65_v5 = vadd.f32 %v64_v56, %v63_v41  ;;  %v341_v60 = vld [vmem:[%s4396_s1 + $0x720] sm:$0xff]  ;;  %v45_v29 = vrot.slane %v44_v12, 1  ;;  %v59_v33 = vrot.slane %v58_v17, 1  ;;  %1741 = vmatpush2.bf16.msra.mxu0 %v2878_v19  ;;  %1782 = vmatpush2.bf16.msra.mxu1 %v3006_v22 }
  0x32   :  { %v201_v25 = vld [vmem:[%s4396_s1 + $0x2c0] sm:$0xff]  ;;  %v104_v28 = vmul.f32 0.25, %v95_v21  ;;  %v87_v34 = vrot.slane %v86_v10, 1  ;;  %v2999_v35 = vcombine.high %v337_v59, %v341_v60  ;;  %v2870_v36 = vcombine.low %v3501_v7, %v3506_v13  ;;  %1742 = vmatprep.subr.bf16.mxu0 %v2871_v23 }
  0x33   :  { %v52_v3 = vrot.slane %v51_v62, 1  ;;  %v66_v14 = vrot.slane %v65_v5, 1  ;;  %v205_v26 = vld [vmem:[%s4396_s1 + $0x2e0] sm:$0xff]  ;;  %v2998_v39 = vcombine.low %v337_v59, %v341_v60  ;;  %v424_v44 = vunpack.c.l.b16 %v110_v32 }
  0x34   :  { %v112_v38 = vpack.c.bf16 %v104_v28, %v104_v28  ;;  %v2863_v40 = vcombine.high %v201_v25, %v205_v26  ;;  %v329_v41 = vld [vmem:[%s4396_s1 + $0x6c0] sm:$0xff]  ;;  %v46_v47 = vadd.f32 %v45_v29, %v44_v12  ;;  %v74_v48 = vadd.f32 %v73_v30, %v72_v16  ;;  %1783 = vmatprep.subr.bf16.mxu1 %v2999_v35  ;;  %v170_v28 = vld [vmem:[%s4396_s1 + $0x1c8] sm:$0xff] }
  0x35   :  { %v53_v54 = vadd.f32 %v52_v3, %v51_v62  ;;  %v67_v20 = vadd.f32 %v66_v14, %v65_v5  ;;  %v333_v42 = vld [vmem:[%s4396_s1 + $0x6e0] sm:$0xff]  ;;  %v60_v50 = vadd.f32 %v59_v33, %v58_v17  ;;  %v88_v51 = vadd.f32 %v87_v34, %v86_v10  ;;  %1743 = vmatpush2.bf16.msra.mxu0 %v2870_v36  ;;  %v174_v29 = vld [vmem:[%s4396_s1 + $0x1e8] sm:$0xff] }
  0x36   :  { %v426_v46 = vunpack.c.l.b16 %v112_v38  ;;  %v2991_v55 = vcombine.high %v329_v41, %v333_v42  ;;  %v193_v56 = vld [vmem:[%s4396_s1 + $0x280] sm:$0xff]  ;;  %v2862_v2 = vcombine.low %v201_v25, %v205_v26  ;;  %v97_v4 = vmul.f32 0.25, %v46_v47  ;;  %1784 = vmatpush2.bf16.msra.mxu1 %v2998_v39  ;;  %1744 = vmatprep.subr.bf16.mxu0 %v2863_v40  ;;  %v298_v30 = vld [vmem:[%s4396_s1 + $0x5c8] sm:$0xff] }
  0x37   :  { %v98_v11 = vmul.f32 0.25, %v53_v54  ;;  %v100_v27 = vmul.f32 0.25, %v67_v20  ;;  %v197_v57 = vld [vmem:[%s4396_s1 + $0x2a0] sm:$0xff]  ;;  %v101_v5 = vmul.f32 0.25, %v74_v48  ;;  %v2990_v8 = vcombine.low %v329_v41, %v333_v42  ;;  %v162_v38 = vld [vmem:[%s4396_s1 + $0x188] sm:$0xff] }
  0x38   :  { %v321_v63 = vld [vmem:[%s4396_s1 + $0x680] sm:$0xff]  ;;  %v2855_v9 = vcombine.high %v193_v56, %v197_v57  ;;  %v99_v52 = vmul.f32 0.25, %v60_v50  ;;  %v103_v53 = vmul.f32 0.25, %v88_v51  ;;  %1785 = vmatprep.subr.bf16.mxu1 %v2991_v55  ;;  %v2854_v14 = vcombine.low %v193_v56, %v197_v57  ;;  %v166_v39 = vld [vmem:[%s4396_s1 + $0x1a8] sm:$0xff] }
  0x39   :  { %v106_v31 = vpack.c.bf16 %v98_v11, %v98_v11  ;;  %v108_v37 = vpack.c.bf16 %v100_v27, %v100_v27  ;;  %v325_v0 = vld [vmem:[%s4396_s1 + $0x6a0] sm:$0xff]  ;;  %1745 = vmatpush2.bf16.msra.mxu0 %v2862_v2  ;;  %v105_v16 = vpack.c.bf16 %v97_v4, %v97_v4  ;;  %v109_v17 = vpack.c.bf16 %v101_v5, %v101_v5  ;;  %v290_v41 = vld [vmem:[%s4396_s1 + $0x588] sm:$0xff] }
  0x3a   :  { %v2983_v3 = vcombine.high %v321_v63, %v325_v0  ;;  %v185_v6 = vld [vmem:[%s4396_s1 + $0x240] sm:$0xff]  ;;  %v2982_v15 = vcombine.low %v321_v63, %v325_v0  ;;  %1786 = vmatpush2.bf16.msra.mxu1 %v2990_v8  ;;  %1746 = vmatprep.subr.bf16.mxu0 %v2855_v9  ;;  %v107_v58 = vpack.c.bf16 %v99_v52, %v99_v52  ;;  %v294_v42 = vld [vmem:[%s4396_s1 + $0x5a8] sm:$0xff] }
  0x3b   :  { %v420_v43 = vunpack.c.l.b16 %v106_v31  ;;  %v422_v45 = vunpack.c.l.b16 %v108_v37  ;;  %v189_v12 = vld [vmem:[%s4396_s1 + $0x260] sm:$0xff]  ;;  %v111_v10 = vpack.c.bf16 %v103_v53, %v103_v53  ;;  %v419_v59 = vunpack.c.l.b16 %v105_v16  ;;  %v302_v31 = vld [vmem:[%s4396_s1 + $0x5e8] sm:$0xff] }
  0x3c   :  { %v313_v7 = vld [vmem:[%s4396_s1 + $0x640] sm:$0xff]  ;;  %v2847_v54 = vcombine.high %v185_v6, %v189_v12  ;;  %1787 = vmatprep.subr.bf16.mxu1 %v2983_v3  ;;  %v2846_v23 = vcombine.low %v185_v6, %v189_v12  ;;  %v423_v60 = vunpack.c.l.b16 %v109_v17  ;;  %v421_v25 = vunpack.c.l.b16 %v107_v58  ;;  %v154_v48 = vld [vmem:[%s4396_s1 + $0x148] sm:$0xff] }
  0x3d   :  { %v429_v49 = vsel %vm427_vm1, %v424_v44, %v420_v43  ;;  %v431_v62 = vsel %vm427_vm1, %v426_v46, %v422_v45  ;;  %v317_v13 = vld [vmem:[%s4396_s1 + $0x660] sm:$0xff]  ;;  %1747 = vmatpush2.bf16.msra.mxu0 %v2854_v14  ;;  %v425_v26 = vunpack.c.l.b16 %v111_v10  ;;  %v2833_v36 = vcombine.high %v170_v28, %v174_v29  ;;  %v282_v50 = vld [vmem:[%s4396_s1 + $0x548] sm:$0xff] }
  0x3e   :  { %v3542_v61 = vpack.c.b16 %v429_v49, %v429_v49  ;;  %v3551_v1 = vpack.c.b16 %v431_v62, %v431_v62  ;;  %v2975_v18 = vcombine.high %v313_v7, %v317_v13  ;;  %v177_v19 = vld [vmem:[%s4396_s1 + $0x200] sm:$0xff]  ;;  %1788 = vmatpush2.bf16.msra.mxu1 %v2982_v15  ;;  %1748 = vmatprep.subr.bf16.mxu0 %v2847_v54  ;;  %v158_v49 = vld [vmem:[%s4396_s1 + $0x168] sm:$0xff] }
  0x3f   :  { %v181_v20 = vld [vmem:[%s4396_s1 + $0x220] sm:$0xff]  ;;  %v2974_v11 = vcombine.low %v313_v7, %v317_v13  ;;  %v428_v33 = vsel %vm427_vm1, %v423_v60, %v419_v59  ;;  %v430_v35 = vsel %vm427_vm1, %v425_v26, %v421_v25  ;;  %v2961_v37 = vcombine.high %v298_v30, %v302_v31  ;;  %v286_v51 = vld [vmem:[%s4396_s1 + $0x568] sm:$0xff] }
  0x40   :  { %1752 = vmatprep.mubr.bf16.mxu0 %v3542_v61  ;;  %1793 = vmatprep.mubr.bf16.mxu1 %v3551_v1  ;;  %v305_v21 = vld [vmem:[%s4396_s1 + $0x600] sm:$0xff]  ;;  %v2839_v24 = vcombine.high %v177_v19, %v181_v20  ;;  %v2838_v32 = vcombine.low %v177_v19, %v181_v20  ;;  %v3599_v40 = vpack.c.b16 %v428_v33, %v428_v33  ;;  %v146_v63 = vld [vmem:[%s4396_s1 + $0x108] sm:$0xff] }
  0x41   :  { %v309_v22 = vld [vmem:[%s4396_s1 + $0x620] sm:$0xff]  ;;  %1789 = vmatprep.subr.bf16.mxu1 %v2975_v18  ;;  %1749 = vmatpush2.bf16.msra.mxu0 %v2846_v23  ;;  %v3607_v43 = vpack.c.b16 %v430_v35, %v430_v35  ;;  %v2832_v44 = vcombine.low %v170_v28, %v174_v29  ;;  %v2960_v45 = vcombine.low %v298_v30, %v302_v31  ;;  %v150_v0 = vld [vmem:[%s4396_s1 + $0x128] sm:$0xff] }
  0x42   :  { %v2967_v27 = vcombine.high %v305_v21, %v309_v22  ;;  %1790 = vmatpush2.bf16.msra.mxu1 %v2974_v11  ;;  %1750 = vmatprep.subr.bf16.mxu0 %v2839_v24  ;;  %v2966_v34 = vcombine.low %v305_v21, %v309_v22  ;;  %v2825_v46 = vcombine.high %v162_v38, %v166_v39  ;;  %v274_v2 = vld [vmem:[%s4396_s1 + $0x508] sm:$0xff] }
  0x43   :  { %v2953_v47 = vcombine.high %v290_v41, %v294_v42  ;;  %v2824_v55 = vcombine.low %v162_v38, %v166_v39  ;;  %v2952_v56 = vcombine.low %v290_v41, %v294_v42  ;;  %v2817_v57 = vcombine.high %v154_v48, %v158_v49  ;;  %v278_v4 = vld [vmem:[%s4396_s1 + $0x528] sm:$0xff] }
  0x44   :  { %1791 = vmatprep.subr.bf16.mxu1 %v2967_v27  ;;  %v2945_v62 = vcombine.high %v282_v50, %v286_v51  ;;  %v2816_v5 = vcombine.low %v154_v48, %v158_v49  ;;  %v2944_v8 = vcombine.low %v282_v50, %v286_v51  ;;  %v2809_v9 = vcombine.high %v146_v63, %v150_v0  ;;  %v138_v53 = vld [vmem:[%s4396_s1 + $0xc8] sm:$0xff] }
  0x45   :  { %1751 = vmatpush2.bf16.msra.mxu0 %v2838_v32  ;;  %v2937_v52 = vcombine.high %v274_v2, %v278_v4  ;;  %v142_v3 = vld [vmem:[%s4396_s1 + $0xe8] sm:$0xff]  ;;  %v2808_v7 = vcombine.low %v146_v63, %v150_v0  ;;  %v2936_v13 = vcombine.low %v274_v2, %v278_v4 }
  0x46   :  { %1792 = vmatpush2.bf16.msra.mxu1 %v2966_v34  ;;  %1802 = vmatprep.subr.bf16.mxu0 %v2833_v36  ;;  %v266_v6 = vld [vmem:[%s4396_s1 + $0x4c8] sm:$0xff]  ;;  %v2801_v14 = vcombine.high %v138_v53, %v142_v3  ;;  %v2800_v10 = vcombine.low %v138_v53, %v142_v3 }
  0x47   :  { %1843 = vmatprep.subr.bf16.mxu1 %v2961_v37  ;;  %v270_v12 = vld [vmem:[%s4396_s1 + $0x4e8] sm:$0xff] }
  0x48   :  { %1753 = vmatmul.mubr.bf16.vlgmr.msra.gmra.mxu0 %v3599_v40  ;;  %v2929_v15 = vcombine.high %v266_v6, %v270_v12  ;;  %v130_v16 = vld [vmem:[%s4396_s1 + $0x88] sm:$0xff]  ;;  %v2928_v18 = vcombine.low %v266_v6, %v270_v12 }
  0x49   :  { %1794 = vmatmul.mubr.bf16.vlgmr.msra.gmra.mxu1 %v3607_v43  ;;  %1803 = vmatpush1.bf16.msra.mxu0 %v2832_v44  ;;  %v134_v17 = vld [vmem:[%s4396_s1 + $0xa8] sm:$0xff] }
  0x4a   :  { %1844 = vmatpush1.bf16.msra.mxu1 %v2960_v45  ;;  %1804 = vmatprep.subr.bf16.mxu0 %v2825_v46  ;;  %v258_v54 = vld [vmem:[%s4396_s1 + $0x488] sm:$0xff]  ;;  %v2793_v19 = vcombine.high %v130_v16, %v134_v17  ;;  %v2792_v60 = vcombine.low %v130_v16, %v134_v17 }
  0x4b   :  { %1845 = vmatprep.subr.bf16.mxu1 %v2953_v47  ;;  %1834 = vmatprep.mubr.bf16.mxu0 %v3542_v61  ;;  %v262_v58 = vld [vmem:[%s4396_s1 + $0x4a8] sm:$0xff] }
  0x4c   :  { %1875 = vmatprep.mubr.bf16.mxu1 %v3551_v1  ;;  %v2921_v20 = vcombine.high %v258_v54, %v262_v58  ;;  %v122_v21 = vld [vmem:[%s4396_s1 + $0x48] sm:$0xff]  ;;  %v2920_v11 = vcombine.low %v258_v54, %v262_v58 }
  0x4d   :  { %1805 = vmatpush1.bf16.msra.mxu0 %v2824_v55  ;;  %v126_v22 = vld [vmem:[%s4396_s1 + $0x68] sm:$0xff] }
  0x4e   :  { %1846 = vmatpush1.bf16.msra.mxu1 %v2952_v56  ;;  %1806 = vmatprep.subr.bf16.mxu0 %v2817_v57  ;;  %v250_v23 = vld [vmem:[%s4396_s1 + $0x448] sm:$0xff]  ;;  %v2785_v24 = vcombine.high %v122_v21, %v126_v22  ;;  %v2784_v30 = vcombine.low %v122_v21, %v126_v22 }
  0x4f   :  { %1847 = vmatprep.subr.bf16.mxu1 %v2945_v62  ;;  %v254_v59 = vld [vmem:[%s4396_s1 + $0x468] sm:$0xff] }
  0x50   :  { %v2913_v25 = vcombine.high %v250_v23, %v254_v59  ;;  %v114_v26 = vld [vmem:[%s4396_s1 + $0x8] sm:$0xff]  ;;  %v2912_v31 = vcombine.low %v250_v23, %v254_v59 }
  0x51   :  { %1807 = vmatpush1.bf16.msra.mxu0 %v2816_v5  ;;  %v118_v27 = vld [vmem:[%s4396_s1 + $0x28] sm:$0xff] }
  0x52   :  { %1848 = vmatpush1.bf16.msra.mxu1 %v2944_v8  ;;  %1808 = vmatprep.subr.bf16.mxu0 %v2809_v9  ;;  %v242_v28 = vld [vmem:[%s4396_s1 + $0x408] sm:$0xff]  ;;  %v2777_v32 = vcombine.high %v114_v26, %v118_v27  ;;  %v2776_v38 = vcombine.low %v114_v26, %v118_v27 }
  0x53   :  { %1849 = vmatprep.subr.bf16.mxu1 %v2937_v52  ;;  %v246_v29 = vld [vmem:[%s4396_s1 + $0x428] sm:$0xff] }
  0x54   :  { %v2905_v33 = vcombine.high %v242_v28, %v246_v29  ;;  %v234_v34 = vld [vmem:[%s4396_s1 + $0x3c8] sm:$0xff]  ;;  %v2904_v39 = vcombine.low %v242_v28, %v246_v29 }
  0x55   :  { %1809 = vmatpush1.bf16.msra.mxu0 %v2808_v7  ;;  %v238_v35 = vld [vmem:[%s4396_s1 + $0x3e8] sm:$0xff] }
  0x56   :  { %1850 = vmatpush1.bf16.msra.mxu1 %v2936_v13  ;;  %1810 = vmatprep.subr.bf16.mxu0 %v2801_v14  ;;  %v362_v36 = vld [vmem:[%s4396_s1 + $0x7c8] sm:$0xff]  ;;  %v2897_v41 = vcombine.high %v234_v34, %v238_v35  ;;  %v2896_v48 = vcombine.low %v234_v34, %v238_v35 }
  0x57   :  { %1851 = vmatprep.subr.bf16.mxu1 %v2929_v15  ;;  %v366_v37 = vld [vmem:[%s4396_s1 + $0x7e8] sm:$0xff] }
  0x58   :  { %v3025_v42 = vcombine.high %v362_v36, %v366_v37  ;;  %v226_v44 = vld [vmem:[%s4396_s1 + $0x388] sm:$0xff]  ;;  %v3024_v49 = vcombine.low %v362_v36, %v366_v37 }
  0x59   :  { %1811 = vmatpush1.bf16.msra.mxu0 %v2800_v10  ;;  %v230_v45 = vld [vmem:[%s4396_s1 + $0x3a8] sm:$0xff] }
  0x5a   :  { %1852 = vmatpush1.bf16.msra.mxu1 %v2928_v18  ;;  %1812 = vmatprep.subr.bf16.mxu0 %v2793_v19  ;;  %v354_v46 = vld [vmem:[%s4396_s1 + $0x788] sm:$0xff]  ;;  %v2889_v50 = vcombine.high %v226_v44, %v230_v45  ;;  %v2888_v63 = vcombine.low %v226_v44, %v230_v45 }
  0x5b   :  { %1853 = vmatprep.subr.bf16.mxu1 %v2921_v20  ;;  %v358_v47 = vld [vmem:[%s4396_s1 + $0x7a8] sm:$0xff] }
  0x5c   :  { %v3017_v51 = vcombine.high %v354_v46, %v358_v47  ;;  %v218_v55 = vld [vmem:[%s4396_s1 + $0x348] sm:$0xff]  ;;  %v3016_v0 = vcombine.low %v354_v46, %v358_v47 }
  0x5d   :  { %1813 = vmatpush1.bf16.msra.mxu0 %v2792_v60  ;;  %v222_v56 = vld [vmem:[%s4396_s1 + $0x368] sm:$0xff] }
  0x5e   :  { %1854 = vmatpush1.bf16.msra.mxu1 %v2920_v11  ;;  %1814 = vmatprep.subr.bf16.mxu0 %v2785_v24  ;;  %v346_v57 = vld [vmem:[%s4396_s1 + $0x748] sm:$0xff]  ;;  %v2881_v2 = vcombine.high %v218_v55, %v222_v56  ;;  %v2880_v53 = vcombine.low %v218_v55, %v222_v56 }
  0x5f   :  { %1855 = vmatprep.subr.bf16.mxu1 %v2913_v25  ;;  %v350_v62 = vld [vmem:[%s4396_s1 + $0x768] sm:$0xff] }
  0x60   :  { %v3009_v4 = vcombine.high %v346_v57, %v350_v62  ;;  %v210_v5 = vld [vmem:[%s4396_s1 + $0x308] sm:$0xff]  ;;  %v3008_v3 = vcombine.low %v346_v57, %v350_v62  ;;  %v155_v62 = vld [vmem:[%s4396_s1 + $0x150] sm:$0xff] }
  0x61   :  { %1815 = vmatpush1.bf16.msra.mxu0 %v2784_v30  ;;  %v214_v8 = vld [vmem:[%s4396_s1 + $0x328] sm:$0xff] }
  0x62   :  { %1856 = vmatpush1.bf16.msra.mxu1 %v2912_v31  ;;  %1816 = vmatprep.subr.bf16.mxu0 %v2777_v32  ;;  %v338_v9 = vld [vmem:[%s4396_s1 + $0x708] sm:$0xff]  ;;  %v2873_v6 = vcombine.high %v210_v5, %v214_v8  ;;  %v2872_v16 = vcombine.low %v210_v5, %v214_v8  ;;  %v147_v8 = vld [vmem:[%s4396_s1 + $0x110] sm:$0xff] }
  0x63   :  { %1857 = vmatprep.subr.bf16.mxu1 %v2905_v33  ;;  %v342_v52 = vld [vmem:[%s4396_s1 + $0x728] sm:$0xff] }
  0x64   :  { %v3001_v12 = vcombine.high %v338_v9, %v342_v52  ;;  %v202_v7 = vld [vmem:[%s4396_s1 + $0x2c8] sm:$0xff]  ;;  %v3000_v17 = vcombine.low %v338_v9, %v342_v52  ;;  %v151_v9 = vld [vmem:[%s4396_s1 + $0x130] sm:$0xff] }
  0x65   :  { %1817 = vmatpush1.bf16.msra.mxu0 %v2776_v38  ;;  %v206_v13 = vld [vmem:[%s4396_s1 + $0x2e8] sm:$0xff]  ;;  %v171_v38 = vld [vmem:[%s4396_s1 + $0x1d0] sm:$0xff] }
  0x66   :  { %1858 = vmatpush1.bf16.msra.mxu1 %v2904_v39  ;;  %1818 = vmatprep.subr.bf16.mxu0 %v2897_v41  ;;  %v330_v14 = vld [vmem:[%s4396_s1 + $0x6c8] sm:$0xff]  ;;  %v2865_v54 = vcombine.high %v202_v7, %v206_v13  ;;  %v2864_v21 = vcombine.low %v202_v7, %v206_v13  ;;  %v175_v39 = vld [vmem:[%s4396_s1 + $0x1f0] sm:$0xff] }
  0x67   :  { %1859 = vmatprep.subr.bf16.mxu1 %v3025_v42  ;;  %v334_v15 = vld [vmem:[%s4396_s1 + $0x6e8] sm:$0xff]  ;;  %v299_v41 = vld [vmem:[%s4396_s1 + $0x5d0] sm:$0xff]  ;;  %v2835_v46 = vcombine.high %v171_v38, %v175_v39  ;;  %v2834_v55 = vcombine.low %v171_v38, %v175_v39 }
  0x68   :  { %v2993_v58 = vcombine.high %v330_v14, %v334_v15  ;;  %v194_v10 = vld [vmem:[%s4396_s1 + $0x288] sm:$0xff]  ;;  %v2992_v22 = vcombine.low %v330_v14, %v334_v15  ;;  %v303_v42 = vld [vmem:[%s4396_s1 + $0x5f0] sm:$0xff] }
  0x69   :  { %1819 = vmatpush2.bf16.msra.mxu0 %v2896_v48  ;;  %v198_v18 = vld [vmem:[%s4396_s1 + $0x2a8] sm:$0xff]  ;;  %v2963_v47 = vcombine.high %v299_v41, %v303_v42  ;;  %v163_v48 = vld [vmem:[%s4396_s1 + $0x190] sm:$0xff]  ;;  %v2962_v56 = vcombine.low %v299_v41, %v303_v42 }
  0x6a   :  { %1860 = vmatpush2.bf16.msra.mxu1 %v3024_v49  ;;  %1820 = vmatprep.subr.bf16.mxu0 %v2889_v50  ;;  %v322_v19 = vld [vmem:[%s4396_s1 + $0x688] sm:$0xff]  ;;  %v2857_v23 = vcombine.high %v194_v10, %v198_v18  ;;  %v2856_v26 = vcombine.low %v194_v10, %v198_v18  ;;  %v167_v49 = vld [vmem:[%s4396_s1 + $0x1b0] sm:$0xff]  ;;  %v2810_v10 = vcombine.low %v147_v8, %v151_v9 }
  0x6b   :  { %1861 = vmatprep.subr.bf16.mxu1 %v3017_v51  ;;  %v326_v20 = vld [vmem:[%s4396_s1 + $0x6a8] sm:$0xff]  ;;  %v291_v50 = vld [vmem:[%s4396_s1 + $0x590] sm:$0xff]  ;;  %v2827_v57 = vcombine.high %v163_v48, %v167_v49  ;;  %v2826_v5 = vcombine.low %v163_v48, %v167_v49 }
  0x6c   :  { %v2985_v59 = vcombine.high %v322_v19, %v326_v20  ;;  %v186_v60 = vld [vmem:[%s4396_s1 + $0x248] sm:$0xff]  ;;  %v2984_v27 = vcombine.low %v322_v19, %v326_v20  ;;  %v295_v51 = vld [vmem:[%s4396_s1 + $0x5b0] sm:$0xff] }
  0x6d   :  { %1821 = vmatpush2.bf16.msra.mxu0 %v2888_v63  ;;  %v190_v11 = vld [vmem:[%s4396_s1 + $0x268] sm:$0xff]  ;;  %v159_v63 = vld [vmem:[%s4396_s1 + $0x170] sm:$0xff]  ;;  %v2954_v52 = vcombine.low %v291_v50, %v295_v51 }
  0x6e   :  { %1862 = vmatpush2.bf16.msra.mxu1 %v3016_v0  ;;  %1822 = vmatprep.subr.bf16.mxu0 %v2881_v2  ;;  %v314_v24 = vld [vmem:[%s4396_s1 + $0x648] sm:$0xff]  ;;  %v2849_v28 = vcombine.high %v186_v60, %v190_v11  ;;  %v2848_v34 = vcombine.low %v186_v60, %v190_v11  ;;  %v2955_v0 = vcombine.high %v291_v50, %v295_v51  ;;  %v283_v2 = vld [vmem:[%s4396_s1 + $0x550] sm:$0xff] }
  0x6f   :  { %1863 = vmatprep.subr.bf16.mxu1 %v3009_v4  ;;  %v318_v25 = vld [vmem:[%s4396_s1 + $0x668] sm:$0xff]  ;;  %v287_v4 = vld [vmem:[%s4396_s1 + $0x570] sm:$0xff]  ;;  %v2818_v7 = vcombine.low %v155_v62, %v159_v63 }
  0x70   :  { %v2977_v29 = vcombine.high %v314_v24, %v318_v25  ;;  %v178_v30 = vld [vmem:[%s4396_s1 + $0x208] sm:$0xff]  ;;  %v2976_v35 = vcombine.low %v314_v24, %v318_v25  ;;  %v139_v13 = vld [vmem:[%s4396_s1 + $0xd0] sm:$0xff]  ;;  %v2946_v15 = vcombine.low %v283_v2, %v287_v4 }
  0x71   :  { %1823 = vmatpush2.bf16.msra.mxu0 %v2880_v53  ;;  %v182_v31 = vld [vmem:[%s4396_s1 + $0x228] sm:$0xff]  ;;  %v2819_v53 = vcombine.high %v155_v62, %v159_v63  ;;  %v143_v14 = vld [vmem:[%s4396_s1 + $0xf0] sm:$0xff] }
  0x72   :  { %1864 = vmatpush2.bf16.msra.mxu1 %v3008_v3  ;;  %1824 = vmatprep.subr.bf16.mxu0 %v2873_v6  ;;  %v306_v32 = vld [vmem:[%s4396_s1 + $0x608] sm:$0xff]  ;;  %v2841_v36 = vcombine.high %v178_v30, %v182_v31  ;;  %v2840_v44 = vcombine.low %v178_v30, %v182_v31  ;;  %v2947_v3 = vcombine.high %v283_v2, %v287_v4  ;;  %v275_v6 = vld [vmem:[%s4396_s1 + $0x510] sm:$0xff] }
  0x73   :  { %1865 = vmatprep.subr.bf16.mxu1 %v3001_v12  ;;  %v310_v33 = vld [vmem:[%s4396_s1 + $0x628] sm:$0xff]  ;;  %v279_v12 = vld [vmem:[%s4396_s1 + $0x530] sm:$0xff]  ;;  %v2802_v60 = vcombine.low %v139_v13, %v143_v14 }
  0x74   :  { %v2969_v37 = vcombine.high %v306_v32, %v310_v33  ;;  %v2968_v45 = vcombine.low %v306_v32, %v310_v33  ;;  %v131_v18 = vld [vmem:[%s4396_s1 + $0x90] sm:$0xff]  ;;  %v2938_v20 = vcombine.low %v275_v6, %v279_v12 }
  0x75   :  { %1825 = vmatpush2.bf16.msra.mxu0 %v2872_v16  ;;  %v2811_v16 = vcombine.high %v147_v8, %v151_v9  ;;  %v135_v19 = vld [vmem:[%s4396_s1 + $0xb0] sm:$0xff] }
  0x76   :  { %1866 = vmatpush2.bf16.msra.mxu1 %v3000_v17  ;;  %1826 = vmatprep.subr.bf16.mxu0 %v2865_v54  ;;  %v2939_v17 = vcombine.high %v275_v6, %v279_v12  ;;  %v267_v54 = vld [vmem:[%s4396_s1 + $0x4d0] sm:$0xff]  ;;  %v2794_v30 = vcombine.low %v131_v18, %v135_v19 }
  0x77   :  { %1867 = vmatprep.subr.bf16.mxu1 %v2993_v58  ;;  %v271_v58 = vld [vmem:[%s4396_s1 + $0x4f0] sm:$0xff] }
  0x78   :  { %v123_v11 = vld [vmem:[%s4396_s1 + $0x50] sm:$0xff]  ;;  %v2930_v25 = vcombine.low %v267_v54, %v271_v58 }
  0x79   :  { %1827 = vmatpush2.bf16.msra.mxu0 %v2864_v21  ;;  %v2803_v21 = vcombine.high %v139_v13, %v143_v14  ;;  %v127_v24 = vld [vmem:[%s4396_s1 + $0x70] sm:$0xff] }
  0x7a   :  { %1868 = vmatpush2.bf16.msra.mxu1 %v2992_v22  ;;  %1828 = vmatprep.subr.bf16.mxu0 %v2857_v23  ;;  %v259_v22 = vld [vmem:[%s4396_s1 + $0x490] sm:$0xff]  ;;  %v2931_v23 = vcombine.high %v267_v54, %v271_v58  ;;  %v2786_v38 = vcombine.low %v123_v11, %v127_v24 }
  0x7b   :  { %1869 = vmatprep.subr.bf16.mxu1 %v2985_v59  ;;  %v263_v59 = vld [vmem:[%s4396_s1 + $0x4b0] sm:$0xff] }
  0x7c   :  { %v115_v31 = vld [vmem:[%s4396_s1 + $0x10] sm:$0xff]  ;;  %v2922_v33 = vcombine.low %v259_v22, %v263_v59 }
  0x7d   :  { %1829 = vmatpush2.bf16.msra.mxu0 %v2856_v26  ;;  %v2795_v26 = vcombine.high %v131_v18, %v135_v19  ;;  %v119_v32 = vld [vmem:[%s4396_s1 + $0x30] sm:$0xff] }
  0x7e   :  { %1870 = vmatpush2.bf16.msra.mxu1 %v2984_v27  ;;  %1830 = vmatprep.subr.bf16.mxu0 %v2849_v28  ;;  %v251_v27 = vld [vmem:[%s4396_s1 + $0x450] sm:$0xff]  ;;  %v2778_v48 = vcombine.low %v115_v31, %v119_v32 }
  0x7f   :  { %1871 = vmatprep.subr.bf16.mxu1 %v2977_v29  ;;  %v255_v28 = vld [vmem:[%s4396_s1 + $0x470] sm:$0xff]  ;;  %v2923_v29 = vcombine.high %v259_v22, %v263_v59 }
  0x80   :  { %v235_v39 = vld [vmem:[%s4396_s1 + $0x3d0] sm:$0xff]  ;;  %v2914_v42 = vcombine.low %v251_v27, %v255_v28 }
  0x81   :  { %1831 = vmatpush2.bf16.msra.mxu0 %v2848_v34  ;;  %v2787_v34 = vcombine.high %v123_v11, %v127_v24  ;;  %v239_v41 = vld [vmem:[%s4396_s1 + $0x3f0] sm:$0xff] }
  0x82   :  { %1872 = vmatpush2.bf16.msra.mxu1 %v2976_v35  ;;  %1832 = vmatprep.subr.bf16.mxu0 %v2841_v36  ;;  %v243_v35 = vld [vmem:[%s4396_s1 + $0x410] sm:$0xff]  ;;  %v2898_v63 = vcombine.low %v235_v39, %v239_v41 }
  0x83   :  { %1873 = vmatprep.subr.bf16.mxu1 %v2969_v37  ;;  %v247_v36 = vld [vmem:[%s4396_s1 + $0x430] sm:$0xff]  ;;  %v2915_v37 = vcombine.high %v251_v27, %v255_v28 }
  0x84   :  { %v227_v49 = vld [vmem:[%s4396_s1 + $0x390] sm:$0xff]  ;;  %v2906_v51 = vcombine.low %v243_v35, %v247_v36 }
  0x85   :  { %1833 = vmatpush2.bf16.msra.mxu0 %v2840_v44  ;;  %v2779_v44 = vcombine.high %v115_v31, %v119_v32  ;;  %v231_v50 = vld [vmem:[%s4396_s1 + $0x3b0] sm:$0xff] }
  0x86   :  { %1874 = vmatpush2.bf16.msra.mxu1 %v2968_v45  ;;  %1884 = vmatprep.subr.bf16.mxu0 %v2835_v46  ;;  %v363_v45 = vld [vmem:[%s4396_s1 + $0x7d0] sm:$0xff] }
  0x87   :  { %1925 = vmatprep.subr.bf16.mxu1 %v2963_v47  ;;  %v367_v46 = vld [vmem:[%s4396_s1 + $0x7f0] sm:$0xff]  ;;  %v2907_v47 = vcombine.high %v243_v35, %v247_v36 }
  0x88   :  { %1835 = vmatmul.mubr.bf16.vlgmr.msra.gmra.mxu0 %v3599_v40  ;;  %v3027_v62 = vcombine.high %v363_v45, %v367_v46  ;;  %v223_v2 = vld [vmem:[%s4396_s1 + $0x370] sm:$0xff]  ;;  %v3026_v4 = vcombine.low %v363_v45, %v367_v46 }
  0x89   :  { %1876 = vmatmul.mubr.bf16.vlgmr.msra.gmra.mxu1 %v3607_v43  ;;  %1885 = vmatpush1.bf16.msra.mxu0 %v2834_v55  ;;  %v2899_v55 = vcombine.high %v235_v39, %v239_v41  ;;  %v347_v9 = vld [vmem:[%s4396_s1 + $0x750] sm:$0xff] }
  0x8a   :  { %1926 = vmatpush1.bf16.msra.mxu1 %v2962_v56  ;;  %1886 = vmatprep.subr.bf16.mxu0 %v2827_v57  ;;  %v355_v56 = vld [vmem:[%s4396_s1 + $0x790] sm:$0xff] }
  0x8b   :  { %1927 = vmatprep.subr.bf16.mxu1 %v2955_v0  ;;  %1916 = vmatprep.mubr.bf16.mxu0 %v3542_v61  ;;  %v359_v57 = vld [vmem:[%s4396_s1 + $0x7b0] sm:$0xff] }
  0x8c   :  { %1957 = vmatprep.mubr.bf16.mxu1 %v3551_v1  ;;  %v219_v0 = vld [vmem:[%s4396_s1 + $0x350] sm:$0xff]  ;;  %v3019_v8 = vcombine.high %v355_v56, %v359_v57 }
  0x8d   :  { %1887 = vmatpush1.bf16.msra.mxu0 %v2826_v5  ;;  %v2891_v5 = vcombine.high %v227_v49, %v231_v50  ;;  %v2883_v6 = vcombine.high %v219_v0, %v223_v2  ;;  %v211_v12 = vld [vmem:[%s4396_s1 + $0x310] sm:$0xff] }
  0x8e   :  { %1928 = vmatpush1.bf16.msra.mxu1 %v2954_v52  ;;  %1888 = vmatprep.subr.bf16.mxu0 %v2819_v53  ;;  %v351_v52 = vld [vmem:[%s4396_s1 + $0x770] sm:$0xff]  ;;  %v2890_v53 = vcombine.low %v227_v49, %v231_v50  ;;  %v176_v49 = vld [vmem:[%s4396_s1 + $0x1f8] sm:$0xff] }
  0x8f   :  { %1929 = vmatprep.subr.bf16.mxu1 %v2947_v3  ;;  %v3018_v3 = vcombine.low %v355_v56, %v359_v57  ;;  %v339_v13 = vld [vmem:[%s4396_s1 + $0x710] sm:$0xff]  ;;  %v3011_v14 = vcombine.high %v347_v9, %v351_v52  ;;  %v3010_v58 = vcombine.low %v347_v9, %v351_v52  ;;  %v300_v50 = vld [vmem:[%s4396_s1 + $0x5d8] sm:$0xff] }
  0x90   :  { %v207_v54 = vld [vmem:[%s4396_s1 + $0x2f0] sm:$0xff] }
  0x91   :  { %1889 = vmatpush1.bf16.msra.mxu0 %v2818_v7  ;;  %v215_v7 = vld [vmem:[%s4396_s1 + $0x330] sm:$0xff] }
  0x92   :  { %1930 = vmatpush1.bf16.msra.mxu1 %v2946_v15  ;;  %1890 = vmatprep.subr.bf16.mxu0 %v2811_v16  ;;  %v343_v15 = vld [vmem:[%s4396_s1 + $0x730] sm:$0xff]  ;;  %v2882_v16 = vcombine.low %v219_v0, %v223_v2  ;;  %v168_v0 = vld [vmem:[%s4396_s1 + $0x1b8] sm:$0xff] }
  0x93   :  { %1931 = vmatprep.subr.bf16.mxu1 %v2939_v17  ;;  %v203_v17 = vld [vmem:[%s4396_s1 + $0x2d0] sm:$0xff]  ;;  %v3002_v59 = vcombine.low %v339_v13, %v343_v15  ;;  %v292_v2 = vld [vmem:[%s4396_s1 + $0x598] sm:$0xff] }
  0x94   :  { %v331_v18 = vld [vmem:[%s4396_s1 + $0x6d0] sm:$0xff] }
  0x95   :  { %1891 = vmatpush1.bf16.msra.mxu0 %v2810_v10  ;;  %v2875_v10 = vcombine.high %v211_v12, %v215_v7  ;;  %v335_v19 = vld [vmem:[%s4396_s1 + $0x6f0] sm:$0xff] }
  0x96   :  { %1932 = vmatpush1.bf16.msra.mxu1 %v2938_v20  ;;  %1892 = vmatprep.subr.bf16.mxu0 %v2803_v21  ;;  %v3003_v20 = vcombine.high %v339_v13, %v343_v15  ;;  %v2874_v21 = vcombine.low %v211_v12, %v215_v7  ;;  %v195_v22 = vld [vmem:[%s4396_s1 + $0x290] sm:$0xff]  ;;  %v288_v12 = vld [vmem:[%s4396_s1 + $0x578] sm:$0xff] }
  0x97   :  { %1933 = vmatprep.subr.bf16.mxu1 %v2931_v23  ;;  %v199_v23 = vld [vmem:[%s4396_s1 + $0x2b0] sm:$0xff] }
  0x98   :  { %v323_v11 = vld [vmem:[%s4396_s1 + $0x690] sm:$0xff] }
  0x99   :  { %1893 = vmatpush1.bf16.msra.mxu0 %v2802_v60  ;;  %v2867_v60 = vcombine.high %v203_v17, %v207_v54  ;;  %v327_v24 = vld [vmem:[%s4396_s1 + $0x6b0] sm:$0xff] }
  0x9a   :  { %1934 = vmatpush1.bf16.msra.mxu1 %v2930_v25  ;;  %1894 = vmatprep.subr.bf16.mxu0 %v2795_v26  ;;  %v2995_v25 = vcombine.high %v331_v18, %v335_v19  ;;  %v2866_v26 = vcombine.low %v203_v17, %v207_v54  ;;  %v187_v27 = vld [vmem:[%s4396_s1 + $0x250] sm:$0xff]  ;;  %v2986_v35 = vcombine.low %v323_v11, %v327_v24  ;;  %v152_v17 = vld [vmem:[%s4396_s1 + $0x138] sm:$0xff] }
  0x9b   :  { %1935 = vmatprep.subr.bf16.mxu1 %v2923_v29  ;;  %v191_v28 = vld [vmem:[%s4396_s1 + $0x270] sm:$0xff]  ;;  %v2994_v29 = vcombine.low %v331_v18, %v335_v19  ;;  %v276_v54 = vld [vmem:[%s4396_s1 + $0x518] sm:$0xff] }
  0x9c   :  { %v315_v31 = vld [vmem:[%s4396_s1 + $0x650] sm:$0xff]  ;;  %v2851_v36 = vcombine.high %v187_v27, %v191_v28 }
  0x9d   :  { %1895 = vmatpush1.bf16.msra.mxu0 %v2794_v30  ;;  %v2859_v30 = vcombine.high %v195_v22, %v199_v23  ;;  %v319_v32 = vld [vmem:[%s4396_s1 + $0x670] sm:$0xff] }
  0x9e   :  { %1936 = vmatpush1.bf16.msra.mxu1 %v2922_v33  ;;  %1896 = vmatprep.subr.bf16.mxu0 %v2787_v34  ;;  %v2987_v33 = vcombine.high %v323_v11, %v327_v24  ;;  %v2858_v34 = vcombine.low %v195_v22, %v199_v23  ;;  %v183_v39 = vld [vmem:[%s4396_s1 + $0x230] sm:$0xff]  ;;  %v2978_v45 = vcombine.low %v315_v31, %v319_v32  ;;  %v272_v22 = vld [vmem:[%s4396_s1 + $0x4f8] sm:$0xff] }
  0x9f   :  { %1937 = vmatprep.subr.bf16.mxu1 %v2915_v37  ;;  %v2979_v37 = vcombine.high %v315_v31, %v319_v32  ;;  %v307_v41 = vld [vmem:[%s4396_s1 + $0x610] sm:$0xff]  ;;  %v132_v24 = vld [vmem:[%s4396_s1 + $0x98] sm:$0xff] }
  0xa0   :  { %v124_v32 = vld [vmem:[%s4396_s1 + $0x58] sm:$0xff] }
  0xa1   :  { %1897 = vmatpush1.bf16.msra.mxu0 %v2786_v38  ;;  %v179_v38 = vld [vmem:[%s4396_s1 + $0x210] sm:$0xff] }
  0xa2   :  { %1938 = vmatpush1.bf16.msra.mxu1 %v2914_v42  ;;  %1898 = vmatprep.subr.bf16.mxu0 %v2779_v44  ;;  %v311_v42 = vld [vmem:[%s4396_s1 + $0x630] sm:$0xff]  ;;  %v2850_v44 = vcombine.low %v187_v27, %v191_v28  ;;  %v2843_v46 = vcombine.high %v179_v38, %v183_v39  ;;  %v264_v27 = vld [vmem:[%s4396_s1 + $0x4b8] sm:$0xff] }
  0xa3   :  { %1939 = vmatprep.subr.bf16.mxu1 %v2907_v47  ;;  %v2971_v47 = vcombine.high %v307_v41, %v311_v42  ;;  %v2970_v56 = vcombine.low %v307_v41, %v311_v42  ;;  %v116_v41 = vld [vmem:[%s4396_s1 + $0x18] sm:$0xff] }
  0xa4   :  { %v120_v42 = vld [vmem:[%s4396_s1 + $0x38] sm:$0xff] }
  0xa5   :  { %1899 = vmatpush1.bf16.msra.mxu0 %v2778_v48  ;;  %v172_v48 = vld [vmem:[%s4396_s1 + $0x1d8] sm:$0xff] }
  0xa6   :  { %1940 = vmatpush1.bf16.msra.mxu1 %v2906_v51  ;;  %1900 = vmatprep.subr.bf16.mxu0 %v2899_v55  ;;  %v304_v51 = vld [vmem:[%s4396_s1 + $0x5f8] sm:$0xff]  ;;  %v2842_v55 = vcombine.low %v179_v38, %v183_v39  ;;  %v2837_v57 = vcombine.high %v172_v48, %v176_v49 }
  0xa7   :  { %1941 = vmatprep.subr.bf16.mxu1 %v3027_v62  ;;  %v2965_v62 = vcombine.high %v300_v50, %v304_v51 }
  0xa9   :  { %1901 = vmatpush2.bf16.msra.mxu0 %v2898_v63  ;;  %v164_v63 = vld [vmem:[%s4396_s1 + $0x198] sm:$0xff] }
  0xaa   :  { %1942 = vmatpush2.bf16.msra.mxu1 %v3026_v4  ;;  %1902 = vmatprep.subr.bf16.mxu0 %v2891_v5  ;;  %v296_v4 = vld [vmem:[%s4396_s1 + $0x5b8] sm:$0xff]  ;;  %v2836_v5 = vcombine.low %v172_v48, %v176_v49  ;;  %v2829_v9 = vcombine.high %v164_v63, %v168_v0  ;;  %v2828_v7 = vcombine.low %v164_v63, %v168_v0 }
  0xab   :  { %1943 = vmatprep.subr.bf16.mxu1 %v3019_v8  ;;  %v2964_v8 = vcombine.low %v300_v50, %v304_v51  ;;  %v2957_v52 = vcombine.high %v292_v2, %v296_v4  ;;  %v2956_v13 = vcombine.low %v292_v2, %v296_v4  ;;  %v2781_v48 = vcombine.high %v116_v41, %v120_v42  ;;  %v236_v50 = vld [vmem:[%s4396_s1 + $0x3d8] sm:$0xff] }
  0xac   :  { %v240_v51 = vld [vmem:[%s4396_s1 + $0x3f8] sm:$0xff] }
  0xad   :  { %1903 = vmatpush2.bf16.msra.mxu0 %v2890_v53  ;;  %v156_v53 = vld [vmem:[%s4396_s1 + $0x158] sm:$0xff]  ;;  %v2901_v63 = vcombine.high %v236_v50, %v240_v51 }
  0xae   :  { %1944 = vmatpush2.bf16.msra.mxu1 %v3018_v3  ;;  %1904 = vmatprep.subr.bf16.mxu0 %v2883_v6  ;;  %v160_v3 = vld [vmem:[%s4396_s1 + $0x178] sm:$0xff] }
  0xaf   :  { %1945 = vmatprep.subr.bf16.mxu1 %v3011_v14  ;;  %v284_v6 = vld [vmem:[%s4396_s1 + $0x558] sm:$0xff]  ;;  %v2821_v14 = vcombine.high %v156_v53, %v160_v3 }
  0xb0   :  { %v2949_v15 = vcombine.high %v284_v6, %v288_v12  ;;  %v2948_v18 = vcombine.low %v284_v6, %v288_v12  ;;  %v228_v2 = vld [vmem:[%s4396_s1 + $0x398] sm:$0xff] }
  0xb1   :  { %1905 = vmatpush2.bf16.msra.mxu0 %v2882_v16  ;;  %v148_v16 = vld [vmem:[%s4396_s1 + $0x118] sm:$0xff] }
  0xb2   :  { %1946 = vmatpush2.bf16.msra.mxu1 %v3010_v58  ;;  %1906 = vmatprep.subr.bf16.mxu0 %v2875_v10  ;;  %v280_v58 = vld [vmem:[%s4396_s1 + $0x538] sm:$0xff]  ;;  %v2820_v10 = vcombine.low %v156_v53, %v160_v3  ;;  %v2813_v19 = vcombine.high %v148_v16, %v152_v17  ;;  %v2812_v23 = vcombine.low %v148_v16, %v152_v17 }
  0xb3   :  { %1947 = vmatprep.subr.bf16.mxu1 %v3003_v20  ;;  %v2941_v20 = vcombine.high %v276_v54, %v280_v58  ;;  %v232_v4 = vld [vmem:[%s4396_s1 + $0x3b8] sm:$0xff] }
  0xb4   :  { %v2893_v53 = vcombine.high %v228_v2, %v232_v4  ;;  %v220_v6 = vld [vmem:[%s4396_s1 + $0x358] sm:$0xff] }
  0xb5   :  { %1907 = vmatpush2.bf16.msra.mxu0 %v2874_v21  ;;  %v144_v21 = vld [vmem:[%s4396_s1 + $0xf8] sm:$0xff] }
  0xb6   :  { %1948 = vmatpush2.bf16.msra.mxu1 %v3002_v59  ;;  %1908 = vmatprep.subr.bf16.mxu0 %v2867_v60  ;;  %v2940_v59 = vcombine.low %v276_v54, %v280_v58  ;;  %v224_v12 = vld [vmem:[%s4396_s1 + $0x378] sm:$0xff] }
  0xb7   :  { %1949 = vmatprep.subr.bf16.mxu1 %v2995_v25  ;;  %v136_v25 = vld [vmem:[%s4396_s1 + $0xb8] sm:$0xff]  ;;  %v2885_v16 = vcombine.high %v220_v6, %v224_v12 }
  0xb8   :  { %v212_v54 = vld [vmem:[%s4396_s1 + $0x318] sm:$0xff] }
  0xb9   :  { %1909 = vmatpush2.bf16.msra.mxu0 %v2866_v26  ;;  %v260_v26 = vld [vmem:[%s4396_s1 + $0x498] sm:$0xff] }
  0xba   :  { %1950 = vmatpush2.bf16.msra.mxu1 %v2994_v29  ;;  %1910 = vmatprep.subr.bf16.mxu0 %v2859_v30  ;;  %v2797_v30 = vcombine.high %v132_v24, %v136_v25  ;;  %v2925_v31 = vcombine.high %v260_v26, %v264_v27  ;;  %v216_v58 = vld [vmem:[%s4396_s1 + $0x338] sm:$0xff] }
  0xbb   :  { %1951 = vmatprep.subr.bf16.mxu1 %v2987_v33  ;;  %v128_v33 = vld [vmem:[%s4396_s1 + $0x78] sm:$0xff] }
  0xbc   :  { %v2789_v38 = vcombine.high %v124_v32, %v128_v33 }
  0xbd   :  { %1911 = vmatpush2.bf16.msra.mxu0 %v2858_v34  ;;  %v252_v34 = vld [vmem:[%s4396_s1 + $0x458] sm:$0xff] }
  0xbe   :  { %1952 = vmatpush2.bf16.msra.mxu1 %v2986_v35  ;;  %1912 = vmatprep.subr.bf16.mxu0 %v2851_v36  ;;  %v256_v35 = vld [vmem:[%s4396_s1 + $0x478] sm:$0xff]  ;;  %v2796_v36 = vcombine.low %v132_v24, %v136_v25 }
  0xbf   :  { %1953 = vmatprep.subr.bf16.mxu1 %v2979_v37  ;;  %v2924_v37 = vcombine.low %v260_v26, %v264_v27  ;;  %v2917_v39 = vcombine.high %v252_v34, %v256_v35  ;;  %v196_v26 = vld [vmem:[%s4396_s1 + $0x298] sm:$0xff] }
  0xc0   :  { %v200_v27 = vld [vmem:[%s4396_s1 + $0x2b8] sm:$0xff] }
  0xc1   :  { %1913 = vmatpush2.bf16.msra.mxu0 %v2850_v44  ;;  %v244_v44 = vld [vmem:[%s4396_s1 + $0x418] sm:$0xff] }
  0xc2   :  { %1954 = vmatpush2.bf16.msra.mxu1 %v2978_v45  ;;  %1914 = vmatprep.subr.bf16.mxu0 %v2843_v46  ;;  %v248_v45 = vld [vmem:[%s4396_s1 + $0x438] sm:$0xff]  ;;  %v2788_v46 = vcombine.low %v124_v32, %v128_v33  ;;  %v2861_v32 = vcombine.high %v196_v26, %v200_v27 }
  0xc3   :  { %1955 = vmatprep.subr.bf16.mxu1 %v2971_v47  ;;  %v2916_v47 = vcombine.low %v252_v34, %v256_v35  ;;  %v2909_v49 = vcombine.high %v244_v44, %v248_v45  ;;  %v188_v34 = vld [vmem:[%s4396_s1 + $0x258] sm:$0xff] }
  0xc4   :  { %v192_v35 = vld [vmem:[%s4396_s1 + $0x278] sm:$0xff] }
  0xc5   :  { %1915 = vmatpush2.bf16.msra.mxu0 %v2842_v55  ;;  %v364_v55 = vld [vmem:[%s4396_s1 + $0x7d8] sm:$0xff] }
  0xc6   :  { %1956 = vmatpush2.bf16.msra.mxu1 %v2970_v56  ;;  %1966 = vmatprep.subr.bf16.mxu0 %v2837_v57  ;;  %v368_v56 = vld [vmem:[%s4396_s1 + $0x7f8] sm:$0xff]  ;;  %v2780_v57 = vcombine.low %v116_v41, %v120_v42  ;;  %v2853_v41 = vcombine.high %v188_v34, %v192_v35 }
  0xc7   :  { %2007 = vmatprep.subr.bf16.mxu1 %v2965_v62  ;;  %v2908_v62 = vcombine.low %v244_v44, %v248_v45  ;;  %v3029_v0 = vcombine.high %v364_v55, %v368_v56  ;;  %v180_v44 = vld [vmem:[%s4396_s1 + $0x218] sm:$0xff] }
  0xc8   :  { %1917 = vmatmul.mubr.bf16.vlgmr.msra.gmra.mxu0 %v3599_v40  ;;  %v184_v45 = vld [vmem:[%s4396_s1 + $0x238] sm:$0xff] }
  0xc9   :  { %1958 = vmatmul.mubr.bf16.vlgmr.msra.gmra.mxu1 %v3607_v43  ;;  %1967 = vmatpush1.bf16.msra.mxu0 %v2836_v5  ;;  %v356_v5 = vld [vmem:[%s4396_s1 + $0x798] sm:$0xff] }
  0xca   :  { %2008 = vmatpush1.bf16.msra.mxu1 %v2964_v8  ;;  %1968 = vmatprep.subr.bf16.mxu0 %v2829_v9  ;;  %v360_v8 = vld [vmem:[%s4396_s1 + $0x7b8] sm:$0xff]  ;;  %v2900_v9 = vcombine.low %v236_v50, %v240_v51  ;;  %v2845_v51 = vcombine.high %v180_v44, %v184_v45 }
  0xcb   :  { %2009 = vmatprep.subr.bf16.mxu1 %v2957_v52  ;;  %1998 = vmatprep.mubr.bf16.mxu0 %v3542_v61  ;;  %v140_v61 = vld [vmem:[%s4396_s1 + $0xd8] sm:$0xff]  ;;  %v3028_v52 = vcombine.low %v364_v55, %v368_v56  ;;  %v3021_v3 = vcombine.high %v356_v5, %v360_v8  ;;  %v2844_v56 = vcombine.low %v180_v44, %v184_v45  ;;  %v3214_v44 = vld [vmem:[%s4398_s3 + $0x80] sm:$0xff]  }
  0xcc   :  { %2039 = vmatprep.mubr.bf16.mxu1 %v3551_v1  ;;  %v268_v1 = vld [vmem:[%s4396_s1 + $0x4d8] sm:$0xff]  ;;  %v2805_v60 = vcombine.high %v140_v61, %v144_v21  ;;  %v2804_v28 = vcombine.low %v140_v61, %v144_v21  ;;  %v2877_v61 = vcombine.high %v212_v54, %v216_v58 }
  0xcd   :  { %1969 = vmatpush1.bf16.msra.mxu0 %v2828_v7  ;;  %v2933_v11 = vcombine.high %v268_v1, %v272_v22  ;;  %v2932_v29 = vcombine.low %v268_v1, %v272_v22  ;;  %v348_v7 = vld [vmem:[%s4396_s1 + $0x758] sm:$0xff] }
  0xce   :  { %2010 = vmatpush1.bf16.msra.mxu1 %v2956_v13  ;;  %1970 = vmatprep.subr.bf16.mxu0 %v2821_v14  ;;  %v352_v13 = vld [vmem:[%s4396_s1 + $0x778] sm:$0xff]  ;;  %v2892_v14 = vcombine.low %v228_v2, %v232_v4 }
  0xcf   :  { %2011 = vmatprep.subr.bf16.mxu1 %v2949_v15  ;;  %v3020_v15 = vcombine.low %v356_v5, %v360_v8  ;;  %v3013_v17 = vcombine.high %v348_v7, %v352_v13  ;;  %v204_v1 = vld [vmem:[%s4396_s1 + $0x2d8] sm:$0xff]  ;;  %v4188_v5 = vld [vmem:[%s4399_s2] sm:$0xff]  ;;  %v3185_v8 = vld [vmem:[%s4398_s3 + $0x70] sm:$0xff]  }
  0xd0   :  { %v208_v22 = vld [vmem:[%s4396_s1 + $0x2f8] sm:$0xff] }
  0xd1   :  { %1971 = vmatpush1.bf16.msra.mxu0 %v2820_v10  ;;  %v340_v10 = vld [vmem:[%s4396_s1 + $0x718] sm:$0xff]  ;;  %v2869_v24 = vcombine.high %v204_v1, %v208_v22 }
  0xd2   :  { %2012 = vmatpush1.bf16.msra.mxu1 %v2948_v18  ;;  %1972 = vmatprep.subr.bf16.mxu0 %v2813_v19  ;;  %v344_v18 = vld [vmem:[%s4396_s1 + $0x738] sm:$0xff]  ;;  %v2884_v19 = vcombine.low %v220_v6, %v224_v12  ;;  %v3186_v12 = vld [vmem:[%s4398_s3 + $0x30] sm:$0xff]  }
  0xd3   :  { %2013 = vmatprep.subr.bf16.mxu1 %v2941_v20  ;;  %v3012_v20 = vcombine.low %v348_v7, %v352_v13  ;;  %v3005_v21 = vcombine.high %v340_v10, %v344_v18  ;;  %v3199_v2 = vld [vmem:[%s4398_s3 + $0xf8] sm:$0xff]   ;;  %v3187_v13 = vld [vmem:[%s4398_s3 + $0x68] sm:$0xff]  }
  0xd4   :  { %v3184_v4 = vld [vmem:[%s4398_s3 + $0x38] sm:$0xff]  }
  0xd5   :  { %1973 = vmatpush1.bf16.msra.mxu0 %v2812_v23  ;;  %v332_v23 = vld [vmem:[%s4396_s1 + $0x6d8] sm:$0xff] }
  0xd6   :  { %2014 = vmatpush1.bf16.msra.mxu1 %v2940_v59  ;;  %1974 = vmatprep.subr.bf16.mxu0 %v2805_v60  ;;  %v336_v59 = vld [vmem:[%s4396_s1 + $0x6f8] sm:$0xff]  ;;  %v2876_v60 = vcombine.low %v212_v54, %v216_v58  ;;  %v3188_v58 = vld [vmem:[%s4398_s3 + $0x28] sm:$0xff]  }
  0xd7   :  { %2015 = vmatprep.subr.bf16.mxu1 %v2933_v11  ;;  %v3004_v11 = vcombine.low %v340_v10, %v344_v18  ;;  %v2997_v25 = vcombine.high %v332_v23, %v336_v59  ;;  %v3189_v18 = vld [vmem:[%s4398_s3 + $0x60] sm:$0xff]   ;;  %v3215_v45 = vld [vmem:[%s4398_s3 + $0x178] sm:$0xff]  }
  0xd9   :  { %1975 = vmatpush1.bf16.msra.mxu0 %v2804_v28  ;;  %v324_v28 = vld [vmem:[%s4396_s1 + $0x698] sm:$0xff] }
  0xda   :  { %2016 = vmatpush1.bf16.msra.mxu1 %v2932_v29  ;;  %1976 = vmatprep.subr.bf16.mxu0 %v2797_v30  ;;  %v328_v29 = vld [vmem:[%s4396_s1 + $0x6b8] sm:$0xff]  ;;  %v2868_v30 = vcombine.low %v204_v1, %v208_v22  ;;  %v3205_v1 = vld [vmem:[%s4398_s3 + $0xe0] sm:$0xff]  }
  0xdb   :  { %2017 = vmatprep.subr.bf16.mxu1 %v2925_v31  ;;  %v2996_v31 = vcombine.low %v332_v23, %v336_v59  ;;  %v2989_v33 = vcombine.high %v324_v28, %v328_v29  ;;  %v3190_v23 = vld [vmem:[%s4398_s3 + $0x20] sm:$0xff]  }
  0xdd   :  { %1977 = vmatpush1.bf16.msra.mxu0 %v2796_v36  ;;  %v316_v36 = vld [vmem:[%s4396_s1 + $0x658] sm:$0xff] }
  0xde   :  { %2018 = vmatpush1.bf16.msra.mxu1 %v2924_v37  ;;  %1978 = vmatprep.subr.bf16.mxu0 %v2789_v38  ;;  %v320_v37 = vld [vmem:[%s4396_s1 + $0x678] sm:$0xff]  ;;  %v2860_v38 = vcombine.low %v196_v26, %v200_v27  ;;  %v3193_v27 = vld [vmem:[%s4398_s3 + $0x50] sm:$0xff]  }
  0xdf   :  { %2019 = vmatprep.subr.bf16.mxu1 %v2917_v39  ;;  %v2988_v39 = vcombine.low %v324_v28, %v328_v29  ;;  %v2981_v42 = vcombine.high %v316_v36, %v320_v37  ;;  %v2980_v50 = vcombine.low %v316_v36, %v320_v37  ;;  %v3192_v26 = vld [vmem:[%s4398_s3 + $0x18] sm:$0xff]   ;;  %v3196_v36 = vld [vmem:[%s4398_s3 + $0x8] sm:$0xff]   ;;  %v3197_v37 = vld [vmem:[%s4398_s3 + $0x40] sm:$0xff]  }
  0xe0   :  { %v3208_v28 = vld [vmem:[%s4398_s3 + $0x98] sm:$0xff]  }
  0xe1   :  { %1979 = vmatpush1.bf16.msra.mxu0 %v2788_v46  ;;  %v308_v46 = vld [vmem:[%s4396_s1 + $0x618] sm:$0xff] }
  0xe2   :  { %2020 = vmatpush1.bf16.msra.mxu1 %v2916_v47  ;;  %1980 = vmatprep.subr.bf16.mxu0 %v2781_v48  ;;  %v312_v47 = vld [vmem:[%s4396_s1 + $0x638] sm:$0xff]  ;;  %v2852_v48 = vcombine.low %v188_v34, %v192_v35  ;;  %v3211_v35 = vld [vmem:[%s4398_s3 + $0xc8] sm:$0xff]  }
  0xe3   :  { %2021 = vmatprep.subr.bf16.mxu1 %v2909_v49  ;;  %v371_v49 = vlaneseq  ;;  %v2973_v55 = vcombine.high %v308_v46, %v312_v47 }
  0xe5   :  { %1981 = vmatpush1.bf16.msra.mxu0 %v2780_v57  ;;  %v4173_v57 = vshrl.u32 %v371_v49, 7 }
  0xe6   :  { %2022 = vmatpush1.bf16.msra.mxu1 %v2908_v62  ;;  %1982 = vmatprep.subr.bf16.mxu0 %v2901_v63  ;;  %v2972_v62 = vcombine.low %v308_v46, %v312_v47  ;;  %v3183_v63 = vld [vmem:[%s4398_s3 + $0x78] sm:$0xff]  }
  0xe7   :  { %2023 = vmatprep.subr.bf16.mxu1 %v3029_v0  ;;  %v377_v0 = vsub.s32 1, %v4173_v57  ;;  %v3231_v47 = vld [vmem:[%s4398_s3 + $0x1f8] sm:$0xff]  }
  0xe9   :  { %1983 = vmatpush2.bf16.msra.mxu0 %v2900_v9  ;;  %v3200_v9 = vld [vmem:[%s4398_s3 + $0xb8] sm:$0xff]  }
  0xea   :  { %2024 = vmatpush2.bf16.msra.mxu1 %v3028_v52  ;;  %1984 = vmatprep.subr.bf16.mxu0 %v2893_v53  ;;  %v378_v52 = vrot.slane %v4188_v5, %v377_v0  ;;  %v3201_v53 = vld [vmem:[%s4398_s3 + $0xf0] sm:$0xff]   ;;  %v3223_v0 = vld [vmem:[%s4398_s3 + $0x158] sm:$0xff]  }
  0xeb   :  { %2025 = vmatprep.subr.bf16.mxu1 %v3021_v3 }
  0xed   :  { %1985 = vmatpush2.bf16.msra.mxu0 %v2892_v14  ;;  %v3202_v14 = vld [vmem:[%s4398_s3 + $0xb0] sm:$0xff]  }
  0xee   :  { %2026 = vmatpush2.bf16.msra.mxu1 %v3020_v15  ;;  %1986 = vmatprep.subr.bf16.mxu0 %v2885_v16 }
  0xef   :  { %2027 = vmatprep.subr.bf16.mxu1 %v3013_v17 }
  0xf1   :  { %1987 = vmatpush2.bf16.msra.mxu0 %v2884_v19  ;;  %v3204_v19 = vld [vmem:[%s4398_s3 + $0xa8] sm:$0xff]  }
  0xf2   :  { %2028 = vmatpush2.bf16.msra.mxu1 %v3012_v20  ;;  %1988 = vmatprep.subr.bf16.mxu0 %v2877_v61  ;;  %v373_v20 = vsub.s32 0, %v4173_v57 }
  0xf3   :  { %2029 = vmatprep.subr.bf16.mxu1 %v3005_v21 }
  0xf5   :  { %1989 = vmatpush2.bf16.msra.mxu0 %v2876_v60  ;;  %v3191_v60 = vld [vmem:[%s4398_s3 + $0x58] sm:$0xff]  }
  0xf6   :  { %2030 = vmatpush2.bf16.msra.mxu1 %v3004_v11  ;;  %1990 = vmatprep.subr.bf16.mxu0 %v2869_v24  ;;  %v3206_v11 = vld [vmem:[%s4398_s3 + $0xa0] sm:$0xff]   ;;  %v374_v24 = vrot.slane %v4188_v5, %v373_v20 }
  0xf7   :  { %2031 = vmatprep.subr.bf16.mxu1 %v2997_v25  ;;  %v3207_v25 = vld [vmem:[%s4398_s3 + $0xd8] sm:$0xff]  }
  0xf9   :  { %1991 = vmatpush2.bf16.msra.mxu0 %v2868_v30  ;;  %v3209_v30 = vld [vmem:[%s4398_s3 + $0xd0] sm:$0xff]  }
  0xfa   :  { %2032 = vmatpush2.bf16.msra.mxu1 %v2996_v31  ;;  %1992 = vmatprep.subr.bf16.mxu0 %v2861_v32  ;;  %v3194_v31 = vld [vmem:[%s4398_s3 + $0x10] sm:$0xff]   ;;  %v3195_v32 = vld [vmem:[%s4398_s3 + $0x48] sm:$0xff]  }
  0xfb   :  { %2033 = vmatprep.subr.bf16.mxu1 %v2989_v33  ;;  %v3210_v33 = vld [vmem:[%s4398_s3 + $0x90] sm:$0xff]  }
  0xfd   :  { %1993 = vmatpush2.bf16.msra.mxu0 %v2860_v38  ;;  %v3212_v38 = vld [vmem:[%s4398_s3 + $0x88] sm:$0xff]  }
  0xfe   :  { %2034 = vmatpush2.bf16.msra.mxu1 %v2988_v39  ;;  %1994 = vmatprep.subr.bf16.mxu0 %v2853_v41  ;;  %v3213_v41 = vld [vmem:[%s4398_s3 + $0xc0] sm:$0xff]  }
  0xff   :  { %2035 = vmatprep.subr.bf16.mxu1 %v2981_v42  ;;  %v3198_v42 = vld [vmem:[%s4398_s3] sm:$0xff]  }
 0x101   :  { %1995 = vmatpush2.bf16.msra.mxu0 %v2852_v48  ;;  %v3216_v48 = vld [vmem:[%s4398_s3 + $0x138] sm:$0xff]  }
 0x102   :  { %2036 = vmatpush2.bf16.msra.mxu1 %v2980_v50  ;;  %1996 = vmatprep.subr.bf16.mxu0 %v2845_v51  ;;  %v3217_v50 = vld [vmem:[%s4398_s3 + $0x170] sm:$0xff]  }
 0x103   :  { %2037 = vmatprep.subr.bf16.mxu1 %v2973_v55  ;;  %v3218_v51 = vld [vmem:[%s4398_s3 + $0x130] sm:$0xff]   ;;  %v3219_v55 = vld [vmem:[%s4398_s3 + $0x168] sm:$0xff]  }
 0x105   :  { %1997 = vmatpush2.bf16.msra.mxu0 %v2844_v56  ;;  %v3220_v56 = vld [vmem:[%s4398_s3 + $0x128] sm:$0xff]  }
 0x106   :  { %2038 = vmatpush2.bf16.msra.mxu1 %v2972_v62  ;;  %3095 = vmatprep.subr.bf16.mxu0 %v3183_v63  ;;  %v3221_v62 = vld [vmem:[%s4398_s3 + $0x160] sm:$0xff]  }
 0x107   :  { %3117 = vmatprep.subr.bf16.mxu1 %v3199_v2  ;;  %v3222_v63 = vld [vmem:[%s4398_s3 + $0x120] sm:$0xff]   ;;  %v3224_v2 = vld [vmem:[%s4398_s3 + $0x118] sm:$0xff]  }
 0x108   :  { %v1754_v3 = vpop.f32.mrf.mxu0  ;;  %1999 = vmatmul.mubr.bf16.vlgmr.msra.gmra.mxu0 %v3599_v40 }
 0x109   :  { %v1795_v6 = vpop.f32.mrf.mxu1  ;;  %2040 = vmatmul.mubr.bf16.vlgmr.msra.gmra.mxu1 %v3607_v43  ;;  %3096 = vmatpush3.bf16.msra.mxu0 %v3184_v4  ;;  %v3203_v43 = vld [vmem:[%s4398_s3 + $0xe8] sm:$0xff]   ;;  %v1755_v29 = vadd.f32 %v1754_v3, %v374_v24  ;;  %v3225_v4 = vld [vmem:[%s4398_s3 + $0x150] sm:$0xff]   ;;  %v381_v3 = vsub.s32 2, %v4173_v57 }
 0x10a   :  { %v1756_v7 = vpop.f32.mrf.mxu0  ;;  %3097 = vmatprep.subr.bf16.mxu0 %v3185_v8  ;;  %3118 = vmatpush3.bf16.msra.mxu1 %v3200_v9  ;;  %v3226_v8 = vld [vmem:[%s4398_s3 + $0x110] sm:$0xff]   ;;  %v3227_v9 = vld [vmem:[%s4398_s3 + $0x148] sm:$0xff]  }
 0x10b   :  { %v1757_v40 = vadd.f32 %v1756_v7, %v378_v52  ;;  %v1797_v15 = vpop.f32.mrf.mxu1  ;;  %3119 = vmatprep.subr.bf16.mxu1 %v3201_v53  ;;  %v1796_v34 = vadd.f32 %v1795_v6, %v1755_v29  ;;  %v3228_v52 = vld [vmem:[%s4398_s3 + $0x108] sm:$0xff]   ;;  %v3229_v53 = vld [vmem:[%s4398_s3 + $0x140] sm:$0xff]   ;;  %v382_v7 = vrot.slane %v4188_v5, %v381_v3  ;;  %v3234_v24 = vld [vmem:[%s4398_s3 + $0x1b0] sm:$0xff]  }
 0x10c   :  { %v1758_v16 = vpop.f32.mrf.mxu0  ;;  %v3230_v6 = vld [vmem:[%s4398_s3 + $0x100] sm:$0xff]   ;;  %v3239_v29 = vld [vmem:[%s4398_s3 + $0x1d8] sm:$0xff]  }
 0x10d   :  { %v1798_v17 = vadd.f32 %v1797_v15, %v1757_v40  ;;  %v1799_v54 = vpop.f32.mrf.mxu1  ;;  %3098 = vmatpush3.bf16.msra.mxu0 %v3186_v12  ;;  %v2056_v39 = vmul.f32 0.2, %v1796_v34  ;;  %vm2048_vm3 = vcmp.gt.f32.partialorder %v1796_v34, 0.0  ;;  %v385_v12 = vsub.s32 3, %v4173_v57 }
 0x10e   :  { %v1759_v10 = vpop.f32.mrf.mxu0  ;;  %3099 = vmatprep.subr.bf16.mxu0 %v3187_v13  ;;  %3120 = vmatpush3.bf16.msra.mxu1 %v3202_v14 }
 0x10f   :  { %vm2049_vm2 = vcmp.gt.f32.partialorder %v1798_v17, 0.0  ;;  %v2057_v61 = vmul.f32 0.2, %v1798_v17  ;;  %v1800_v21 = vpop.f32.mrf.mxu1  ;;  %3121 = vmatprep.subr.bf16.mxu1 %v3203_v43  ;;  %v2064_v46 = vsel %vm2048_vm3, %v1796_v34, %v2056_v39  ;;  %v386_v13 = vrot.slane %v4188_v5, %v385_v12  ;;  %v3244_v34 = vld [vmem:[%s4398_s3 + $0x188] sm:$0xff]  }
 0x110   :  { %v2072_v49 = vpack.c.bf16 %v2064_v46, %v2064_v46 }
 0x111   :  { %3100 = vmatpush3.bf16.msra.mxu0 %v3188_v58  ;;  %v2065_v22 = vsel %vm2049_vm2, %v1798_v17, %v2057_v61 }
 0x112   :  { %3101 = vmatprep.subr.bf16.mxu0 %v3189_v18  ;;  %v2073_v59 = vpack.c.bf16 %v2065_v22, %v2065_v22  ;;  %3122 = vmatpush3.bf16.msra.mxu1 %v3204_v19 }
 0x113   :  { %3123 = vmatprep.subr.bf16.mxu1 %v3205_v1 }
 0x114   :  { %2631 = vmatprep.mubr.bf16.mxu0 %v2073_v59  ;;  %v3232_v59 = vld [vmem:[%s4398_s3 + $0x1b8] sm:$0xff]  }
 0x115   :  { %3102 = vmatpush3.bf16.msra.mxu0 %v3190_v23 }
 0x116   :  { %3103 = vmatprep.subr.bf16.mxu0 %v3191_v60  ;;  %3124 = vmatpush3.bf16.msra.mxu1 %v3206_v11  ;;  %v3233_v11 = vld [vmem:[%s4398_s3 + $0x1f0] sm:$0xff]  }
 0x117   :  { %3125 = vmatprep.subr.bf16.mxu1 %v3207_v25  ;;  %v3235_v25 = vld [vmem:[%s4398_s3 + $0x1e8] sm:$0xff]  }
 0x119   :  { %3104 = vmatpush3.bf16.msra.mxu0 %v3192_v26  ;;  %v3236_v26 = vld [vmem:[%s4398_s3 + $0x1a8] sm:$0xff]  }
 0x11a   :  { %3105 = vmatprep.subr.bf16.mxu0 %v3193_v27  ;;  %3126 = vmatpush3.bf16.msra.mxu1 %v3208_v28  ;;  %v3237_v27 = vld [vmem:[%s4398_s3 + $0x1e0] sm:$0xff]  }
 0x11b   :  { %3127 = vmatprep.subr.bf16.mxu1 %v3209_v30  ;;  %v3238_v28 = vld [vmem:[%s4398_s3 + $0x1a0] sm:$0xff]   ;;  %v3240_v30 = vld [vmem:[%s4398_s3 + $0x198] sm:$0xff]  }
 0x11d   :  { %3106 = vmatpush3.bf16.msra.mxu0 %v3194_v31  ;;  %v3241_v31 = vld [vmem:[%s4398_s3 + $0x1d0] sm:$0xff]  }
 0x11e   :  { %3107 = vmatprep.subr.bf16.mxu0 %v3195_v32  ;;  %3128 = vmatpush3.bf16.msra.mxu1 %v3210_v33  ;;  %v3242_v32 = vld [vmem:[%s4398_s3 + $0x190] sm:$0xff]   ;;  %v3243_v33 = vld [vmem:[%s4398_s3 + $0x1c8] sm:$0xff]  }
 0x11f   :  { %3129 = vmatprep.subr.bf16.mxu1 %v3211_v35  ;;  %v3245_v35 = vld [vmem:[%s4398_s3 + $0x1c0] sm:$0xff]  }
 0x121   :  { %3108 = vmatpush3.bf16.msra.mxu0 %v3196_v36  ;;  %v3246_v36 = vld [vmem:[%s4398_s3 + $0x180] sm:$0xff]  }
 0x122   :  { %3109 = vmatprep.subr.bf16.mxu0 %v3197_v37  ;;  %3130 = vmatpush3.bf16.msra.mxu1 %v3212_v38  ;;  %v389_v37 = vsub.s32 4, %v4173_v57  ;;  %v393_v38 = vsub.s32 5, %v4173_v57 }
 0x123   :  { %3131 = vmatprep.subr.bf16.mxu1 %v3213_v41 }
 0x124   :  { %v390_v39 = vrot.slane %v4188_v5, %v389_v37  ;;  %v394_v41 = vrot.slane %v4188_v5, %v393_v38 }
 0x125   :  { %3110 = vmatpush3.bf16.msra.mxu0 %v3198_v42 }
 0x126   :  { %3132 = vmatpush3.bf16.msra.mxu1 %v3214_v44  ;;  %3139 = vmatprep.subr.bf16.mxu0 %v3215_v45 }
 0x127   :  { %3161 = vmatprep.subr.bf16.mxu1 %v3231_v47 }
 0x128   :  { %2632 = vmatmul.mubr.bf16.vlgmr.msra.gmra.mxu0 %v2072_v49 }
 0x129   :  { %3140 = vmatpush3.bf16.msra.mxu0 %v3216_v48 }
 0x12a   :  { %3141 = vmatprep.subr.bf16.mxu0 %v3217_v50 }
 0x12d   :  { %3142 = vmatpush3.bf16.msra.mxu0 %v3218_v51 }
 0x12e   :  { %3143 = vmatprep.subr.bf16.mxu0 %v3219_v55 }
 0x131   :  { %3144 = vmatpush3.bf16.msra.mxu0 %v3220_v56 }
 0x132   :  { %3145 = vmatprep.subr.bf16.mxu0 %v3221_v62 }
 0x135   :  { %3146 = vmatpush3.bf16.msra.mxu0 %v3222_v63 }
 0x136   :  { %3147 = vmatprep.subr.bf16.mxu0 %v3223_v0 }
 0x139   :  { %3148 = vmatpush3.bf16.msra.mxu0 %v3224_v2 }
 0x13a   :  { %3149 = vmatprep.subr.bf16.mxu0 %v3225_v4 }
 0x13d   :  { %3150 = vmatpush3.bf16.msra.mxu0 %v3226_v8 }
 0x13e   :  { %3151 = vmatprep.subr.bf16.mxu0 %v3227_v9 }
 0x141   :  { %3152 = vmatpush3.bf16.msra.mxu0 %v3228_v52  ;;  %v397_v52 = vsub.s32 6, %v4173_v57 }
 0x142   :  { %3153 = vmatprep.subr.bf16.mxu0 %v3229_v53  ;;  %v401_v53 = vsub.s32 7, %v4173_v57 }
 0x143   :  { %v398_v3 = vrot.slane %v4188_v5, %v397_v52 }
 0x145   :  { %3154 = vmatpush3.bf16.msra.mxu0 %v3230_v6  ;;  %v402_v6 = vrot.slane %v4188_v5, %v401_v53 }
 0x148   :  { %v1836_v14 = vpop.f32.mrf.mxu0 }
 0x149   :  { %v1837_v40 = vadd.f32 %v1836_v14, %v382_v7  ;;  %v1877_v15 = vpop.f32.mrf.mxu1 }
 0x14a   :  { %v1838_v43 = vpop.f32.mrf.mxu0 }
 0x14b   :  { %v1878_v16 = vadd.f32 %v1877_v15, %v1837_v40  ;;  %v1839_v17 = vadd.f32 %v1838_v43, %v386_v13  ;;  %v1879_v54 = vpop.f32.mrf.mxu1 }
 0x14c   :  { %v1840_v58 = vpop.f32.mrf.mxu0 }
 0x14d   :  { %vm2050_vm4 = vcmp.gt.f32.partialorder %v1878_v16, 0.0  ;;  %v2058_v10 = vmul.f32 0.2, %v1878_v16  ;;  %v1880_v18 = vadd.f32 %v1879_v54, %v1839_v17  ;;  %v1881_v19 = vpop.f32.mrf.mxu1 }
 0x14e   :  { %v1841_v20 = vpop.f32.mrf.mxu0 }
 0x14f   :  { %vm2051_vm5 = vcmp.gt.f32.partialorder %v1880_v18, 0.0  ;;  %v2059_v61 = vmul.f32 0.2, %v1880_v18  ;;  %v1882_v21 = vpop.f32.mrf.mxu1  ;;  %v2066_v1 = vsel %vm2050_vm4, %v1878_v16, %v2058_v10 }
 0x150   :  { %v2074_v60 = vpack.c.bf16 %v2066_v1, %v2066_v1 }
 0x151   :  { %v2067_v22 = vsel %vm2051_vm5, %v1880_v18, %v2059_v61 }
 0x152   :  { %v2075_v23 = vpack.c.bf16 %v2067_v22, %v2067_v22 }
 0x154   :  { %2671 = vmatprep.mubr.bf16.mxu1 %v2075_v23 }
 0x155   :  { %2672 = vmatmul.mubr.bf16.vlgmr.msra.gmra.mxu1 %v2074_v60  ;;  %v3030_v60 = vld [vmem:[%s4400_s4] ss:$0 sm:$0xff] }
 0x156   :  { %3162 = vmatpush3.bf16.msra.mxu1 %v3232_v59 }
 0x157   :  { %3163 = vmatprep.subr.bf16.mxu1 %v3233_v11 }
 0x15a   :  { %3164 = vmatpush3.bf16.msra.mxu1 %v3234_v24 }
 0x15b   :  { %3165 = vmatprep.subr.bf16.mxu1 %v3235_v25 }
 0x15e   :  { %3166 = vmatpush3.bf16.msra.mxu1 %v3236_v26 }
 0x15f   :  { %3167 = vmatprep.subr.bf16.mxu1 %v3237_v27 }
 0x162   :  { %3168 = vmatpush3.bf16.msra.mxu1 %v3238_v28 }
 0x163   :  { %3169 = vmatprep.subr.bf16.mxu1 %v3239_v29 }
 0x166   :  { %3170 = vmatpush3.bf16.msra.mxu1 %v3240_v30 }
 0x167   :  { %3171 = vmatprep.subr.bf16.mxu1 %v3241_v31 }
 0x16a   :  { %3172 = vmatpush3.bf16.msra.mxu1 %v3242_v32 }
 0x16b   :  { %3173 = vmatprep.subr.bf16.mxu1 %v3243_v33 }
 0x16e   :  { %3174 = vmatpush3.bf16.msra.mxu1 %v3244_v34 }
 0x16f   :  { %3175 = vmatprep.subr.bf16.mxu1 %v3245_v35 }
 0x172   :  { %3176 = vmatpush3.bf16.msra.mxu1 %v3246_v36 }
 0x188   :  { %v1918_v42 = vpop.f32.mrf.mxu0 }
 0x189   :  { %v1919_v44 = vadd.f32 %v1918_v42, %v390_v39  ;;  %v1959_v45 = vpop.f32.mrf.mxu1 }
 0x18a   :  { %v1920_v46 = vpop.f32.mrf.mxu0 }
 0x18b   :  { %v1960_v47 = vadd.f32 %v1959_v45, %v1919_v44  ;;  %v1921_v48 = vadd.f32 %v1920_v46, %v394_v41  ;;  %v1961_v49 = vpop.f32.mrf.mxu1 }
 0x18c   :  { %v1922_v50 = vpop.f32.mrf.mxu0 }
 0x18d   :  { %vm2052_vm6 = vcmp.gt.f32.partialorder %v1960_v47, 0.0  ;;  %v2060_v51 = vmul.f32 0.2, %v1960_v47  ;;  %v1962_v55 = vadd.f32 %v1961_v49, %v1921_v48  ;;  %v1963_v56 = vpop.f32.mrf.mxu1 }
 0x18e   :  { %v1923_v62 = vpop.f32.mrf.mxu0 }
 0x18f   :  { %vm2053_vm7 = vcmp.gt.f32.partialorder %v1962_v55, 0.0  ;;  %v2061_v63 = vmul.f32 0.2, %v1962_v55  ;;  %v1964_v0 = vpop.f32.mrf.mxu1  ;;  %v2068_v2 = vsel %vm2052_vm6, %v1960_v47, %v2060_v51 }
 0x190   :  { %v2076_v9 = vpack.c.bf16 %v2068_v2, %v2068_v2 }
 0x191   :  { %v2069_v4 = vsel %vm2053_vm7, %v1962_v55, %v2061_v63 }
 0x192   :  { %v2077_v8 = vpack.c.bf16 %v2069_v4, %v2069_v4 }
 0x194   :  { %2711 = vmatprep.mubr.bf16.mxu0 %v2077_v8 }
 0x195   :  { %2712 = vmatmul.mubr.bf16.vlgmr.msra.gmra.mxu0 %v2076_v9 }
 0x1c8   :  { %v2000_v12 = vpop.f32.mrf.mxu0 }
 0x1c9   :  { %v2001_v7 = vadd.f32 %v2000_v12, %v398_v3  ;;  %v2041_v13 = vpop.f32.mrf.mxu1 }
 0x1ca   :  { %v2002_v14 = vpop.f32.mrf.mxu0 }
 0x1cb   :  { %v2042_v40 = vadd.f32 %v2041_v13, %v2001_v7  ;;  %v2003_v15 = vadd.f32 %v2002_v14, %v402_v6  ;;  %v2043_v43 = vpop.f32.mrf.mxu1 }
 0x1cc   :  { %v2004_v16 = vpop.f32.mrf.mxu0 }
 0x1cd   :  { %vm2054_vm8 = vcmp.gt.f32.partialorder %v2042_v40, 0.0  ;;  %v2062_v17 = vmul.f32 0.2, %v2042_v40  ;;  %v2044_v54 = vadd.f32 %v2043_v43, %v2003_v15  ;;  %v2045_v58 = vpop.f32.mrf.mxu1 }
 0x1ce   :  { %v2005_v10 = vpop.f32.mrf.mxu0 }
 0x1cf   :  { %vm2055_vm9 = vcmp.gt.f32.partialorder %v2044_v54, 0.0  ;;  %v2063_v18 = vmul.f32 0.2, %v2044_v54  ;;  %v2046_v57 = vpop.f32.mrf.mxu1  ;;  %v2070_v19 = vsel %vm2054_vm8, %v2042_v40, %v2062_v17 }
 0x1d0   :  { %v2078_v5 = vpack.c.bf16 %v2070_v19, %v2070_v19 }
 0x1d1   :  { %v2071_v20 = vsel %vm2055_vm9, %v2044_v54, %v2063_v18 }
 0x1d2   :  { %v2079_v61 = vpack.c.bf16 %v2071_v20, %v2071_v20 }
 0x1d4   :  { %2751 = vmatprep.mubr.bf16.mxu1 %v2079_v61 }
 0x1d5   :  { %2752 = vmatmul.mubr.bf16.vlgmr.msra.gmra.mxu1 %v2078_v5 }
 0x1e8   :  { %v3111_v21 = vpop.f32.mrf.mxu0 }
 0x1ea   :  { %v3112_v1 = vpop.f32.mrf.mxu0 }
 0x1eb   :  { %v3113_v22 = vadd.f32 %v3112_v1, %v3111_v21 }
 0x1ec   :  { %v3114_v23 = vpop.f32.mrf.mxu0 }
 0x1ed   :  { %v2634_v25 = vadd.f32 %v3113_v22, %v3030_v60 }
 0x1ee   :  { %v3115_v59 = vpop.f32.mrf.mxu0 }
 0x215   :  { %v3133_v11 = vpop.f32.mrf.mxu1 }
 0x217   :  { %v3134_v24 = vpop.f32.mrf.mxu1 }
 0x218   :  { %v3135_v26 = vadd.f32 %v3134_v24, %v3133_v11 }
 0x219   :  { %v3136_v27 = vpop.f32.mrf.mxu1 }
 0x21a   :  { %v2674_v28 = vadd.f32 %v3135_v26, %v2634_v25 }
 0x21b   :  { %v3137_v29 = vpop.f32.mrf.mxu1 }
 0x255   :  { %v3155_v30 = vpop.f32.mrf.mxu0 }
 0x257   :  { %v3156_v31 = vpop.f32.mrf.mxu0 }
 0x258   :  { %v3157_v32 = vadd.f32 %v3156_v31, %v3155_v30 }
 0x259   :  { %v3158_v33 = vpop.f32.mrf.mxu0 }
 0x25a   :  { %v2714_v34 = vadd.f32 %v3157_v32, %v2674_v28 }
 0x25b   :  { %v3159_v35 = vpop.f32.mrf.mxu0 }
 0x295   :  { %v3177_v36 = vpop.f32.mrf.mxu1 }
 0x297   :  { %v3178_v37 = vpop.f32.mrf.mxu1 }
 0x298   :  { %v3179_v38 = vadd.f32 %v3178_v37, %v3177_v36 }
 0x299   :  { %v3180_v39 = vpop.f32.mrf.mxu1 }
 0x29a   :  { %v2754_v41 = vadd.f32 %v3179_v38, %v2714_v34 }
 0x29b   :  { %v3181_v42 = vpop.f32.mrf.mxu1 }
 0x29c   :  { %v2759_v44 = vand.u32 2147483647, %v2754_v41  ;;  %vm2763_vm10 = vcmp.ge.f32.partialorder %v2754_v41, 0.0 }
 0x29e   :  { %v2760_v45 = vsub.f32 0.0, %v2759_v44 }
 0x2a0   :  { %v2761_v46 = vmul.f32 1.442695, %v2760_v45 }
 0x2a2   :  { %3247 = vpow2.f32 %v2761_v46 }
 0x2af   :  { %v3248_v47 = vpop.eup %3247 }
 0x2b0   :  { %v2764_v48 = vadd.f32 1.0, %v3248_v47 }
 0x2b2   :  { %3249 = vrcp.f32 %v2764_v48 }
 0x2bf   :  { %v3250_v49 = vpop.eup %3249 }
 0x2c0   :  { %v2767_v50 = vmul.f32 %v3250_v49, %v3248_v47 }
 0x2c2   :  { %v2768_v51 = vsel %vm2763_vm10, %v3250_v49, %v2767_v50 }
 0x2c3   :  { %2769 = vst [vmem:[%s4401_s5] sm:$0x3] %v2768_v51 }

// kernel: discriminator_forward.8
= control target key start
LH: loop header
LB: loop body
LE: loop exit
PB: predicated region body
PF: predicated region fallthrough
CT: control target
= control target key end

     0   :  { %s7757_s1 = inlined_call_operand.vmem [shape: bf16[2304,512], index: 1, kind: input, shape index: {}]   ;;  %s7758_s0 = inlined_call_operand.vmem [shape: bf16[8,2304], index: 0, kind: input, shape index: {}]   ;;  %s7759_s2 = inlined_call_operand.vmem [shape: f32[1,512], index: 2, kind: input, shape index: {}]   ;;  %s7760_s3 = inlined_call_operand.vmem [shape: bf16[8,512], index: 3, kind: output, shape index: {}]  }
   0x1   :  { %v4934_v0 = vld [vmem:[%s7757_s1 + $0xe4] ss:$16 sps:$4 sm:$0xff]   ;;  %v4938_v2 = vld [vmem:[%s7757_s1 + $0xe0] ss:$16 sps:$4 sm:$0xff]   ;;  %v15_v48 = vld [vmem:[%s7758_s0 + $0x8] sm:$0xff] }
   0x2   :  { %v4936_v1 = vld [vmem:[%s7757_s1 + $0x2e4] ss:$16 sps:$4 sm:$0xff]   ;;  %3564 = vmatprep.subr.bf16.mxu0 %v4934_v0  ;;  %v4939_v3 = vld [vmem:[%s7757_s1 + $0x2e0] ss:$16 sps:$4 sm:$0xff]   ;;  %v5989_v51 = vcombine.high %v15_v48, %v15_v48 }
   0x3   :  { %3605 = vmatprep.subr.bf16.mxu1 %v4936_v1  ;;  %v4940_v4 = vld [vmem:[%s7757_s1 + $0xc4] ss:$16 sps:$4 sm:$0xff]   ;;  %3565 = vmatpush1.bf16.msra.mxu0 %v4938_v2  ;;  %v4944_v6 = vld [vmem:[%s7757_s1 + $0xc0] ss:$16 sps:$4 sm:$0xff]  }
   0x4   :  { %3606 = vmatpush1.bf16.msra.mxu1 %v4939_v3  ;;  %v4942_v5 = vld [vmem:[%s7757_s1 + $0x2c4] ss:$16 sps:$4 sm:$0xff]   ;;  %3566 = vmatprep.subr.bf16.mxu0 %v4940_v4  ;;  %v4945_v7 = vld [vmem:[%s7757_s1 + $0x2c0] ss:$16 sps:$4 sm:$0xff]  }
   0x5   :  { %3607 = vmatprep.subr.bf16.mxu1 %v4942_v5  ;;  %v4946_v8 = vld [vmem:[%s7757_s1 + $0xa4] ss:$16 sps:$4 sm:$0xff]   ;;  %v4950_v10 = vld [vmem:[%s7757_s1 + $0xa0] ss:$16 sps:$4 sm:$0xff]   ;;  %3637 = vmatprep.mubr.bf16.mxu1 %v5989_v51 }
   0x6   :  { %v4948_v9 = vld [vmem:[%s7757_s1 + $0x2a4] ss:$16 sps:$4 sm:$0xff]   ;;  %v4951_v11 = vld [vmem:[%s7757_s1 + $0x2a0] ss:$16 sps:$4 sm:$0xff]  }
   0x7   :  { %3567 = vmatpush1.bf16.msra.mxu0 %v4944_v6  ;;  %v4952_v12 = vld [vmem:[%s7757_s1 + $0x84] ss:$16 sps:$4 sm:$0xff]   ;;  %v4956_v14 = vld [vmem:[%s7757_s1 + $0x80] ss:$16 sps:$4 sm:$0xff]  }
   0x8   :  { %3608 = vmatpush1.bf16.msra.mxu1 %v4945_v7  ;;  %3568 = vmatprep.subr.bf16.mxu0 %v4946_v8  ;;  %v4954_v13 = vld [vmem:[%s7757_s1 + $0x284] ss:$16 sps:$4 sm:$0xff]   ;;  %v4957_v15 = vld [vmem:[%s7757_s1 + $0x280] ss:$16 sps:$4 sm:$0xff]   ;;  %v6049_v7 = vcombine.low %v15_v48, %v15_v48 }
   0x9   :  { %3609 = vmatprep.subr.bf16.mxu1 %v4948_v9  ;;  %v4958_v16 = vld [vmem:[%s7757_s1 + $0x64] ss:$16 sps:$4 sm:$0xff]   ;;  %v4962_v18 = vld [vmem:[%s7757_s1 + $0x60] ss:$16 sps:$4 sm:$0xff]  }
   0xa   :  { %v4960_v17 = vld [vmem:[%s7757_s1 + $0x264] ss:$16 sps:$4 sm:$0xff]   ;;  %v4963_v19 = vld [vmem:[%s7757_s1 + $0x260] ss:$16 sps:$4 sm:$0xff]  }
   0xb   :  { %3569 = vmatpush1.bf16.msra.mxu0 %v4950_v10  ;;  %v4964_v20 = vld [vmem:[%s7757_s1 + $0x44] ss:$16 sps:$4 sm:$0xff]   ;;  %v4968_v22 = vld [vmem:[%s7757_s1 + $0x40] ss:$16 sps:$4 sm:$0xff]  }
   0xc   :  { %3610 = vmatpush1.bf16.msra.mxu1 %v4951_v11  ;;  %3570 = vmatprep.subr.bf16.mxu0 %v4952_v12  ;;  %v4966_v21 = vld [vmem:[%s7757_s1 + $0x244] ss:$16 sps:$4 sm:$0xff]   ;;  %v4969_v23 = vld [vmem:[%s7757_s1 + $0x240] ss:$16 sps:$4 sm:$0xff]  }
   0xd   :  { %3611 = vmatprep.subr.bf16.mxu1 %v4954_v13  ;;  %v4970_v24 = vld [vmem:[%s7757_s1 + $0x24] ss:$16 sps:$4 sm:$0xff]   ;;  %v4974_v26 = vld [vmem:[%s7757_s1 + $0x20] ss:$16 sps:$4 sm:$0xff]  }
   0xe   :  { %v4972_v25 = vld [vmem:[%s7757_s1 + $0x224] ss:$16 sps:$4 sm:$0xff]   ;;  %v4975_v27 = vld [vmem:[%s7757_s1 + $0x220] ss:$16 sps:$4 sm:$0xff]  }
   0xf   :  { %3571 = vmatpush1.bf16.msra.mxu0 %v4956_v14  ;;  %v4976_v28 = vld [vmem:[%s7757_s1 + $0x4] ss:$16 sps:$4 sm:$0xff]   ;;  %v4980_v30 = vld [vmem:[%s7757_s1] ss:$16 sps:$4 sm:$0xff]  }
  0x10   :  { %3612 = vmatpush1.bf16.msra.mxu1 %v4957_v15  ;;  %3572 = vmatprep.subr.bf16.mxu0 %v4958_v16  ;;  %v4978_v29 = vld [vmem:[%s7757_s1 + $0x204] ss:$16 sps:$4 sm:$0xff]   ;;  %v4981_v31 = vld [vmem:[%s7757_s1 + $0x200] ss:$16 sps:$4 sm:$0xff]  }
  0x11   :  { %3613 = vmatprep.subr.bf16.mxu1 %v4960_v17  ;;  %v4982_v32 = vld [vmem:[%s7757_s1 + $0x1e4] ss:$16 sps:$4 sm:$0xff]   ;;  %v4986_v34 = vld [vmem:[%s7757_s1 + $0x1e0] ss:$16 sps:$4 sm:$0xff]  }
  0x12   :  { %v4984_v33 = vld [vmem:[%s7757_s1 + $0x3e4] ss:$16 sps:$4 sm:$0xff]   ;;  %v4987_v35 = vld [vmem:[%s7757_s1 + $0x3e0] ss:$16 sps:$4 sm:$0xff]  }
  0x13   :  { %3573 = vmatpush1.bf16.msra.mxu0 %v4962_v18  ;;  %v4988_v36 = vld [vmem:[%s7757_s1 + $0x1c4] ss:$16 sps:$4 sm:$0xff]   ;;  %v4992_v38 = vld [vmem:[%s7757_s1 + $0x1c0] ss:$16 sps:$4 sm:$0xff]  }
  0x14   :  { %3614 = vmatpush1.bf16.msra.mxu1 %v4963_v19  ;;  %3574 = vmatprep.subr.bf16.mxu0 %v4964_v20  ;;  %v4990_v37 = vld [vmem:[%s7757_s1 + $0x3c4] ss:$16 sps:$4 sm:$0xff]   ;;  %v4993_v39 = vld [vmem:[%s7757_s1 + $0x3c0] ss:$16 sps:$4 sm:$0xff]  }
  0x15   :  { %3615 = vmatprep.subr.bf16.mxu1 %v4966_v21  ;;  %v4994_v40 = vld [vmem:[%s7757_s1 + $0x1a4] ss:$16 sps:$4 sm:$0xff]   ;;  %v4998_v42 = vld [vmem:[%s7757_s1 + $0x1a0] ss:$16 sps:$4 sm:$0xff]  }
  0x16   :  { %v4996_v41 = vld [vmem:[%s7757_s1 + $0x3a4] ss:$16 sps:$4 sm:$0xff]   ;;  %v4999_v43 = vld [vmem:[%s7757_s1 + $0x3a0] ss:$16 sps:$4 sm:$0xff]  }
  0x17   :  { %3575 = vmatpush1.bf16.msra.mxu0 %v4968_v22  ;;  %v5000_v44 = vld [vmem:[%s7757_s1 + $0x184] ss:$16 sps:$4 sm:$0xff]   ;;  %v5004_v49 = vld [vmem:[%s7757_s1 + $0x180] ss:$16 sps:$4 sm:$0xff]  }
  0x18   :  { %3616 = vmatpush1.bf16.msra.mxu1 %v4969_v23  ;;  %3576 = vmatprep.subr.bf16.mxu0 %v4970_v24  ;;  %v5002_v45 = vld [vmem:[%s7757_s1 + $0x384] ss:$16 sps:$4 sm:$0xff]   ;;  %v5005_v50 = vld [vmem:[%s7757_s1 + $0x380] ss:$16 sps:$4 sm:$0xff]  }
  0x19   :  { %3617 = vmatprep.subr.bf16.mxu1 %v4972_v25  ;;  %v14_v46 = vld [vmem:[%s7758_s0] sm:$0xff] }
  0x1a   :  { %v5978_v47 = vcombine.high %v14_v46, %v14_v46  ;;  %v5006_v52 = vld [vmem:[%s7757_s1 + $0x164] ss:$16 sps:$4 sm:$0xff]   ;;  %v5010_v54 = vld [vmem:[%s7757_s1 + $0x160] ss:$16 sps:$4 sm:$0xff]   ;;  %v6047_v6 = vcombine.low %v14_v46, %v14_v46 }
  0x1b   :  { %3577 = vmatpush1.bf16.msra.mxu0 %v4974_v26  ;;  %v5008_v53 = vld [vmem:[%s7757_s1 + $0x364] ss:$16 sps:$4 sm:$0xff]   ;;  %v5011_v55 = vld [vmem:[%s7757_s1 + $0x360] ss:$16 sps:$4 sm:$0xff]  }
  0x1c   :  { %3618 = vmatpush1.bf16.msra.mxu1 %v4975_v27  ;;  %3578 = vmatprep.subr.bf16.mxu0 %v4976_v28  ;;  %v5012_v56 = vld [vmem:[%s7757_s1 + $0x144] ss:$16 sps:$4 sm:$0xff]   ;;  %v5016_v58 = vld [vmem:[%s7757_s1 + $0x140] ss:$16 sps:$4 sm:$0xff]  }
  0x1d   :  { %3619 = vmatprep.subr.bf16.mxu1 %v4978_v29  ;;  %3596 = vmatprep.mubr.bf16.mxu0 %v5978_v47  ;;  %v5014_v57 = vld [vmem:[%s7757_s1 + $0x344] ss:$16 sps:$4 sm:$0xff]   ;;  %v5017_v59 = vld [vmem:[%s7757_s1 + $0x340] ss:$16 sps:$4 sm:$0xff]  }
  0x1e   :  { %v5018_v60 = vld [vmem:[%s7757_s1 + $0x124] ss:$16 sps:$4 sm:$0xff]   ;;  %v5022_v62 = vld [vmem:[%s7757_s1 + $0x120] ss:$16 sps:$4 sm:$0xff]  }
  0x1f   :  { %3579 = vmatpush1.bf16.msra.mxu0 %v4980_v30  ;;  %v5020_v61 = vld [vmem:[%s7757_s1 + $0x324] ss:$16 sps:$4 sm:$0xff]   ;;  %v5023_v63 = vld [vmem:[%s7757_s1 + $0x320] ss:$16 sps:$4 sm:$0xff]  }
  0x20   :  { %3620 = vmatpush1.bf16.msra.mxu1 %v4981_v31  ;;  %3580 = vmatprep.subr.bf16.mxu0 %v4982_v32  ;;  %v5024_v0 = vld [vmem:[%s7757_s1 + $0x104] ss:$16 sps:$4 sm:$0xff]   ;;  %v5028_v2 = vld [vmem:[%s7757_s1 + $0x100] ss:$16 sps:$4 sm:$0xff]  }
  0x21   :  { %3621 = vmatprep.subr.bf16.mxu1 %v4984_v33  ;;  %v5026_v1 = vld [vmem:[%s7757_s1 + $0x304] ss:$16 sps:$4 sm:$0xff]   ;;  %v5029_v3 = vld [vmem:[%s7757_s1 + $0x300] ss:$16 sps:$4 sm:$0xff]   ;;  %v6133_v33 = vld [vmem:[%s7758_s0 + $0x18] sm:$0xff] }
  0x22   :  { %v5036_v4 = vld [vmem:[%s7757_s1 + $0x4e4] ss:$16 sps:$4 sm:$0xff]   ;;  %v5034_v8 = vld [vmem:[%s7757_s1 + $0x4e0] ss:$16 sps:$4 sm:$0xff]  }
  0x23   :  { %3581 = vmatpush2.bf16.msra.mxu0 %v4986_v34  ;;  %v5039_v5 = vld [vmem:[%s7757_s1 + $0x6e4] ss:$16 sps:$4 sm:$0xff]   ;;  %v5037_v9 = vld [vmem:[%s7757_s1 + $0x6e0] ss:$16 sps:$4 sm:$0xff]  }
  0x24   :  { %3622 = vmatpush2.bf16.msra.mxu1 %v4987_v35  ;;  %3582 = vmatprep.subr.bf16.mxu0 %v4988_v36  ;;  %v5042_v10 = vld [vmem:[%s7757_s1 + $0x4c4] ss:$16 sps:$4 sm:$0xff]   ;;  %v5040_v12 = vld [vmem:[%s7757_s1 + $0x4c0] ss:$16 sps:$4 sm:$0xff]  }
  0x25   :  { %3623 = vmatprep.subr.bf16.mxu1 %v4990_v37  ;;  %v5045_v11 = vld [vmem:[%s7757_s1 + $0x6c4] ss:$16 sps:$4 sm:$0xff]   ;;  %v5043_v13 = vld [vmem:[%s7757_s1 + $0x6c0] ss:$16 sps:$4 sm:$0xff]   ;;  %v6147_v37 = vcombine.high %v6133_v33, %v6133_v33 }
  0x26   :  { %v5048_v14 = vld [vmem:[%s7757_s1 + $0x4a4] ss:$16 sps:$4 sm:$0xff]   ;;  %v5046_v16 = vld [vmem:[%s7757_s1 + $0x4a0] ss:$16 sps:$4 sm:$0xff]  }
  0x27   :  { %3583 = vmatpush2.bf16.msra.mxu0 %v4992_v38  ;;  %v5051_v15 = vld [vmem:[%s7757_s1 + $0x6a4] ss:$16 sps:$4 sm:$0xff]   ;;  %v5049_v17 = vld [vmem:[%s7757_s1 + $0x6a0] ss:$16 sps:$4 sm:$0xff]  }
  0x28   :  { %3624 = vmatpush2.bf16.msra.mxu1 %v4993_v39  ;;  %3584 = vmatprep.subr.bf16.mxu0 %v4994_v40  ;;  %v5054_v18 = vld [vmem:[%s7757_s1 + $0x484] ss:$16 sps:$4 sm:$0xff]   ;;  %v5052_v20 = vld [vmem:[%s7757_s1 + $0x480] ss:$16 sps:$4 sm:$0xff]  }
  0x29   :  { %3625 = vmatprep.subr.bf16.mxu1 %v4996_v41  ;;  %v5057_v19 = vld [vmem:[%s7757_s1 + $0x684] ss:$16 sps:$4 sm:$0xff]   ;;  %v5055_v21 = vld [vmem:[%s7757_s1 + $0x680] ss:$16 sps:$4 sm:$0xff]  }
  0x2a   :  { %v5060_v22 = vld [vmem:[%s7757_s1 + $0x464] ss:$16 sps:$4 sm:$0xff]   ;;  %v5058_v24 = vld [vmem:[%s7757_s1 + $0x460] ss:$16 sps:$4 sm:$0xff]  }
  0x2b   :  { %3585 = vmatpush2.bf16.msra.mxu0 %v4998_v42  ;;  %v5063_v23 = vld [vmem:[%s7757_s1 + $0x664] ss:$16 sps:$4 sm:$0xff]   ;;  %v5061_v25 = vld [vmem:[%s7757_s1 + $0x660] ss:$16 sps:$4 sm:$0xff]  }
  0x2c   :  { %3626 = vmatpush2.bf16.msra.mxu1 %v4999_v43  ;;  %3586 = vmatprep.subr.bf16.mxu0 %v5000_v44  ;;  %v5066_v26 = vld [vmem:[%s7757_s1 + $0x444] ss:$16 sps:$4 sm:$0xff]   ;;  %v5064_v28 = vld [vmem:[%s7757_s1 + $0x440] ss:$16 sps:$4 sm:$0xff]  }
  0x2d   :  { %3627 = vmatprep.subr.bf16.mxu1 %v5002_v45  ;;  %v5069_v27 = vld [vmem:[%s7757_s1 + $0x644] ss:$16 sps:$4 sm:$0xff]   ;;  %v5067_v29 = vld [vmem:[%s7757_s1 + $0x640] ss:$16 sps:$4 sm:$0xff]  }
  0x2e   :  { %v5072_v30 = vld [vmem:[%s7757_s1 + $0x424] ss:$16 sps:$4 sm:$0xff]   ;;  %v5070_v34 = vld [vmem:[%s7757_s1 + $0x420] ss:$16 sps:$4 sm:$0xff]  }
  0x2f   :  { %3587 = vmatpush2.bf16.msra.mxu0 %v5004_v49  ;;  %v5075_v31 = vld [vmem:[%s7757_s1 + $0x624] ss:$16 sps:$4 sm:$0xff]   ;;  %v5073_v35 = vld [vmem:[%s7757_s1 + $0x620] ss:$16 sps:$4 sm:$0xff]  }
  0x30   :  { %3628 = vmatpush2.bf16.msra.mxu1 %v5005_v50  ;;  %3588 = vmatprep.subr.bf16.mxu0 %v5006_v52  ;;  %v6128_v32 = vld [vmem:[%s7758_s0 + $0x10] sm:$0xff] }
  0x31   :  { %3629 = vmatprep.subr.bf16.mxu1 %v5008_v53  ;;  %v6143_v36 = vcombine.high %v6128_v32, %v6128_v32  ;;  %v5078_v38 = vld [vmem:[%s7757_s1 + $0x404] ss:$16 sps:$4 sm:$0xff]   ;;  %v5076_v40 = vld [vmem:[%s7757_s1 + $0x400] ss:$16 sps:$4 sm:$0xff]  }
  0x32   :  { %v5081_v39 = vld [vmem:[%s7757_s1 + $0x604] ss:$16 sps:$4 sm:$0xff]   ;;  %v5079_v41 = vld [vmem:[%s7757_s1 + $0x600] ss:$16 sps:$4 sm:$0xff]  }
  0x33   :  { %3589 = vmatpush2.bf16.msra.mxu0 %v5010_v54  ;;  %v5084_v42 = vld [vmem:[%s7757_s1 + $0x5e4] ss:$16 sps:$4 sm:$0xff]   ;;  %v5082_v44 = vld [vmem:[%s7757_s1 + $0x5e0] ss:$16 sps:$4 sm:$0xff]  }
  0x34   :  { %3630 = vmatpush2.bf16.msra.mxu1 %v5011_v55  ;;  %3590 = vmatprep.subr.bf16.mxu0 %v5012_v56  ;;  %v5087_v43 = vld [vmem:[%s7757_s1 + $0x7e4] ss:$16 sps:$4 sm:$0xff]   ;;  %v5085_v45 = vld [vmem:[%s7757_s1 + $0x7e0] ss:$16 sps:$4 sm:$0xff]  }
  0x35   :  { %3631 = vmatprep.subr.bf16.mxu1 %v5014_v57  ;;  %v5090_v46 = vld [vmem:[%s7757_s1 + $0x5c4] ss:$16 sps:$4 sm:$0xff]   ;;  %v5088_v49 = vld [vmem:[%s7757_s1 + $0x5c0] ss:$16 sps:$4 sm:$0xff]  }
  0x36   :  { %v5093_v48 = vld [vmem:[%s7757_s1 + $0x7c4] ss:$16 sps:$4 sm:$0xff]   ;;  %v5091_v50 = vld [vmem:[%s7757_s1 + $0x7c0] ss:$16 sps:$4 sm:$0xff]  }
  0x37   :  { %3591 = vmatpush2.bf16.msra.mxu0 %v5016_v58  ;;  %v5096_v52 = vld [vmem:[%s7757_s1 + $0x5a4] ss:$16 sps:$4 sm:$0xff]   ;;  %v5094_v54 = vld [vmem:[%s7757_s1 + $0x5a0] ss:$16 sps:$4 sm:$0xff]  }
  0x38   :  { %3632 = vmatpush2.bf16.msra.mxu1 %v5017_v59  ;;  %3592 = vmatprep.subr.bf16.mxu0 %v5018_v60  ;;  %v5099_v53 = vld [vmem:[%s7757_s1 + $0x7a4] ss:$16 sps:$4 sm:$0xff]   ;;  %v5097_v55 = vld [vmem:[%s7757_s1 + $0x7a0] ss:$16 sps:$4 sm:$0xff]  }
  0x39   :  { %3633 = vmatprep.subr.bf16.mxu1 %v5020_v61  ;;  %v5102_v56 = vld [vmem:[%s7757_s1 + $0x584] ss:$16 sps:$4 sm:$0xff]   ;;  %v5100_v58 = vld [vmem:[%s7757_s1 + $0x580] ss:$16 sps:$4 sm:$0xff]  }
  0x3a   :  { %v5105_v57 = vld [vmem:[%s7757_s1 + $0x784] ss:$16 sps:$4 sm:$0xff]   ;;  %v5103_v59 = vld [vmem:[%s7757_s1 + $0x780] ss:$16 sps:$4 sm:$0xff]  }
  0x3b   :  { %3593 = vmatpush2.bf16.msra.mxu0 %v5022_v62  ;;  %v5108_v60 = vld [vmem:[%s7757_s1 + $0x564] ss:$16 sps:$4 sm:$0xff]   ;;  %v5106_v62 = vld [vmem:[%s7757_s1 + $0x560] ss:$16 sps:$4 sm:$0xff]  }
  0x3c   :  { %3634 = vmatpush2.bf16.msra.mxu1 %v5023_v63  ;;  %3594 = vmatprep.subr.bf16.mxu0 %v5024_v0  ;;  %v5111_v61 = vld [vmem:[%s7757_s1 + $0x764] ss:$16 sps:$4 sm:$0xff]   ;;  %v5109_v63 = vld [vmem:[%s7757_s1 + $0x760] ss:$16 sps:$4 sm:$0xff]  }
  0x3d   :  { %3635 = vmatprep.subr.bf16.mxu1 %v5026_v1  ;;  %v5114_v0 = vld [vmem:[%s7757_s1 + $0x544] ss:$16 sps:$4 sm:$0xff]  }
  0x3e   :  { %v5117_v1 = vld [vmem:[%s7757_s1 + $0x744] ss:$16 sps:$4 sm:$0xff]  }
  0x3f   :  { %3595 = vmatpush2.bf16.msra.mxu0 %v5028_v2  ;;  %v5112_v2 = vld [vmem:[%s7757_s1 + $0x540] ss:$16 sps:$4 sm:$0xff]  }
  0x40   :  { %3636 = vmatpush2.bf16.msra.mxu1 %v5029_v3  ;;  %3646 = vmatprep.subr.bf16.mxu0 %v5036_v4  ;;  %v5115_v3 = vld [vmem:[%s7757_s1 + $0x740] ss:$16 sps:$4 sm:$0xff]   ;;  %v5120_v4 = vld [vmem:[%s7757_s1 + $0x524] ss:$16 sps:$4 sm:$0xff]  }
  0x41   :  { %3687 = vmatprep.subr.bf16.mxu1 %v5039_v5  ;;  %v5123_v5 = vld [vmem:[%s7757_s1 + $0x724] ss:$16 sps:$4 sm:$0xff]  }
  0x42   :  { %3597 = vmatmul.mubr.bf16.vlgmr.msra.gmra.mxu0 %v6047_v6 }
  0x43   :  { %3638 = vmatmul.mubr.bf16.vlgmr.msra.gmra.mxu1 %v6049_v7  ;;  %3647 = vmatpush1.bf16.msra.mxu0 %v5034_v8  ;;  %v5118_v8 = vld [vmem:[%s7757_s1 + $0x520] ss:$16 sps:$4 sm:$0xff]  }
  0x44   :  { %3688 = vmatpush1.bf16.msra.mxu1 %v5037_v9  ;;  %3648 = vmatprep.subr.bf16.mxu0 %v5042_v10  ;;  %v5121_v9 = vld [vmem:[%s7757_s1 + $0x720] ss:$16 sps:$4 sm:$0xff]   ;;  %v5126_v10 = vld [vmem:[%s7757_s1 + $0x504] ss:$16 sps:$4 sm:$0xff]  }
  0x45   :  { %3689 = vmatprep.subr.bf16.mxu1 %v5045_v11  ;;  %3678 = vmatprep.mubr.bf16.mxu0 %v6143_v36  ;;  %v5129_v11 = vld [vmem:[%s7757_s1 + $0x704] ss:$16 sps:$4 sm:$0xff]  }
  0x46   :  { %3719 = vmatprep.mubr.bf16.mxu1 %v6147_v37 }
  0x47   :  { %3649 = vmatpush1.bf16.msra.mxu0 %v5040_v12  ;;  %v5124_v12 = vld [vmem:[%s7757_s1 + $0x500] ss:$16 sps:$4 sm:$0xff]  }
  0x48   :  { %3690 = vmatpush1.bf16.msra.mxu1 %v5043_v13  ;;  %3650 = vmatprep.subr.bf16.mxu0 %v5048_v14  ;;  %v5127_v13 = vld [vmem:[%s7757_s1 + $0x700] ss:$16 sps:$4 sm:$0xff]   ;;  %v5136_v14 = vld [vmem:[%s7757_s1 + $0x8e4] ss:$16 sps:$4 sm:$0xff]  }
  0x49   :  { %3691 = vmatprep.subr.bf16.mxu1 %v5051_v15  ;;  %v5139_v15 = vld [vmem:[%s7757_s1 + $0xae4] ss:$16 sps:$4 sm:$0xff]  }
  0x4b   :  { %3651 = vmatpush1.bf16.msra.mxu0 %v5046_v16  ;;  %v6267_v16 = vcombine.low %v6128_v32, %v6128_v32  ;;  %v5154_v32 = vld [vmem:[%s7757_s1 + $0x884] ss:$16 sps:$4 sm:$0xff]  }
  0x4c   :  { %3692 = vmatpush1.bf16.msra.mxu1 %v5049_v17  ;;  %3652 = vmatprep.subr.bf16.mxu0 %v5054_v18  ;;  %v6271_v17 = vcombine.low %v6133_v33, %v6133_v33  ;;  %v5134_v18 = vld [vmem:[%s7757_s1 + $0x8e0] ss:$16 sps:$4 sm:$0xff]   ;;  %v5157_v33 = vld [vmem:[%s7757_s1 + $0xa84] ss:$16 sps:$4 sm:$0xff]  }
  0x4d   :  { %3693 = vmatprep.subr.bf16.mxu1 %v5057_v19  ;;  %v5137_v19 = vld [vmem:[%s7757_s1 + $0xae0] ss:$16 sps:$4 sm:$0xff]  }
  0x4f   :  { %3653 = vmatpush1.bf16.msra.mxu0 %v5052_v20  ;;  %v5142_v20 = vld [vmem:[%s7757_s1 + $0x8c4] ss:$16 sps:$4 sm:$0xff]  }
  0x50   :  { %3694 = vmatpush1.bf16.msra.mxu1 %v5055_v21  ;;  %3654 = vmatprep.subr.bf16.mxu0 %v5060_v22  ;;  %v5145_v21 = vld [vmem:[%s7757_s1 + $0xac4] ss:$16 sps:$4 sm:$0xff]  }
  0x51   :  { %3695 = vmatprep.subr.bf16.mxu1 %v5063_v23  ;;  %v6288_v22 = vld [vmem:[%s7758_s0 + $0x20] sm:$0xff]  ;;  %v6293_v23 = vld [vmem:[%s7758_s0 + $0x28] sm:$0xff] }
  0x53   :  { %3655 = vmatpush1.bf16.msra.mxu0 %v5058_v24  ;;  %v6297_v24 = vcombine.high %v6288_v22, %v6288_v22 }
  0x54   :  { %3696 = vmatpush1.bf16.msra.mxu1 %v5061_v25  ;;  %3656 = vmatprep.subr.bf16.mxu0 %v5066_v26  ;;  %v6301_v25 = vcombine.high %v6293_v23, %v6293_v23  ;;  %v5140_v26 = vld [vmem:[%s7757_s1 + $0x8c0] ss:$16 sps:$4 sm:$0xff]  }
  0x55   :  { %3697 = vmatprep.subr.bf16.mxu1 %v5069_v27  ;;  %v5143_v27 = vld [vmem:[%s7757_s1 + $0xac0] ss:$16 sps:$4 sm:$0xff]  }
  0x57   :  { %3657 = vmatpush1.bf16.msra.mxu0 %v5064_v28  ;;  %v5148_v28 = vld [vmem:[%s7757_s1 + $0x8a4] ss:$16 sps:$4 sm:$0xff]  }
  0x58   :  { %3698 = vmatpush1.bf16.msra.mxu1 %v5067_v29  ;;  %3658 = vmatprep.subr.bf16.mxu0 %v5072_v30  ;;  %v5151_v29 = vld [vmem:[%s7757_s1 + $0xaa4] ss:$16 sps:$4 sm:$0xff]   ;;  %v5146_v30 = vld [vmem:[%s7757_s1 + $0x8a0] ss:$16 sps:$4 sm:$0xff]  }
  0x59   :  { %3699 = vmatprep.subr.bf16.mxu1 %v5075_v31  ;;  %v5149_v31 = vld [vmem:[%s7757_s1 + $0xaa0] ss:$16 sps:$4 sm:$0xff]  }
  0x5b   :  { %3659 = vmatpush1.bf16.msra.mxu0 %v5070_v34  ;;  %v5152_v34 = vld [vmem:[%s7757_s1 + $0x880] ss:$16 sps:$4 sm:$0xff]  }
  0x5c   :  { %3700 = vmatpush1.bf16.msra.mxu1 %v5073_v35  ;;  %3660 = vmatprep.subr.bf16.mxu0 %v5078_v38  ;;  %v5155_v35 = vld [vmem:[%s7757_s1 + $0xa80] ss:$16 sps:$4 sm:$0xff]   ;;  %v5160_v38 = vld [vmem:[%s7757_s1 + $0x864] ss:$16 sps:$4 sm:$0xff]  }
  0x5d   :  { %3701 = vmatprep.subr.bf16.mxu1 %v5081_v39  ;;  %v5163_v39 = vld [vmem:[%s7757_s1 + $0xa64] ss:$16 sps:$4 sm:$0xff]  }
  0x5f   :  { %3661 = vmatpush1.bf16.msra.mxu0 %v5076_v40  ;;  %v5158_v40 = vld [vmem:[%s7757_s1 + $0x860] ss:$16 sps:$4 sm:$0xff]  }
  0x60   :  { %3702 = vmatpush1.bf16.msra.mxu1 %v5079_v41  ;;  %3662 = vmatprep.subr.bf16.mxu0 %v5084_v42  ;;  %v5161_v41 = vld [vmem:[%s7757_s1 + $0xa60] ss:$16 sps:$4 sm:$0xff]   ;;  %v5166_v42 = vld [vmem:[%s7757_s1 + $0x844] ss:$16 sps:$4 sm:$0xff]  }
  0x61   :  { %3703 = vmatprep.subr.bf16.mxu1 %v5087_v43  ;;  %v5169_v43 = vld [vmem:[%s7757_s1 + $0xa44] ss:$16 sps:$4 sm:$0xff]  }
  0x63   :  { %3663 = vmatpush2.bf16.msra.mxu0 %v5082_v44  ;;  %v5164_v44 = vld [vmem:[%s7757_s1 + $0x840] ss:$16 sps:$4 sm:$0xff]  }
  0x64   :  { %3704 = vmatpush2.bf16.msra.mxu1 %v5085_v45  ;;  %3664 = vmatprep.subr.bf16.mxu0 %v5090_v46  ;;  %v5167_v45 = vld [vmem:[%s7757_s1 + $0xa40] ss:$16 sps:$4 sm:$0xff]   ;;  %v5172_v46 = vld [vmem:[%s7757_s1 + $0x824] ss:$16 sps:$4 sm:$0xff]  }
  0x65   :  { %3705 = vmatprep.subr.bf16.mxu1 %v5093_v48  ;;  %v5175_v48 = vld [vmem:[%s7757_s1 + $0xa24] ss:$16 sps:$4 sm:$0xff]  }
  0x67   :  { %3665 = vmatpush2.bf16.msra.mxu0 %v5088_v49  ;;  %v5170_v49 = vld [vmem:[%s7757_s1 + $0x820] ss:$16 sps:$4 sm:$0xff]  }
  0x68   :  { %3706 = vmatpush2.bf16.msra.mxu1 %v5091_v50  ;;  %3666 = vmatprep.subr.bf16.mxu0 %v5096_v52  ;;  %v5173_v50 = vld [vmem:[%s7757_s1 + $0xa20] ss:$16 sps:$4 sm:$0xff]   ;;  %v5178_v52 = vld [vmem:[%s7757_s1 + $0x804] ss:$16 sps:$4 sm:$0xff]  }
  0x69   :  { %3707 = vmatprep.subr.bf16.mxu1 %v5099_v53  ;;  %v5181_v53 = vld [vmem:[%s7757_s1 + $0xa04] ss:$16 sps:$4 sm:$0xff]  }
  0x6b   :  { %3667 = vmatpush2.bf16.msra.mxu0 %v5094_v54  ;;  %v5176_v54 = vld [vmem:[%s7757_s1 + $0x800] ss:$16 sps:$4 sm:$0xff]  }
  0x6c   :  { %3708 = vmatpush2.bf16.msra.mxu1 %v5097_v55  ;;  %3668 = vmatprep.subr.bf16.mxu0 %v5102_v56  ;;  %v5179_v55 = vld [vmem:[%s7757_s1 + $0xa00] ss:$16 sps:$4 sm:$0xff]   ;;  %v5184_v56 = vld [vmem:[%s7757_s1 + $0x9e4] ss:$16 sps:$4 sm:$0xff]  }
  0x6d   :  { %3709 = vmatprep.subr.bf16.mxu1 %v5105_v57  ;;  %v5187_v57 = vld [vmem:[%s7757_s1 + $0xbe4] ss:$16 sps:$4 sm:$0xff]  }
  0x6f   :  { %3669 = vmatpush2.bf16.msra.mxu0 %v5100_v58  ;;  %v5182_v58 = vld [vmem:[%s7757_s1 + $0x9e0] ss:$16 sps:$4 sm:$0xff]  }
  0x70   :  { %3710 = vmatpush2.bf16.msra.mxu1 %v5103_v59  ;;  %3670 = vmatprep.subr.bf16.mxu0 %v5108_v60  ;;  %v5185_v59 = vld [vmem:[%s7757_s1 + $0xbe0] ss:$16 sps:$4 sm:$0xff]   ;;  %v5190_v60 = vld [vmem:[%s7757_s1 + $0x9c4] ss:$16 sps:$4 sm:$0xff]  }
  0x71   :  { %3711 = vmatprep.subr.bf16.mxu1 %v5111_v61  ;;  %v5193_v61 = vld [vmem:[%s7757_s1 + $0xbc4] ss:$16 sps:$4 sm:$0xff]  }
  0x73   :  { %3671 = vmatpush2.bf16.msra.mxu0 %v5106_v62  ;;  %v5188_v62 = vld [vmem:[%s7757_s1 + $0x9c0] ss:$16 sps:$4 sm:$0xff]  }
  0x74   :  { %3712 = vmatpush2.bf16.msra.mxu1 %v5109_v63  ;;  %3672 = vmatprep.subr.bf16.mxu0 %v5114_v0  ;;  %v5191_v63 = vld [vmem:[%s7757_s1 + $0xbc0] ss:$16 sps:$4 sm:$0xff]   ;;  %v5196_v0 = vld [vmem:[%s7757_s1 + $0x9a4] ss:$16 sps:$4 sm:$0xff]  }
  0x75   :  { %3713 = vmatprep.subr.bf16.mxu1 %v5117_v1  ;;  %v5199_v1 = vld [vmem:[%s7757_s1 + $0xba4] ss:$16 sps:$4 sm:$0xff]  }
  0x77   :  { %3673 = vmatpush2.bf16.msra.mxu0 %v5112_v2  ;;  %v5194_v2 = vld [vmem:[%s7757_s1 + $0x9a0] ss:$16 sps:$4 sm:$0xff]  }
  0x78   :  { %3714 = vmatpush2.bf16.msra.mxu1 %v5115_v3  ;;  %3674 = vmatprep.subr.bf16.mxu0 %v5120_v4  ;;  %v5197_v3 = vld [vmem:[%s7757_s1 + $0xba0] ss:$16 sps:$4 sm:$0xff]   ;;  %v5202_v4 = vld [vmem:[%s7757_s1 + $0x984] ss:$16 sps:$4 sm:$0xff]  }
  0x79   :  { %3715 = vmatprep.subr.bf16.mxu1 %v5123_v5  ;;  %v5205_v5 = vld [vmem:[%s7757_s1 + $0xb84] ss:$16 sps:$4 sm:$0xff]  }
  0x7b   :  { %3675 = vmatpush2.bf16.msra.mxu0 %v5118_v8  ;;  %v5200_v8 = vld [vmem:[%s7757_s1 + $0x980] ss:$16 sps:$4 sm:$0xff]  }
  0x7c   :  { %3716 = vmatpush2.bf16.msra.mxu1 %v5121_v9  ;;  %3676 = vmatprep.subr.bf16.mxu0 %v5126_v10  ;;  %v5203_v9 = vld [vmem:[%s7757_s1 + $0xb80] ss:$16 sps:$4 sm:$0xff]   ;;  %v5208_v10 = vld [vmem:[%s7757_s1 + $0x964] ss:$16 sps:$4 sm:$0xff]  }
  0x7d   :  { %3717 = vmatprep.subr.bf16.mxu1 %v5129_v11  ;;  %v5211_v11 = vld [vmem:[%s7757_s1 + $0xb64] ss:$16 sps:$4 sm:$0xff]  }
  0x7f   :  { %3677 = vmatpush2.bf16.msra.mxu0 %v5124_v12  ;;  %v5206_v12 = vld [vmem:[%s7757_s1 + $0x960] ss:$16 sps:$4 sm:$0xff]  }
  0x80   :  { %3718 = vmatpush2.bf16.msra.mxu1 %v5127_v13  ;;  %3728 = vmatprep.subr.bf16.mxu0 %v5136_v14  ;;  %v5209_v13 = vld [vmem:[%s7757_s1 + $0xb60] ss:$16 sps:$4 sm:$0xff]   ;;  %v5214_v14 = vld [vmem:[%s7757_s1 + $0x944] ss:$16 sps:$4 sm:$0xff]  }
  0x81   :  { %3769 = vmatprep.subr.bf16.mxu1 %v5139_v15  ;;  %v5217_v15 = vld [vmem:[%s7757_s1 + $0xb44] ss:$16 sps:$4 sm:$0xff]  }
  0x82   :  { %3679 = vmatmul.mubr.bf16.vlgmr.msra.gmra.mxu0 %v6267_v16 }
  0x83   :  { %3720 = vmatmul.mubr.bf16.vlgmr.msra.gmra.mxu1 %v6271_v17  ;;  %3729 = vmatpush1.bf16.msra.mxu0 %v5134_v18  ;;  %v5212_v18 = vld [vmem:[%s7757_s1 + $0x940] ss:$16 sps:$4 sm:$0xff]  }
  0x84   :  { %3770 = vmatpush1.bf16.msra.mxu1 %v5137_v19  ;;  %3730 = vmatprep.subr.bf16.mxu0 %v5142_v20  ;;  %v5215_v19 = vld [vmem:[%s7757_s1 + $0xb40] ss:$16 sps:$4 sm:$0xff]   ;;  %v5220_v20 = vld [vmem:[%s7757_s1 + $0x924] ss:$16 sps:$4 sm:$0xff]  }
  0x85   :  { %3771 = vmatprep.subr.bf16.mxu1 %v5145_v21  ;;  %3760 = vmatprep.mubr.bf16.mxu0 %v6297_v24  ;;  %v5223_v21 = vld [vmem:[%s7757_s1 + $0xb24] ss:$16 sps:$4 sm:$0xff]  }
  0x86   :  { %3801 = vmatprep.mubr.bf16.mxu1 %v6301_v25 }
  0x87   :  { %3731 = vmatpush1.bf16.msra.mxu0 %v5140_v26  ;;  %v5218_v26 = vld [vmem:[%s7757_s1 + $0x920] ss:$16 sps:$4 sm:$0xff]  }
  0x88   :  { %3772 = vmatpush1.bf16.msra.mxu1 %v5143_v27  ;;  %3732 = vmatprep.subr.bf16.mxu0 %v5148_v28  ;;  %v5221_v27 = vld [vmem:[%s7757_s1 + $0xb20] ss:$16 sps:$4 sm:$0xff]   ;;  %v5226_v28 = vld [vmem:[%s7757_s1 + $0x904] ss:$16 sps:$4 sm:$0xff]  }
  0x89   :  { %3773 = vmatprep.subr.bf16.mxu1 %v5151_v29  ;;  %v5229_v29 = vld [vmem:[%s7757_s1 + $0xb04] ss:$16 sps:$4 sm:$0xff]  }
  0x8b   :  { %3733 = vmatpush1.bf16.msra.mxu0 %v5146_v30  ;;  %v5224_v30 = vld [vmem:[%s7757_s1 + $0x900] ss:$16 sps:$4 sm:$0xff]  }
  0x8c   :  { %3774 = vmatpush1.bf16.msra.mxu1 %v5149_v31  ;;  %3734 = vmatprep.subr.bf16.mxu0 %v5154_v32  ;;  %v5227_v31 = vld [vmem:[%s7757_s1 + $0xb00] ss:$16 sps:$4 sm:$0xff]   ;;  %v5236_v32 = vld [vmem:[%s7757_s1 + $0xce4] ss:$16 sps:$4 sm:$0xff]  }
  0x8d   :  { %3775 = vmatprep.subr.bf16.mxu1 %v5157_v33  ;;  %v5239_v33 = vld [vmem:[%s7757_s1 + $0xee4] ss:$16 sps:$4 sm:$0xff]  }
  0x8f   :  { %3735 = vmatpush1.bf16.msra.mxu0 %v5152_v34  ;;  %v5234_v34 = vld [vmem:[%s7757_s1 + $0xce0] ss:$16 sps:$4 sm:$0xff]  }
  0x90   :  { %3776 = vmatpush1.bf16.msra.mxu1 %v5155_v35  ;;  %3736 = vmatprep.subr.bf16.mxu0 %v5160_v38  ;;  %v6493_v35 = vld [vmem:[%s7758_s0 + $0x30] sm:$0xff]  ;;  %v6497_v38 = vcombine.low %v6288_v22, %v6288_v22 }
  0x91   :  { %3777 = vmatprep.subr.bf16.mxu1 %v5163_v39  ;;  %v6501_v39 = vcombine.low %v6293_v23, %v6293_v23  ;;  %v5242_v22 = vld [vmem:[%s7757_s1 + $0xcc4] ss:$16 sps:$4 sm:$0xff]  }
  0x92   :  { %v5245_v23 = vld [vmem:[%s7757_s1 + $0xec4] ss:$16 sps:$4 sm:$0xff]  }
  0x93   :  { %3737 = vmatpush1.bf16.msra.mxu0 %v5158_v40  ;;  %v6506_v40 = vld [vmem:[%s7758_s0 + $0x38] sm:$0xff] }
  0x94   :  { %3778 = vmatpush1.bf16.msra.mxu1 %v5161_v41  ;;  %3738 = vmatprep.subr.bf16.mxu0 %v5166_v42  ;;  %v5237_v41 = vld [vmem:[%s7757_s1 + $0xee0] ss:$16 sps:$4 sm:$0xff]   ;;  %v6519_v42 = vcombine.high %v6493_v35, %v6493_v35 }
  0x95   :  { %3779 = vmatprep.subr.bf16.mxu1 %v5169_v43  ;;  %v6523_v43 = vcombine.high %v6506_v40, %v6506_v40 }
  0x97   :  { %3739 = vmatpush1.bf16.msra.mxu0 %v5164_v44  ;;  %v5240_v44 = vld [vmem:[%s7757_s1 + $0xcc0] ss:$16 sps:$4 sm:$0xff]  }
  0x98   :  { %3780 = vmatpush1.bf16.msra.mxu1 %v5167_v45  ;;  %3740 = vmatprep.subr.bf16.mxu0 %v5172_v46  ;;  %v5243_v45 = vld [vmem:[%s7757_s1 + $0xec0] ss:$16 sps:$4 sm:$0xff]   ;;  %v5248_v46 = vld [vmem:[%s7757_s1 + $0xca4] ss:$16 sps:$4 sm:$0xff]  }
  0x99   :  { %3781 = vmatprep.subr.bf16.mxu1 %v5175_v48  ;;  %v5251_v48 = vld [vmem:[%s7757_s1 + $0xea4] ss:$16 sps:$4 sm:$0xff]  }
  0x9b   :  { %3741 = vmatpush1.bf16.msra.mxu0 %v5170_v49  ;;  %v5246_v49 = vld [vmem:[%s7757_s1 + $0xca0] ss:$16 sps:$4 sm:$0xff]  }
  0x9c   :  { %3782 = vmatpush1.bf16.msra.mxu1 %v5173_v50  ;;  %3742 = vmatprep.subr.bf16.mxu0 %v5178_v52  ;;  %v5249_v50 = vld [vmem:[%s7757_s1 + $0xea0] ss:$16 sps:$4 sm:$0xff]   ;;  %v5254_v52 = vld [vmem:[%s7757_s1 + $0xc84] ss:$16 sps:$4 sm:$0xff]  }
  0x9d   :  { %3783 = vmatprep.subr.bf16.mxu1 %v5181_v53  ;;  %v5257_v53 = vld [vmem:[%s7757_s1 + $0xe84] ss:$16 sps:$4 sm:$0xff]  }
  0x9f   :  { %3743 = vmatpush1.bf16.msra.mxu0 %v5176_v54  ;;  %v5252_v54 = vld [vmem:[%s7757_s1 + $0xc80] ss:$16 sps:$4 sm:$0xff]  }
  0xa0   :  { %3784 = vmatpush1.bf16.msra.mxu1 %v5179_v55  ;;  %3744 = vmatprep.subr.bf16.mxu0 %v5184_v56  ;;  %v5255_v55 = vld [vmem:[%s7757_s1 + $0xe80] ss:$16 sps:$4 sm:$0xff]   ;;  %v5260_v56 = vld [vmem:[%s7757_s1 + $0xc64] ss:$16 sps:$4 sm:$0xff]  }
  0xa1   :  { %3785 = vmatprep.subr.bf16.mxu1 %v5187_v57  ;;  %v5263_v57 = vld [vmem:[%s7757_s1 + $0xe64] ss:$16 sps:$4 sm:$0xff]  }
  0xa3   :  { %3745 = vmatpush2.bf16.msra.mxu0 %v5182_v58  ;;  %v5258_v58 = vld [vmem:[%s7757_s1 + $0xc60] ss:$16 sps:$4 sm:$0xff]  }
  0xa4   :  { %3786 = vmatpush2.bf16.msra.mxu1 %v5185_v59  ;;  %3746 = vmatprep.subr.bf16.mxu0 %v5190_v60  ;;  %v5261_v59 = vld [vmem:[%s7757_s1 + $0xe60] ss:$16 sps:$4 sm:$0xff]   ;;  %v5266_v60 = vld [vmem:[%s7757_s1 + $0xc44] ss:$16 sps:$4 sm:$0xff]  }
  0xa5   :  { %3787 = vmatprep.subr.bf16.mxu1 %v5193_v61  ;;  %v5269_v61 = vld [vmem:[%s7757_s1 + $0xe44] ss:$16 sps:$4 sm:$0xff]  }
  0xa7   :  { %3747 = vmatpush2.bf16.msra.mxu0 %v5188_v62  ;;  %v5264_v62 = vld [vmem:[%s7757_s1 + $0xc40] ss:$16 sps:$4 sm:$0xff]  }
  0xa8   :  { %3788 = vmatpush2.bf16.msra.mxu1 %v5191_v63  ;;  %3748 = vmatprep.subr.bf16.mxu0 %v5196_v0  ;;  %v5267_v63 = vld [vmem:[%s7757_s1 + $0xe40] ss:$16 sps:$4 sm:$0xff]   ;;  %v5272_v0 = vld [vmem:[%s7757_s1 + $0xc24] ss:$16 sps:$4 sm:$0xff]  }
  0xa9   :  { %3789 = vmatprep.subr.bf16.mxu1 %v5199_v1  ;;  %v5275_v1 = vld [vmem:[%s7757_s1 + $0xe24] ss:$16 sps:$4 sm:$0xff]  }
  0xab   :  { %3749 = vmatpush2.bf16.msra.mxu0 %v5194_v2  ;;  %v5270_v2 = vld [vmem:[%s7757_s1 + $0xc20] ss:$16 sps:$4 sm:$0xff]  }
  0xac   :  { %3790 = vmatpush2.bf16.msra.mxu1 %v5197_v3  ;;  %3750 = vmatprep.subr.bf16.mxu0 %v5202_v4  ;;  %v5273_v3 = vld [vmem:[%s7757_s1 + $0xe20] ss:$16 sps:$4 sm:$0xff]   ;;  %v5278_v4 = vld [vmem:[%s7757_s1 + $0xc04] ss:$16 sps:$4 sm:$0xff]  }
  0xad   :  { %3791 = vmatprep.subr.bf16.mxu1 %v5205_v5  ;;  %v5281_v5 = vld [vmem:[%s7757_s1 + $0xe04] ss:$16 sps:$4 sm:$0xff]  }
  0xaf   :  { %3751 = vmatpush2.bf16.msra.mxu0 %v5200_v8  ;;  %v5276_v8 = vld [vmem:[%s7757_s1 + $0xc00] ss:$16 sps:$4 sm:$0xff]  }
  0xb0   :  { %3792 = vmatpush2.bf16.msra.mxu1 %v5203_v9  ;;  %3752 = vmatprep.subr.bf16.mxu0 %v5208_v10  ;;  %v5279_v9 = vld [vmem:[%s7757_s1 + $0xe00] ss:$16 sps:$4 sm:$0xff]   ;;  %v5284_v10 = vld [vmem:[%s7757_s1 + $0xde4] ss:$16 sps:$4 sm:$0xff]  }
  0xb1   :  { %3793 = vmatprep.subr.bf16.mxu1 %v5211_v11  ;;  %v5287_v11 = vld [vmem:[%s7757_s1 + $0xfe4] ss:$16 sps:$4 sm:$0xff]  }
  0xb3   :  { %3753 = vmatpush2.bf16.msra.mxu0 %v5206_v12  ;;  %v5282_v12 = vld [vmem:[%s7757_s1 + $0xde0] ss:$16 sps:$4 sm:$0xff]  }
  0xb4   :  { %3794 = vmatpush2.bf16.msra.mxu1 %v5209_v13  ;;  %3754 = vmatprep.subr.bf16.mxu0 %v5214_v14  ;;  %v5285_v13 = vld [vmem:[%s7757_s1 + $0xfe0] ss:$16 sps:$4 sm:$0xff]   ;;  %v5290_v14 = vld [vmem:[%s7757_s1 + $0xdc4] ss:$16 sps:$4 sm:$0xff]  }
  0xb5   :  { %3795 = vmatprep.subr.bf16.mxu1 %v5217_v15  ;;  %v5293_v15 = vld [vmem:[%s7757_s1 + $0xfc4] ss:$16 sps:$4 sm:$0xff]  }
  0xb7   :  { %3755 = vmatpush2.bf16.msra.mxu0 %v5212_v18  ;;  %v5288_v18 = vld [vmem:[%s7757_s1 + $0xdc0] ss:$16 sps:$4 sm:$0xff]  }
  0xb8   :  { %3796 = vmatpush2.bf16.msra.mxu1 %v5215_v19  ;;  %3756 = vmatprep.subr.bf16.mxu0 %v5220_v20  ;;  %v5291_v19 = vld [vmem:[%s7757_s1 + $0xfc0] ss:$16 sps:$4 sm:$0xff]   ;;  %v5296_v20 = vld [vmem:[%s7757_s1 + $0xda4] ss:$16 sps:$4 sm:$0xff]  }
  0xb9   :  { %3797 = vmatprep.subr.bf16.mxu1 %v5223_v21  ;;  %v5299_v21 = vld [vmem:[%s7757_s1 + $0xfa4] ss:$16 sps:$4 sm:$0xff]  }
  0xbb   :  { %3757 = vmatpush2.bf16.msra.mxu0 %v5218_v26  ;;  %v5294_v26 = vld [vmem:[%s7757_s1 + $0xda0] ss:$16 sps:$4 sm:$0xff]  }
  0xbc   :  { %3798 = vmatpush2.bf16.msra.mxu1 %v5221_v27  ;;  %3758 = vmatprep.subr.bf16.mxu0 %v5226_v28  ;;  %v5297_v27 = vld [vmem:[%s7757_s1 + $0xfa0] ss:$16 sps:$4 sm:$0xff]   ;;  %v5302_v28 = vld [vmem:[%s7757_s1 + $0xd84] ss:$16 sps:$4 sm:$0xff]  }
  0xbd   :  { %3799 = vmatprep.subr.bf16.mxu1 %v5229_v29  ;;  %v5305_v29 = vld [vmem:[%s7757_s1 + $0xf84] ss:$16 sps:$4 sm:$0xff]  }
  0xbf   :  { %3759 = vmatpush2.bf16.msra.mxu0 %v5224_v30  ;;  %v5300_v30 = vld [vmem:[%s7757_s1 + $0xd80] ss:$16 sps:$4 sm:$0xff]  }
  0xc0   :  { %3800 = vmatpush2.bf16.msra.mxu1 %v5227_v31  ;;  %3810 = vmatprep.subr.bf16.mxu0 %v5236_v32  ;;  %v5303_v31 = vld [vmem:[%s7757_s1 + $0xf80] ss:$16 sps:$4 sm:$0xff]   ;;  %v5308_v32 = vld [vmem:[%s7757_s1 + $0xd64] ss:$16 sps:$4 sm:$0xff]  }
  0xc1   :  { %3851 = vmatprep.subr.bf16.mxu1 %v5239_v33  ;;  %v5311_v33 = vld [vmem:[%s7757_s1 + $0xf64] ss:$16 sps:$4 sm:$0xff]  }
  0xc2   :  { %3761 = vmatmul.mubr.bf16.vlgmr.msra.gmra.mxu0 %v6497_v38 }
  0xc3   :  { %3802 = vmatmul.mubr.bf16.vlgmr.msra.gmra.mxu1 %v6501_v39  ;;  %3811 = vmatpush1.bf16.msra.mxu0 %v5234_v34  ;;  %v5306_v34 = vld [vmem:[%s7757_s1 + $0xd60] ss:$16 sps:$4 sm:$0xff]  }
  0xc4   :  { %3852 = vmatpush1.bf16.msra.mxu1 %v5237_v41  ;;  %3812 = vmatprep.subr.bf16.mxu0 %v5242_v22  ;;  %v5309_v41 = vld [vmem:[%s7757_s1 + $0xf60] ss:$16 sps:$4 sm:$0xff]   ;;  %v5314_v22 = vld [vmem:[%s7757_s1 + $0xd44] ss:$16 sps:$4 sm:$0xff]  }
  0xc5   :  { %3853 = vmatprep.subr.bf16.mxu1 %v5245_v23  ;;  %3842 = vmatprep.mubr.bf16.mxu0 %v6519_v42  ;;  %v5317_v23 = vld [vmem:[%s7757_s1 + $0xf44] ss:$16 sps:$4 sm:$0xff]  }
  0xc6   :  { %3883 = vmatprep.mubr.bf16.mxu1 %v6523_v43 }
  0xc7   :  { %3813 = vmatpush1.bf16.msra.mxu0 %v5240_v44  ;;  %v5312_v44 = vld [vmem:[%s7757_s1 + $0xd40] ss:$16 sps:$4 sm:$0xff]  }
  0xc8   :  { %3854 = vmatpush1.bf16.msra.mxu1 %v5243_v45  ;;  %3814 = vmatprep.subr.bf16.mxu0 %v5248_v46  ;;  %v5315_v45 = vld [vmem:[%s7757_s1 + $0xf40] ss:$16 sps:$4 sm:$0xff]   ;;  %v601_v46 = vlaneseq }
  0xc9   :  { %3855 = vmatprep.subr.bf16.mxu1 %v5251_v48  ;;  %v5320_v48 = vld [vmem:[%s7757_s1 + $0xd24] ss:$16 sps:$4 sm:$0xff]  }
  0xcb   :  { %3815 = vmatpush1.bf16.msra.mxu0 %v5246_v49  ;;  %v5323_v49 = vld [vmem:[%s7757_s1 + $0xf24] ss:$16 sps:$4 sm:$0xff]  }
  0xcc   :  { %3856 = vmatpush1.bf16.msra.mxu1 %v5249_v50  ;;  %3816 = vmatprep.subr.bf16.mxu0 %v5254_v52  ;;  %v5318_v50 = vld [vmem:[%s7757_s1 + $0xd20] ss:$16 sps:$4 sm:$0xff]  }
  0xcd   :  { %3857 = vmatprep.subr.bf16.mxu1 %v5257_v53  ;;  %v5321_v52 = vld [vmem:[%s7757_s1 + $0xf20] ss:$16 sps:$4 sm:$0xff]   ;;  %v6691_v53 = vshrl.u32 %v601_v46, 7  ;;  %v5366_v46 = vld [vmem:[%s7757_s1 + $0x1044] ss:$16 sps:$4 sm:$0xff]  }
  0xcf   :  { %3817 = vmatpush1.bf16.msra.mxu0 %v5252_v54  ;;  %v5326_v54 = vld [vmem:[%s7757_s1 + $0xd04] ss:$16 sps:$4 sm:$0xff]  }
  0xd0   :  { %3858 = vmatpush1.bf16.msra.mxu1 %v5255_v55  ;;  %3818 = vmatprep.subr.bf16.mxu0 %v5260_v56  ;;  %v5329_v55 = vld [vmem:[%s7757_s1 + $0xf04] ss:$16 sps:$4 sm:$0xff]   ;;  %v5324_v56 = vld [vmem:[%s7757_s1 + $0xd00] ss:$16 sps:$4 sm:$0xff]  }
  0xd1   :  { %3859 = vmatprep.subr.bf16.mxu1 %v5263_v57  ;;  %v5327_v57 = vld [vmem:[%s7757_s1 + $0xf00] ss:$16 sps:$4 sm:$0xff]  }
  0xd3   :  { %3819 = vmatpush1.bf16.msra.mxu0 %v5258_v58  ;;  %v599_v58 = vld [vmem:[%s7759_s2] sm:$0xf] }
  0xd4   :  { %3860 = vmatpush1.bf16.msra.mxu1 %v5261_v59  ;;  %3820 = vmatprep.subr.bf16.mxu0 %v5266_v60  ;;  %v603_v59 = vsub.s32 0, %v6691_v53  ;;  %v5336_v60 = vld [vmem:[%s7757_s1 + $0x10e4] ss:$16 sps:$4 sm:$0xff]  }
  0xd5   :  { %3861 = vmatprep.subr.bf16.mxu1 %v5269_v61  ;;  %v5339_v61 = vld [vmem:[%s7757_s1 + $0xec] ss:$16 sps:$4 sm:$0xff]  }
  0xd7   :  { %3821 = vmatpush1.bf16.msra.mxu0 %v5264_v62  ;;  %v607_v62 = vsub.s32 1, %v6691_v53 }
  0xd8   :  { %3862 = vmatpush1.bf16.msra.mxu1 %v5267_v63  ;;  %3822 = vmatprep.subr.bf16.mxu0 %v5272_v0  ;;  %v6718_v63 = vcombine.low %v6493_v35, %v6493_v35  ;;  %v6722_v0 = vcombine.low %v6506_v40, %v6506_v40  ;;  %v5337_v35 = vld [vmem:[%s7757_s1 + $0xe8] ss:$16 sps:$4 sm:$0xff]   ;;  %v5342_v40 = vld [vmem:[%s7757_s1 + $0x10c4] ss:$16 sps:$4 sm:$0xff]  }
  0xd9   :  { %3863 = vmatprep.subr.bf16.mxu1 %v5275_v1  ;;  %v6727_v1 = vld [vmem:[%s7758_s0 + $0x40] sm:$0xff] }
  0xdb   :  { %3823 = vmatpush1.bf16.msra.mxu0 %v5270_v2  ;;  %v604_v2 = vrot.slane %v599_v58, %v603_v59  ;;  %v5376_v59 = vld [vmem:[%s7757_s1 + $0x1000] ss:$16 sps:$4 sm:$0xff]  }
  0xdc   :  { %3864 = vmatpush1.bf16.msra.mxu1 %v5273_v3  ;;  %3824 = vmatprep.subr.bf16.mxu0 %v5278_v4  ;;  %v5334_v3 = vld [vmem:[%s7757_s1 + $0x10e0] ss:$16 sps:$4 sm:$0xff]   ;;  %v5345_v4 = vld [vmem:[%s7757_s1 + $0xcc] ss:$16 sps:$4 sm:$0xff]  }
  0xdd   :  { %3865 = vmatprep.subr.bf16.mxu1 %v5281_v5  ;;  %v608_v5 = vrot.slane %v599_v58, %v607_v62  ;;  %v5381_v58 = vld [vmem:[%s7757_s1 + $0xc] ss:$16 sps:$4 sm:$0xff]  }
  0xde   :  { %v5387_v62 = vld [vmem:[%s7757_s1 + $0x1ec] ss:$16 sps:$4 sm:$0xff]  }
  0xdf   :  { %3825 = vmatpush1.bf16.msra.mxu0 %v5276_v8  ;;  %v6743_v8 = vcombine.high %v6727_v1, %v6727_v1 }
  0xe0   :  { %3866 = vmatpush1.bf16.msra.mxu1 %v5279_v9  ;;  %3826 = vmatprep.subr.bf16.mxu0 %v5284_v10 }
  0xe1   :  { %3867 = vmatprep.subr.bf16.mxu1 %v5287_v11 }
  0xe3   :  { %3827 = vmatpush2.bf16.msra.mxu0 %v5282_v12  ;;  %v5340_v12 = vld [vmem:[%s7757_s1 + $0x10c0] ss:$16 sps:$4 sm:$0xff]  }
  0xe4   :  { %3868 = vmatpush2.bf16.msra.mxu1 %v5285_v13  ;;  %3828 = vmatprep.subr.bf16.mxu0 %v5290_v14  ;;  %v5343_v13 = vld [vmem:[%s7757_s1 + $0xc8] ss:$16 sps:$4 sm:$0xff]  }
  0xe5   :  { %3869 = vmatprep.subr.bf16.mxu1 %v5293_v15 }
  0xe7   :  { %3829 = vmatpush2.bf16.msra.mxu0 %v5288_v18  ;;  %v5348_v18 = vld [vmem:[%s7757_s1 + $0x10a4] ss:$16 sps:$4 sm:$0xff]  }
  0xe8   :  { %3870 = vmatpush2.bf16.msra.mxu1 %v5291_v19  ;;  %3830 = vmatprep.subr.bf16.mxu0 %v5296_v20  ;;  %v5351_v19 = vld [vmem:[%s7757_s1 + $0xac] ss:$16 sps:$4 sm:$0xff]  }
  0xe9   :  { %3871 = vmatprep.subr.bf16.mxu1 %v5299_v21 }
  0xeb   :  { %3831 = vmatpush2.bf16.msra.mxu0 %v5294_v26 }
  0xec   :  { %3872 = vmatpush2.bf16.msra.mxu1 %v5297_v27  ;;  %3832 = vmatprep.subr.bf16.mxu0 %v5302_v28 }
  0xed   :  { %3873 = vmatprep.subr.bf16.mxu1 %v5305_v29  ;;  %v5346_v29 = vld [vmem:[%s7757_s1 + $0x10a0] ss:$16 sps:$4 sm:$0xff]  }
  0xef   :  { %3833 = vmatpush2.bf16.msra.mxu0 %v5300_v30  ;;  %v5349_v30 = vld [vmem:[%s7757_s1 + $0xa8] ss:$16 sps:$4 sm:$0xff]  }
  0xf0   :  { %3874 = vmatpush2.bf16.msra.mxu1 %v5303_v31  ;;  %3834 = vmatprep.subr.bf16.mxu0 %v5308_v32 }
  0xf1   :  { %3875 = vmatprep.subr.bf16.mxu1 %v5311_v33  ;;  %v5357_v33 = vld [vmem:[%s7757_s1 + $0x8c] ss:$16 sps:$4 sm:$0xff]  }
  0xf3   :  { %3835 = vmatpush2.bf16.msra.mxu0 %v5306_v34  ;;  %v5352_v34 = vld [vmem:[%s7757_s1 + $0x1080] ss:$16 sps:$4 sm:$0xff]  }
  0xf4   :  { %3876 = vmatpush2.bf16.msra.mxu1 %v5309_v41  ;;  %3836 = vmatprep.subr.bf16.mxu0 %v5314_v22  ;;  %v5355_v41 = vld [vmem:[%s7757_s1 + $0x88] ss:$16 sps:$4 sm:$0xff]   ;;  %v5360_v22 = vld [vmem:[%s7757_s1 + $0x1064] ss:$16 sps:$4 sm:$0xff]  }
  0xf5   :  { %3877 = vmatprep.subr.bf16.mxu1 %v5317_v23  ;;  %v5363_v23 = vld [vmem:[%s7757_s1 + $0x6c] ss:$16 sps:$4 sm:$0xff]  }
  0xf7   :  { %3837 = vmatpush2.bf16.msra.mxu0 %v5312_v44  ;;  %v5358_v44 = vld [vmem:[%s7757_s1 + $0x1060] ss:$16 sps:$4 sm:$0xff]  }
  0xf8   :  { %3878 = vmatpush2.bf16.msra.mxu1 %v5315_v45  ;;  %3838 = vmatprep.subr.bf16.mxu0 %v5320_v48  ;;  %v5361_v45 = vld [vmem:[%s7757_s1 + $0x68] ss:$16 sps:$4 sm:$0xff]   ;;  %v5369_v48 = vld [vmem:[%s7757_s1 + $0x4c] ss:$16 sps:$4 sm:$0xff]  }
  0xf9   :  { %3879 = vmatprep.subr.bf16.mxu1 %v5323_v49  ;;  %v5364_v49 = vld [vmem:[%s7757_s1 + $0x1040] ss:$16 sps:$4 sm:$0xff]  }
  0xfb   :  { %3839 = vmatpush2.bf16.msra.mxu0 %v5318_v50  ;;  %v5367_v50 = vld [vmem:[%s7757_s1 + $0x48] ss:$16 sps:$4 sm:$0xff]  }
  0xfc   :  { %3880 = vmatpush2.bf16.msra.mxu1 %v5321_v52  ;;  %3840 = vmatprep.subr.bf16.mxu0 %v5326_v54  ;;  %v5372_v52 = vld [vmem:[%s7757_s1 + $0x1024] ss:$16 sps:$4 sm:$0xff]   ;;  %v5375_v54 = vld [vmem:[%s7757_s1 + $0x2c] ss:$16 sps:$4 sm:$0xff]  }
  0xfd   :  { %3881 = vmatprep.subr.bf16.mxu1 %v5329_v55  ;;  %v5370_v55 = vld [vmem:[%s7757_s1 + $0x1020] ss:$16 sps:$4 sm:$0xff]  }
  0xff   :  { %3841 = vmatpush2.bf16.msra.mxu0 %v5324_v56  ;;  %v5373_v56 = vld [vmem:[%s7757_s1 + $0x28] ss:$16 sps:$4 sm:$0xff]  }
 0x100   :  { %3882 = vmatpush2.bf16.msra.mxu1 %v5327_v57  ;;  %3892 = vmatprep.subr.bf16.mxu0 %v5336_v60  ;;  %v5378_v57 = vld [vmem:[%s7757_s1 + $0x1004] ss:$16 sps:$4 sm:$0xff]   ;;  %v5379_v60 = vld [vmem:[%s7757_s1 + $0x8] ss:$16 sps:$4 sm:$0xff]  }
 0x101   :  { %3933 = vmatprep.subr.bf16.mxu1 %v5339_v61  ;;  %v5384_v61 = vld [vmem:[%s7757_s1 + $0x11e4] ss:$16 sps:$4 sm:$0xff]  }
 0x102   :  { %v3598_v9 = vpop.f32.mrf.mxu0  ;;  %3843 = vmatmul.mubr.bf16.vlgmr.msra.gmra.mxu0 %v6718_v63 }
 0x103   :  { %v3639_v10 = vpop.f32.mrf.mxu1  ;;  %3884 = vmatmul.mubr.bf16.vlgmr.msra.gmra.mxu1 %v6722_v0  ;;  %v3599_v11 = vadd.f32 %v3598_v9, %v604_v2  ;;  %3893 = vmatpush1.bf16.msra.mxu0 %v5334_v3  ;;  %v5382_v2 = vld [vmem:[%s7757_s1 + $0x11e0] ss:$16 sps:$4 sm:$0xff]   ;;  %v5385_v3 = vld [vmem:[%s7757_s1 + $0x1e8] ss:$16 sps:$4 sm:$0xff]   ;;  %v5396_v9 = vld [vmem:[%s7757_s1 + $0x11a4] ss:$16 sps:$4 sm:$0xff]  }
 0x104   :  { %3934 = vmatpush1.bf16.msra.mxu1 %v5337_v35  ;;  %v3600_v14 = vpop.f32.mrf.mxu0  ;;  %3894 = vmatprep.subr.bf16.mxu0 %v5342_v40  ;;  %v5390_v35 = vld [vmem:[%s7757_s1 + $0x11c4] ss:$16 sps:$4 sm:$0xff]   ;;  %v5393_v40 = vld [vmem:[%s7757_s1 + $0x1cc] ss:$16 sps:$4 sm:$0xff]  }
 0x105   :  { %v3641_v15 = vpop.f32.mrf.mxu1  ;;  %3935 = vmatprep.subr.bf16.mxu1 %v5345_v4  ;;  %v6759_v20 = vadd.f32 %v3639_v10, %v3599_v11  ;;  %v3601_v21 = vadd.f32 %v3600_v14, %v608_v5  ;;  %3924 = vmatprep.mubr.bf16.mxu0 %v6743_v8  ;;  %v5388_v4 = vld [vmem:[%s7757_s1 + $0x11c0] ss:$16 sps:$4 sm:$0xff]   ;;  %v5391_v5 = vld [vmem:[%s7757_s1 + $0x1c8] ss:$16 sps:$4 sm:$0xff]   ;;  %v5399_v10 = vld [vmem:[%s7757_s1 + $0x1ac] ss:$16 sps:$4 sm:$0xff]  }
 0x106   :  { %3965 = vmatprep.mubr.bf16.mxu1 %v5978_v47  ;;  %v3602_v26 = vpop.f32.mrf.mxu0  ;;  %v5354_v47 = vld [vmem:[%s7757_s1 + $0x1084] ss:$16 sps:$4 sm:$0xff]   ;;  %v5394_v11 = vld [vmem:[%s7757_s1 + $0x11a0] ss:$16 sps:$4 sm:$0xff]   ;;  %v5405_v14 = vld [vmem:[%s7757_s1 + $0x18c] ss:$16 sps:$4 sm:$0xff]  }
 0x107   :  { %v3643_v27 = vpop.f32.mrf.mxu1  ;;  %v6763_v28 = vadd.f32 %v3641_v15, %v3601_v21  ;;  %3895 = vmatpush1.bf16.msra.mxu0 %v5340_v12  ;;  %v5397_v12 = vld [vmem:[%s7757_s1 + $0x1a8] ss:$16 sps:$4 sm:$0xff]   ;;  %v5400_v15 = vld [vmem:[%s7757_s1 + $0x1180] ss:$16 sps:$4 sm:$0xff]   ;;  %v5411_v21 = vld [vmem:[%s7757_s1 + $0x16c] ss:$16 sps:$4 sm:$0xff]  }
 0x108   :  { %3936 = vmatpush1.bf16.msra.mxu1 %v5343_v13  ;;  %v3603_v31 = vpop.f32.mrf.mxu0  ;;  %3896 = vmatprep.subr.bf16.mxu0 %v5348_v18  ;;  %v5402_v13 = vld [vmem:[%s7757_s1 + $0x1184] ss:$16 sps:$4 sm:$0xff]   ;;  %v5403_v18 = vld [vmem:[%s7757_s1 + $0x188] ss:$16 sps:$4 sm:$0xff]   ;;  %v5406_v26 = vld [vmem:[%s7757_s1 + $0x1160] ss:$16 sps:$4 sm:$0xff]  }
 0x109   :  { %v3644_v32 = vpop.f32.mrf.mxu1  ;;  %3937 = vmatprep.subr.bf16.mxu1 %v5351_v19  ;;  %v5408_v19 = vld [vmem:[%s7757_s1 + $0x1164] ss:$16 sps:$4 sm:$0xff]   ;;  %v5409_v27 = vld [vmem:[%s7757_s1 + $0x168] ss:$16 sps:$4 sm:$0xff]   ;;  %v5412_v31 = vld [vmem:[%s7757_s1 + $0x1140] ss:$16 sps:$4 sm:$0xff]  }
 0x10a   :  { %v5415_v32 = vld [vmem:[%s7757_s1 + $0x148] ss:$16 sps:$4 sm:$0xff]  }
 0x10b   :  { %3897 = vmatpush1.bf16.msra.mxu0 %v5346_v29  ;;  %v5414_v29 = vld [vmem:[%s7757_s1 + $0x1144] ss:$16 sps:$4 sm:$0xff]  }
 0x10c   :  { %3938 = vmatpush1.bf16.msra.mxu1 %v5349_v30  ;;  %3898 = vmatprep.subr.bf16.mxu0 %v5354_v47  ;;  %v5417_v30 = vld [vmem:[%s7757_s1 + $0x14c] ss:$16 sps:$4 sm:$0xff]   ;;  %v5420_v47 = vld [vmem:[%s7757_s1 + $0x1124] ss:$16 sps:$4 sm:$0xff]  }
 0x10d   :  { %3939 = vmatprep.subr.bf16.mxu1 %v5357_v33  ;;  %v5423_v33 = vld [vmem:[%s7757_s1 + $0x12c] ss:$16 sps:$4 sm:$0xff]  }
 0x10f   :  { %3899 = vmatpush1.bf16.msra.mxu0 %v5352_v34  ;;  %v5418_v34 = vld [vmem:[%s7757_s1 + $0x1120] ss:$16 sps:$4 sm:$0xff]  }
 0x110   :  { %3940 = vmatpush1.bf16.msra.mxu1 %v5355_v41  ;;  %3900 = vmatprep.subr.bf16.mxu0 %v5360_v22  ;;  %v5421_v41 = vld [vmem:[%s7757_s1 + $0x128] ss:$16 sps:$4 sm:$0xff]   ;;  %v5426_v22 = vld [vmem:[%s7757_s1 + $0x1104] ss:$16 sps:$4 sm:$0xff]  }
 0x111   :  { %3941 = vmatprep.subr.bf16.mxu1 %v5363_v23  ;;  %v5429_v23 = vld [vmem:[%s7757_s1 + $0x10c] ss:$16 sps:$4 sm:$0xff]  }
 0x113   :  { %3901 = vmatpush1.bf16.msra.mxu0 %v5358_v44  ;;  %v5424_v44 = vld [vmem:[%s7757_s1 + $0x1100] ss:$16 sps:$4 sm:$0xff]  }
 0x114   :  { %3942 = vmatpush1.bf16.msra.mxu1 %v5361_v45  ;;  %3902 = vmatprep.subr.bf16.mxu0 %v5366_v46  ;;  %v5427_v45 = vld [vmem:[%s7757_s1 + $0x108] ss:$16 sps:$4 sm:$0xff]   ;;  %v5434_v46 = vld [vmem:[%s7757_s1 + $0x2ec] ss:$16 sps:$4 sm:$0xff]  }
 0x115   :  { %3943 = vmatprep.subr.bf16.mxu1 %v5369_v48  ;;  %v5437_v48 = vld [vmem:[%s7757_s1 + $0x4ec] ss:$16 sps:$4 sm:$0xff]  }
 0x117   :  { %3903 = vmatpush1.bf16.msra.mxu0 %v5364_v49  ;;  %v5432_v49 = vld [vmem:[%s7757_s1 + $0x2e8] ss:$16 sps:$4 sm:$0xff]  }
 0x118   :  { %3944 = vmatpush1.bf16.msra.mxu1 %v5367_v50  ;;  %3904 = vmatprep.subr.bf16.mxu0 %v5372_v52  ;;  %v5435_v50 = vld [vmem:[%s7757_s1 + $0x4e8] ss:$16 sps:$4 sm:$0xff]   ;;  %v6941_v52 = vcombine.low %v6727_v1, %v6727_v1 }
 0x119   :  { %3945 = vmatprep.subr.bf16.mxu1 %v5375_v54  ;;  %v5440_v54 = vld [vmem:[%s7757_s1 + $0x2cc] ss:$16 sps:$4 sm:$0xff]   ;;  %v5441_v1 = vld [vmem:[%s7757_s1 + $0x4c8] ss:$16 sps:$4 sm:$0xff]  }
 0x11b   :  { %3905 = vmatpush1.bf16.msra.mxu0 %v5370_v55  ;;  %v5443_v55 = vld [vmem:[%s7757_s1 + $0x4cc] ss:$16 sps:$4 sm:$0xff]  }
 0x11c   :  { %3946 = vmatpush1.bf16.msra.mxu1 %v5373_v56  ;;  %3906 = vmatprep.subr.bf16.mxu0 %v5378_v57  ;;  %v5438_v56 = vld [vmem:[%s7757_s1 + $0x2c8] ss:$16 sps:$4 sm:$0xff]  }
 0x11d   :  { %3947 = vmatprep.subr.bf16.mxu1 %v5381_v58 }
 0x11f   :  { %3907 = vmatpush1.bf16.msra.mxu0 %v5376_v59 }
 0x120   :  { %3948 = vmatpush1.bf16.msra.mxu1 %v5379_v60  ;;  %3908 = vmatprep.subr.bf16.mxu0 %v5384_v61 }
 0x121   :  { %3949 = vmatprep.subr.bf16.mxu1 %v5387_v62  ;;  %v5446_v62 = vld [vmem:[%s7757_s1 + $0x2ac] ss:$16 sps:$4 sm:$0xff]  }
 0x123   :  { %3909 = vmatpush2.bf16.msra.mxu0 %v5382_v2  ;;  %v5449_v2 = vld [vmem:[%s7757_s1 + $0x4ac] ss:$16 sps:$4 sm:$0xff]  }
 0x124   :  { %3950 = vmatpush2.bf16.msra.mxu1 %v5385_v3  ;;  %3910 = vmatprep.subr.bf16.mxu0 %v5390_v35  ;;  %v5447_v35 = vld [vmem:[%s7757_s1 + $0x4a8] ss:$16 sps:$4 sm:$0xff]  }
 0x125   :  { %3951 = vmatprep.subr.bf16.mxu1 %v5393_v40 }
 0x127   :  { %3911 = vmatpush2.bf16.msra.mxu0 %v5388_v4 }
 0x128   :  { %3952 = vmatpush2.bf16.msra.mxu1 %v5391_v5  ;;  %3912 = vmatprep.subr.bf16.mxu0 %v5396_v9 }
 0x129   :  { %3953 = vmatprep.subr.bf16.mxu1 %v5399_v10  ;;  %v5452_v10 = vld [vmem:[%s7757_s1 + $0x28c] ss:$16 sps:$4 sm:$0xff]  }
 0x12b   :  { %3913 = vmatpush2.bf16.msra.mxu0 %v5394_v11  ;;  %v5453_v11 = vld [vmem:[%s7757_s1 + $0x488] ss:$16 sps:$4 sm:$0xff]  }
 0x12c   :  { %3954 = vmatpush2.bf16.msra.mxu1 %v5397_v12  ;;  %3914 = vmatprep.subr.bf16.mxu0 %v5402_v13  ;;  %v5458_v12 = vld [vmem:[%s7757_s1 + $0x26c] ss:$16 sps:$4 sm:$0xff]  }
 0x12d   :  { %3955 = vmatprep.subr.bf16.mxu1 %v5405_v14  ;;  %v5461_v13 = vld [vmem:[%s7757_s1 + $0x46c] ss:$16 sps:$4 sm:$0xff]   ;;  %v5456_v14 = vld [vmem:[%s7757_s1 + $0x268] ss:$16 sps:$4 sm:$0xff]  }
 0x12f   :  { %3915 = vmatpush2.bf16.msra.mxu0 %v5400_v15  ;;  %v5459_v15 = vld [vmem:[%s7757_s1 + $0x468] ss:$16 sps:$4 sm:$0xff]  }
 0x130   :  { %3956 = vmatpush2.bf16.msra.mxu1 %v5403_v18  ;;  %3916 = vmatprep.subr.bf16.mxu0 %v5408_v19  ;;  %v5464_v18 = vld [vmem:[%s7757_s1 + $0x24c] ss:$16 sps:$4 sm:$0xff]  }
 0x131   :  { %3957 = vmatprep.subr.bf16.mxu1 %v5411_v21  ;;  %v5467_v19 = vld [vmem:[%s7757_s1 + $0x44c] ss:$16 sps:$4 sm:$0xff]   ;;  %v5462_v21 = vld [vmem:[%s7757_s1 + $0x248] ss:$16 sps:$4 sm:$0xff]  }
 0x133   :  { %3917 = vmatpush2.bf16.msra.mxu0 %v5406_v26  ;;  %v5465_v26 = vld [vmem:[%s7757_s1 + $0x448] ss:$16 sps:$4 sm:$0xff]  }
 0x134   :  { %3958 = vmatpush2.bf16.msra.mxu1 %v5409_v27  ;;  %3918 = vmatprep.subr.bf16.mxu0 %v5414_v29  ;;  %v5470_v27 = vld [vmem:[%s7757_s1 + $0x22c] ss:$16 sps:$4 sm:$0xff]  }
 0x135   :  { %3959 = vmatprep.subr.bf16.mxu1 %v5417_v30  ;;  %v5473_v29 = vld [vmem:[%s7757_s1 + $0x42c] ss:$16 sps:$4 sm:$0xff]   ;;  %v5468_v30 = vld [vmem:[%s7757_s1 + $0x228] ss:$16 sps:$4 sm:$0xff]  }
 0x137   :  { %3919 = vmatpush2.bf16.msra.mxu0 %v5412_v31  ;;  %v5471_v31 = vld [vmem:[%s7757_s1 + $0x428] ss:$16 sps:$4 sm:$0xff]  }
 0x138   :  { %3960 = vmatpush2.bf16.msra.mxu1 %v5415_v32  ;;  %3920 = vmatprep.subr.bf16.mxu0 %v5420_v47  ;;  %v5476_v32 = vld [vmem:[%s7757_s1 + $0x20c] ss:$16 sps:$4 sm:$0xff]  }
 0x139   :  { %3961 = vmatprep.subr.bf16.mxu1 %v5423_v33  ;;  %v5479_v47 = vld [vmem:[%s7757_s1 + $0x40c] ss:$16 sps:$4 sm:$0xff]   ;;  %v5474_v33 = vld [vmem:[%s7757_s1 + $0x208] ss:$16 sps:$4 sm:$0xff]  }
 0x13b   :  { %3921 = vmatpush2.bf16.msra.mxu0 %v5418_v34  ;;  %v5477_v34 = vld [vmem:[%s7757_s1 + $0x408] ss:$16 sps:$4 sm:$0xff]  }
 0x13c   :  { %3962 = vmatpush2.bf16.msra.mxu1 %v5421_v41  ;;  %3922 = vmatprep.subr.bf16.mxu0 %v5426_v22  ;;  %v5482_v41 = vld [vmem:[%s7757_s1 + $0x3ec] ss:$16 sps:$4 sm:$0xff]  }
 0x13d   :  { %3963 = vmatprep.subr.bf16.mxu1 %v5429_v23  ;;  %v5485_v22 = vld [vmem:[%s7757_s1 + $0x5ec] ss:$16 sps:$4 sm:$0xff]   ;;  %v5480_v23 = vld [vmem:[%s7757_s1 + $0x3e8] ss:$16 sps:$4 sm:$0xff]  }
 0x13f   :  { %3923 = vmatpush2.bf16.msra.mxu0 %v5424_v44  ;;  %v5483_v44 = vld [vmem:[%s7757_s1 + $0x5e8] ss:$16 sps:$4 sm:$0xff]  }
 0x140   :  { %3964 = vmatpush2.bf16.msra.mxu1 %v5427_v45  ;;  %3974 = vmatprep.subr.bf16.mxu0 %v5434_v46  ;;  %v5488_v45 = vld [vmem:[%s7757_s1 + $0x3cc] ss:$16 sps:$4 sm:$0xff]  }
 0x141   :  { %4015 = vmatprep.subr.bf16.mxu1 %v5437_v48  ;;  %v5491_v46 = vld [vmem:[%s7757_s1 + $0x5cc] ss:$16 sps:$4 sm:$0xff]   ;;  %v5486_v48 = vld [vmem:[%s7757_s1 + $0x3c8] ss:$16 sps:$4 sm:$0xff]  }
 0x142   :  { %v3680_v57 = vpop.f32.mrf.mxu0  ;;  %3925 = vmatmul.mubr.bf16.vlgmr.msra.gmra.mxu0 %v6941_v52 }
 0x143   :  { %v3721_v58 = vpop.f32.mrf.mxu1  ;;  %3966 = vmatmul.mubr.bf16.vlgmr.msra.gmra.mxu1 %v6047_v6  ;;  %v3681_v59 = vadd.f32 %v3680_v57, %v6759_v20  ;;  %3975 = vmatpush1.bf16.msra.mxu0 %v5432_v49  ;;  %v5444_v20 = vld [vmem:[%s7757_s1 + $0x2a8] ss:$16 sps:$4 sm:$0xff]   ;;  %v5503_v57 = vld [vmem:[%s7757_s1 + $0x58c] ss:$16 sps:$4 sm:$0xff]  }
 0x144   :  { %4016 = vmatpush1.bf16.msra.mxu1 %v5435_v50  ;;  %v3682_v60 = vpop.f32.mrf.mxu0  ;;  %3976 = vmatprep.subr.bf16.mxu0 %v5440_v54  ;;  %v5489_v49 = vld [vmem:[%s7757_s1 + $0x5c8] ss:$16 sps:$4 sm:$0xff]   ;;  %v5494_v50 = vld [vmem:[%s7757_s1 + $0x3ac] ss:$16 sps:$4 sm:$0xff]  }
 0x145   :  { %v3723_v61 = vpop.f32.mrf.mxu1  ;;  %4017 = vmatprep.subr.bf16.mxu1 %v5443_v55  ;;  %v6964_v3 = vadd.f32 %v3721_v58, %v3681_v59  ;;  %v3683_v6 = vadd.f32 %v3682_v60, %v6763_v28  ;;  %4006 = vmatprep.mubr.bf16.mxu0 %v5989_v51  ;;  %v5455_v51 = vld [vmem:[%s7757_s1 + $0x48c] ss:$16 sps:$4 sm:$0xff]   ;;  %v5492_v55 = vld [vmem:[%s7757_s1 + $0x3a8] ss:$16 sps:$4 sm:$0xff]  }
 0x146   :  { %4047 = vmatprep.mubr.bf16.mxu1 %v6143_v36  ;;  %v3684_v40 = vpop.f32.mrf.mxu0  ;;  %v5450_v36 = vld [vmem:[%s7757_s1 + $0x288] ss:$16 sps:$4 sm:$0xff]   ;;  %v5497_v54 = vld [vmem:[%s7757_s1 + $0x5ac] ss:$16 sps:$4 sm:$0xff]  }
 0x147   :  { %v3725_v4 = vpop.f32.mrf.mxu1  ;;  %v6975_v5 = vadd.f32 %v3723_v61, %v3683_v6  ;;  %3977 = vmatpush1.bf16.msra.mxu0 %v5438_v56  ;;  %v5495_v56 = vld [vmem:[%s7757_s1 + $0x5a8] ss:$16 sps:$4 sm:$0xff]   ;;  %v5506_v60 = vld [vmem:[%s7757_s1 + $0x36c] ss:$16 sps:$4 sm:$0xff]  }
 0x148   :  { %4018 = vmatpush1.bf16.msra.mxu1 %v5441_v1  ;;  %v3685_v9 = vpop.f32.mrf.mxu0  ;;  %3978 = vmatprep.subr.bf16.mxu0 %v5446_v62  ;;  %v5500_v1 = vld [vmem:[%s7757_s1 + $0x38c] ss:$16 sps:$4 sm:$0xff]   ;;  %v5498_v58 = vld [vmem:[%s7757_s1 + $0x388] ss:$16 sps:$4 sm:$0xff]  }
 0x149   :  { %v3726_v28 = vpop.f32.mrf.mxu1  ;;  %4019 = vmatprep.subr.bf16.mxu1 %v5449_v2  ;;  %v5501_v59 = vld [vmem:[%s7757_s1 + $0x588] ss:$16 sps:$4 sm:$0xff]   ;;  %v5509_v61 = vld [vmem:[%s7757_s1 + $0x56c] ss:$16 sps:$4 sm:$0xff]  }
 0x14a   :  { %v5504_v62 = vld [vmem:[%s7757_s1 + $0x368] ss:$16 sps:$4 sm:$0xff]   ;;  %v5512_v6 = vld [vmem:[%s7757_s1 + $0x34c] ss:$16 sps:$4 sm:$0xff]  }
 0x14b   :  { %3979 = vmatpush1.bf16.msra.mxu0 %v5444_v20  ;;  %v5507_v2 = vld [vmem:[%s7757_s1 + $0x568] ss:$16 sps:$4 sm:$0xff]   ;;  %v5515_v20 = vld [vmem:[%s7757_s1 + $0x54c] ss:$16 sps:$4 sm:$0xff]  }
 0x14c   :  { %4020 = vmatpush1.bf16.msra.mxu1 %v5447_v35  ;;  %3980 = vmatprep.subr.bf16.mxu0 %v5452_v10  ;;  %v5510_v35 = vld [vmem:[%s7757_s1 + $0x348] ss:$16 sps:$4 sm:$0xff]   ;;  %v5518_v4 = vld [vmem:[%s7757_s1 + $0x32c] ss:$16 sps:$4 sm:$0xff]  }
 0x14d   :  { %4021 = vmatprep.subr.bf16.mxu1 %v5455_v51  ;;  %v5513_v40 = vld [vmem:[%s7757_s1 + $0x548] ss:$16 sps:$4 sm:$0xff]   ;;  %v5521_v9 = vld [vmem:[%s7757_s1 + $0x52c] ss:$16 sps:$4 sm:$0xff]  }
 0x14e   :  { %v5516_v28 = vld [vmem:[%s7757_s1 + $0x328] ss:$16 sps:$4 sm:$0xff]   ;;  %v5524_v51 = vld [vmem:[%s7757_s1 + $0x30c] ss:$16 sps:$4 sm:$0xff]  }
 0x14f   :  { %3981 = vmatpush1.bf16.msra.mxu0 %v5450_v36  ;;  %v5519_v10 = vld [vmem:[%s7757_s1 + $0x528] ss:$16 sps:$4 sm:$0xff]   ;;  %v5527_v36 = vld [vmem:[%s7757_s1 + $0x50c] ss:$16 sps:$4 sm:$0xff]  }
 0x150   :  { %4022 = vmatpush1.bf16.msra.mxu1 %v5453_v11  ;;  %3982 = vmatprep.subr.bf16.mxu0 %v5458_v12  ;;  %v5522_v11 = vld [vmem:[%s7757_s1 + $0x308] ss:$16 sps:$4 sm:$0xff]  }
 0x151   :  { %4023 = vmatprep.subr.bf16.mxu1 %v5461_v13  ;;  %v5525_v12 = vld [vmem:[%s7757_s1 + $0x508] ss:$16 sps:$4 sm:$0xff]   ;;  %v5530_v13 = vld [vmem:[%s7757_s1 + $0x6ec] ss:$16 sps:$4 sm:$0xff]  }
 0x153   :  { %3983 = vmatpush1.bf16.msra.mxu0 %v5456_v14  ;;  %v5533_v14 = vld [vmem:[%s7757_s1 + $0x8ec] ss:$16 sps:$4 sm:$0xff]  }
 0x154   :  { %4024 = vmatpush1.bf16.msra.mxu1 %v5459_v15  ;;  %3984 = vmatprep.subr.bf16.mxu0 %v5464_v18  ;;  %v5528_v15 = vld [vmem:[%s7757_s1 + $0x6e8] ss:$16 sps:$4 sm:$0xff]  }
 0x155   :  { %4025 = vmatprep.subr.bf16.mxu1 %v5467_v19  ;;  %v5531_v18 = vld [vmem:[%s7757_s1 + $0x8e8] ss:$16 sps:$4 sm:$0xff]   ;;  %v5536_v19 = vld [vmem:[%s7757_s1 + $0x6cc] ss:$16 sps:$4 sm:$0xff]  }
 0x157   :  { %3985 = vmatpush1.bf16.msra.mxu0 %v5462_v21  ;;  %v5539_v21 = vld [vmem:[%s7757_s1 + $0x8cc] ss:$16 sps:$4 sm:$0xff]  }
 0x158   :  { %4026 = vmatpush1.bf16.msra.mxu1 %v5465_v26  ;;  %3986 = vmatprep.subr.bf16.mxu0 %v5470_v27 }
 0x159   :  { %4027 = vmatprep.subr.bf16.mxu1 %v5473_v29 }
 0x15b   :  { %3987 = vmatpush1.bf16.msra.mxu0 %v5468_v30  ;;  %v5534_v30 = vld [vmem:[%s7757_s1 + $0x6c8] ss:$16 sps:$4 sm:$0xff]  }
 0x15c   :  { %4028 = vmatpush1.bf16.msra.mxu1 %v5471_v31  ;;  %3988 = vmatprep.subr.bf16.mxu0 %v5476_v32  ;;  %v5537_v31 = vld [vmem:[%s7757_s1 + $0x8c8] ss:$16 sps:$4 sm:$0xff]  }
 0x15d   :  { %4029 = vmatprep.subr.bf16.mxu1 %v5479_v47 }
 0x15f   :  { %3989 = vmatpush1.bf16.msra.mxu0 %v5474_v33 }
 0x160   :  { %4030 = vmatpush1.bf16.msra.mxu1 %v5477_v34  ;;  %3990 = vmatprep.subr.bf16.mxu0 %v5482_v41 }
 0x161   :  { %4031 = vmatprep.subr.bf16.mxu1 %v5485_v22 }
 0x163   :  { %3991 = vmatpush2.bf16.msra.mxu0 %v5480_v23  ;;  %v5540_v23 = vld [vmem:[%s7757_s1 + $0x6a8] ss:$16 sps:$4 sm:$0xff]  }
 0x164   :  { %4032 = vmatpush2.bf16.msra.mxu1 %v5483_v44  ;;  %3992 = vmatprep.subr.bf16.mxu0 %v5488_v45  ;;  %v5543_v44 = vld [vmem:[%s7757_s1 + $0x8a8] ss:$16 sps:$4 sm:$0xff]  }
 0x165   :  { %4033 = vmatprep.subr.bf16.mxu1 %v5491_v46  ;;  %v5546_v46 = vld [vmem:[%s7757_s1 + $0x688] ss:$16 sps:$4 sm:$0xff]  }
 0x167   :  { %3993 = vmatpush2.bf16.msra.mxu0 %v5486_v48  ;;  %v5549_v48 = vld [vmem:[%s7757_s1 + $0x888] ss:$16 sps:$4 sm:$0xff]  }
 0x168   :  { %4034 = vmatpush2.bf16.msra.mxu1 %v5489_v49  ;;  %3994 = vmatprep.subr.bf16.mxu0 %v5494_v50  ;;  %v5554_v49 = vld [vmem:[%s7757_s1 + $0x66c] ss:$16 sps:$4 sm:$0xff]  }
 0x169   :  { %4035 = vmatprep.subr.bf16.mxu1 %v5497_v54  ;;  %v5557_v50 = vld [vmem:[%s7757_s1 + $0x86c] ss:$16 sps:$4 sm:$0xff]   ;;  %v5552_v54 = vld [vmem:[%s7757_s1 + $0x668] ss:$16 sps:$4 sm:$0xff]  }
 0x16b   :  { %3995 = vmatpush2.bf16.msra.mxu0 %v5492_v55  ;;  %v5555_v55 = vld [vmem:[%s7757_s1 + $0x868] ss:$16 sps:$4 sm:$0xff]  }
 0x16c   :  { %4036 = vmatpush2.bf16.msra.mxu1 %v5495_v56  ;;  %3996 = vmatprep.subr.bf16.mxu0 %v5500_v1  ;;  %v5560_v56 = vld [vmem:[%s7757_s1 + $0x64c] ss:$16 sps:$4 sm:$0xff]  }
 0x16d   :  { %4037 = vmatprep.subr.bf16.mxu1 %v5503_v57  ;;  %v5563_v1 = vld [vmem:[%s7757_s1 + $0x84c] ss:$16 sps:$4 sm:$0xff]   ;;  %v5558_v57 = vld [vmem:[%s7757_s1 + $0x648] ss:$16 sps:$4 sm:$0xff]  }
 0x16f   :  { %3997 = vmatpush2.bf16.msra.mxu0 %v5498_v58  ;;  %v5561_v58 = vld [vmem:[%s7757_s1 + $0x848] ss:$16 sps:$4 sm:$0xff]  }
 0x170   :  { %4038 = vmatpush2.bf16.msra.mxu1 %v5501_v59  ;;  %3998 = vmatprep.subr.bf16.mxu0 %v5506_v60  ;;  %v5566_v59 = vld [vmem:[%s7757_s1 + $0x62c] ss:$16 sps:$4 sm:$0xff]  }
 0x171   :  { %4039 = vmatprep.subr.bf16.mxu1 %v5509_v61  ;;  %v5569_v60 = vld [vmem:[%s7757_s1 + $0x82c] ss:$16 sps:$4 sm:$0xff]   ;;  %v5564_v61 = vld [vmem:[%s7757_s1 + $0x628] ss:$16 sps:$4 sm:$0xff]  }
 0x173   :  { %3999 = vmatpush2.bf16.msra.mxu0 %v5504_v62  ;;  %v5567_v62 = vld [vmem:[%s7757_s1 + $0x828] ss:$16 sps:$4 sm:$0xff]  }
 0x174   :  { %4040 = vmatpush2.bf16.msra.mxu1 %v5507_v2  ;;  %4000 = vmatprep.subr.bf16.mxu0 %v5512_v6  ;;  %v5572_v2 = vld [vmem:[%s7757_s1 + $0x60c] ss:$16 sps:$4 sm:$0xff]  }
 0x175   :  { %4041 = vmatprep.subr.bf16.mxu1 %v5515_v20  ;;  %v5575_v6 = vld [vmem:[%s7757_s1 + $0x80c] ss:$16 sps:$4 sm:$0xff]   ;;  %v5570_v20 = vld [vmem:[%s7757_s1 + $0x608] ss:$16 sps:$4 sm:$0xff]  }
 0x177   :  { %4001 = vmatpush2.bf16.msra.mxu0 %v5510_v35  ;;  %v5573_v35 = vld [vmem:[%s7757_s1 + $0x808] ss:$16 sps:$4 sm:$0xff]  }
 0x178   :  { %4042 = vmatpush2.bf16.msra.mxu1 %v5513_v40  ;;  %4002 = vmatprep.subr.bf16.mxu0 %v5518_v4  ;;  %v5578_v40 = vld [vmem:[%s7757_s1 + $0x7ec] ss:$16 sps:$4 sm:$0xff]  }
 0x179   :  { %4043 = vmatprep.subr.bf16.mxu1 %v5521_v9  ;;  %v5581_v4 = vld [vmem:[%s7757_s1 + $0x9ec] ss:$16 sps:$4 sm:$0xff]   ;;  %v5576_v9 = vld [vmem:[%s7757_s1 + $0x7e8] ss:$16 sps:$4 sm:$0xff]  }
 0x17b   :  { %4003 = vmatpush2.bf16.msra.mxu0 %v5516_v28  ;;  %v5579_v28 = vld [vmem:[%s7757_s1 + $0x9e8] ss:$16 sps:$4 sm:$0xff]  }
 0x17c   :  { %4044 = vmatpush2.bf16.msra.mxu1 %v5519_v10  ;;  %4004 = vmatprep.subr.bf16.mxu0 %v5524_v51  ;;  %v5584_v10 = vld [vmem:[%s7757_s1 + $0x7cc] ss:$16 sps:$4 sm:$0xff]  }
 0x17d   :  { %4045 = vmatprep.subr.bf16.mxu1 %v5527_v36  ;;  %v5587_v51 = vld [vmem:[%s7757_s1 + $0x9cc] ss:$16 sps:$4 sm:$0xff]   ;;  %v5582_v36 = vld [vmem:[%s7757_s1 + $0x7c8] ss:$16 sps:$4 sm:$0xff]  }
 0x17f   :  { %4005 = vmatpush2.bf16.msra.mxu0 %v5522_v11  ;;  %v5585_v11 = vld [vmem:[%s7757_s1 + $0x9c8] ss:$16 sps:$4 sm:$0xff]  }
 0x180   :  { %4046 = vmatpush2.bf16.msra.mxu1 %v5525_v12  ;;  %4056 = vmatprep.subr.bf16.mxu0 %v5530_v13  ;;  %v5590_v12 = vld [vmem:[%s7757_s1 + $0x7ac] ss:$16 sps:$4 sm:$0xff]  }
 0x181   :  { %4097 = vmatprep.subr.bf16.mxu1 %v5533_v14  ;;  %v5593_v13 = vld [vmem:[%s7757_s1 + $0x9ac] ss:$16 sps:$4 sm:$0xff]   ;;  %v5588_v14 = vld [vmem:[%s7757_s1 + $0x7a8] ss:$16 sps:$4 sm:$0xff]  }
 0x182   :  { %v3762_v26 = vpop.f32.mrf.mxu0  ;;  %4007 = vmatmul.mubr.bf16.vlgmr.msra.gmra.mxu0 %v6049_v7  ;;  %v5542_v7 = vld [vmem:[%s7757_s1 + $0x6ac] ss:$16 sps:$4 sm:$0xff]  }
 0x183   :  { %v3803_v27 = vpop.f32.mrf.mxu1  ;;  %4048 = vmatmul.mubr.bf16.vlgmr.msra.gmra.mxu1 %v6267_v16  ;;  %v3763_v29 = vadd.f32 %v3762_v26, %v6964_v3  ;;  %4057 = vmatpush1.bf16.msra.mxu0 %v5528_v15  ;;  %v5545_v16 = vld [vmem:[%s7757_s1 + $0x8ac] ss:$16 sps:$4 sm:$0xff]   ;;  %v5591_v15 = vld [vmem:[%s7757_s1 + $0x9a8] ss:$16 sps:$4 sm:$0xff]  }
 0x184   :  { %4098 = vmatpush1.bf16.msra.mxu1 %v5531_v18  ;;  %v3764_v32 = vpop.f32.mrf.mxu0  ;;  %4058 = vmatprep.subr.bf16.mxu0 %v5536_v19  ;;  %v5596_v18 = vld [vmem:[%s7757_s1 + $0x78c] ss:$16 sps:$4 sm:$0xff]   ;;  %v5597_v26 = vld [vmem:[%s7757_s1 + $0x988] ss:$16 sps:$4 sm:$0xff]  }
 0x185   :  { %v3805_v47 = vpop.f32.mrf.mxu1  ;;  %4099 = vmatprep.subr.bf16.mxu1 %v5539_v21  ;;  %v7166_v3 = vadd.f32 %v3803_v27, %v3763_v29  ;;  %v3765_v33 = vadd.f32 %v3764_v32, %v6975_v5  ;;  %4088 = vmatprep.mubr.bf16.mxu0 %v6147_v37  ;;  %v5548_v37 = vld [vmem:[%s7757_s1 + $0x68c] ss:$16 sps:$4 sm:$0xff]   ;;  %v5594_v21 = vld [vmem:[%s7757_s1 + $0x788] ss:$16 sps:$4 sm:$0xff]  }
 0x186   :  { %4129 = vmatprep.mubr.bf16.mxu1 %v6297_v24  ;;  %v3766_v34 = vpop.f32.mrf.mxu0  ;;  %v5551_v24 = vld [vmem:[%s7757_s1 + $0x88c] ss:$16 sps:$4 sm:$0xff]  }
 0x187   :  { %v3807_v41 = vpop.f32.mrf.mxu1  ;;  %v7171_v22 = vadd.f32 %v3805_v47, %v3765_v33  ;;  %4059 = vmatpush1.bf16.msra.mxu0 %v5534_v30  ;;  %v5599_v19 = vld [vmem:[%s7757_s1 + $0x98c] ss:$16 sps:$4 sm:$0xff]   ;;  %v5600_v30 = vld [vmem:[%s7757_s1 + $0x768] ss:$16 sps:$4 sm:$0xff]  }
 0x188   :  { %4100 = vmatpush1.bf16.msra.mxu1 %v5537_v31  ;;  %v3767_v45 = vpop.f32.mrf.mxu0  ;;  %4060 = vmatprep.subr.bf16.mxu0 %v5542_v7  ;;  %v5602_v27 = vld [vmem:[%s7757_s1 + $0x76c] ss:$16 sps:$4 sm:$0xff]   ;;  %v5603_v31 = vld [vmem:[%s7757_s1 + $0x968] ss:$16 sps:$4 sm:$0xff]  }
 0x189   :  { %v3808_v5 = vpop.f32.mrf.mxu1  ;;  %4101 = vmatprep.subr.bf16.mxu1 %v5545_v16  ;;  %v5605_v29 = vld [vmem:[%s7757_s1 + $0x96c] ss:$16 sps:$4 sm:$0xff]   ;;  %v5606_v7 = vld [vmem:[%s7757_s1 + $0x748] ss:$16 sps:$4 sm:$0xff]  }
 0x18a   :  { %v5608_v32 = vld [vmem:[%s7757_s1 + $0x74c] ss:$16 sps:$4 sm:$0xff]   ;;  %v5609_v16 = vld [vmem:[%s7757_s1 + $0x948] ss:$16 sps:$4 sm:$0xff]  }
 0x18b   :  { %4061 = vmatpush1.bf16.msra.mxu0 %v5540_v23  ;;  %v5611_v47 = vld [vmem:[%s7757_s1 + $0x94c] ss:$16 sps:$4 sm:$0xff]   ;;  %v5612_v41 = vld [vmem:[%s7757_s1 + $0x728] ss:$16 sps:$4 sm:$0xff]  }
 0x18c   :  { %4102 = vmatpush1.bf16.msra.mxu1 %v5543_v44  ;;  %4062 = vmatprep.subr.bf16.mxu0 %v5548_v37  ;;  %v5614_v33 = vld [vmem:[%s7757_s1 + $0x72c] ss:$16 sps:$4 sm:$0xff]   ;;  %v5615_v23 = vld [vmem:[%s7757_s1 + $0x928] ss:$16 sps:$4 sm:$0xff]  }
 0x18d   :  { %4103 = vmatprep.subr.bf16.mxu1 %v5551_v24  ;;  %v5617_v34 = vld [vmem:[%s7757_s1 + $0x92c] ss:$16 sps:$4 sm:$0xff]   ;;  %v5618_v5 = vld [vmem:[%s7757_s1 + $0x708] ss:$16 sps:$4 sm:$0xff]  }
 0x18e   :  { %v5620_v44 = vld [vmem:[%s7757_s1 + $0x70c] ss:$16 sps:$4 sm:$0xff]   ;;  %v5621_v37 = vld [vmem:[%s7757_s1 + $0x908] ss:$16 sps:$4 sm:$0xff]  }
 0x18f   :  { %4063 = vmatpush1.bf16.msra.mxu0 %v5546_v46  ;;  %v5623_v45 = vld [vmem:[%s7757_s1 + $0x90c] ss:$16 sps:$4 sm:$0xff]  }
 0x190   :  { %4104 = vmatpush1.bf16.msra.mxu1 %v5549_v48  ;;  %4064 = vmatprep.subr.bf16.mxu0 %v5554_v49  ;;  %v5626_v24 = vld [vmem:[%s7757_s1 + $0xaec] ss:$16 sps:$4 sm:$0xff]   ;;  %v5624_v48 = vld [vmem:[%s7757_s1 + $0xae8] ss:$16 sps:$4 sm:$0xff]  }
 0x191   :  { %4105 = vmatprep.subr.bf16.mxu1 %v5557_v50  ;;  %v5629_v46 = vld [vmem:[%s7757_s1 + $0xcec] ss:$16 sps:$4 sm:$0xff]   ;;  %v5627_v49 = vld [vmem:[%s7757_s1 + $0xce8] ss:$16 sps:$4 sm:$0xff]  }
 0x192   :  { %v5632_v50 = vld [vmem:[%s7757_s1 + $0xacc] ss:$16 sps:$4 sm:$0xff]  }
 0x193   :  { %4065 = vmatpush1.bf16.msra.mxu0 %v5552_v54  ;;  %v5635_v54 = vld [vmem:[%s7757_s1 + $0xccc] ss:$16 sps:$4 sm:$0xff]  }
 0x194   :  { %4106 = vmatpush1.bf16.msra.mxu1 %v5555_v55  ;;  %4066 = vmatprep.subr.bf16.mxu0 %v5560_v56 }
 0x195   :  { %4107 = vmatprep.subr.bf16.mxu1 %v5563_v1 }
 0x197   :  { %4067 = vmatpush1.bf16.msra.mxu0 %v5558_v57  ;;  %v5630_v57 = vld [vmem:[%s7757_s1 + $0xac8] ss:$16 sps:$4 sm:$0xff]  }
 0x198   :  { %4108 = vmatpush1.bf16.msra.mxu1 %v5561_v58  ;;  %4068 = vmatprep.subr.bf16.mxu0 %v5566_v59  ;;  %v5633_v58 = vld [vmem:[%s7757_s1 + $0xcc8] ss:$16 sps:$4 sm:$0xff]  }
 0x199   :  { %4109 = vmatprep.subr.bf16.mxu1 %v5569_v60 }
 0x19b   :  { %4069 = vmatpush1.bf16.msra.mxu0 %v5564_v61 }
 0x19c   :  { %4110 = vmatpush1.bf16.msra.mxu1 %v5567_v62  ;;  %4070 = vmatprep.subr.bf16.mxu0 %v5572_v2  ;;  %v5636_v2 = vld [vmem:[%s7757_s1 + $0xaa8] ss:$16 sps:$4 sm:$0xff]  }
 0x19d   :  { %4111 = vmatprep.subr.bf16.mxu1 %v5575_v6  ;;  %v5639_v6 = vld [vmem:[%s7757_s1 + $0xca8] ss:$16 sps:$4 sm:$0xff]  }
 0x19f   :  { %4071 = vmatpush1.bf16.msra.mxu0 %v5570_v20 }
 0x1a0   :  { %4112 = vmatpush1.bf16.msra.mxu1 %v5573_v35  ;;  %4072 = vmatprep.subr.bf16.mxu0 %v5578_v40  ;;  %v5642_v40 = vld [vmem:[%s7757_s1 + $0xa88] ss:$16 sps:$4 sm:$0xff]  }
 0x1a1   :  { %4113 = vmatprep.subr.bf16.mxu1 %v5581_v4  ;;  %v5645_v4 = vld [vmem:[%s7757_s1 + $0xc88] ss:$16 sps:$4 sm:$0xff]  }
 0x1a3   :  { %4073 = vmatpush2.bf16.msra.mxu0 %v5576_v9  ;;  %v5650_v9 = vld [vmem:[%s7757_s1 + $0xa6c] ss:$16 sps:$4 sm:$0xff]  }
 0x1a4   :  { %4114 = vmatpush2.bf16.msra.mxu1 %v5579_v28  ;;  %4074 = vmatprep.subr.bf16.mxu0 %v5584_v10  ;;  %v5653_v28 = vld [vmem:[%s7757_s1 + $0xc6c] ss:$16 sps:$4 sm:$0xff]   ;;  %v5648_v10 = vld [vmem:[%s7757_s1 + $0xa68] ss:$16 sps:$4 sm:$0xff]  }
 0x1a5   :  { %4115 = vmatprep.subr.bf16.mxu1 %v5587_v51  ;;  %v5651_v51 = vld [vmem:[%s7757_s1 + $0xc68] ss:$16 sps:$4 sm:$0xff]  }
 0x1a7   :  { %4075 = vmatpush2.bf16.msra.mxu0 %v5582_v36  ;;  %v5656_v36 = vld [vmem:[%s7757_s1 + $0xa4c] ss:$16 sps:$4 sm:$0xff]  }
 0x1a8   :  { %4116 = vmatpush2.bf16.msra.mxu1 %v5585_v11  ;;  %4076 = vmatprep.subr.bf16.mxu0 %v5590_v12  ;;  %v5659_v11 = vld [vmem:[%s7757_s1 + $0xc4c] ss:$16 sps:$4 sm:$0xff]   ;;  %v5654_v12 = vld [vmem:[%s7757_s1 + $0xa48] ss:$16 sps:$4 sm:$0xff]  }
 0x1a9   :  { %4117 = vmatprep.subr.bf16.mxu1 %v5593_v13  ;;  %v5657_v13 = vld [vmem:[%s7757_s1 + $0xc48] ss:$16 sps:$4 sm:$0xff]  }
 0x1ab   :  { %4077 = vmatpush2.bf16.msra.mxu0 %v5588_v14  ;;  %v5662_v14 = vld [vmem:[%s7757_s1 + $0xa2c] ss:$16 sps:$4 sm:$0xff]  }
 0x1ac   :  { %4118 = vmatpush2.bf16.msra.mxu1 %v5591_v15  ;;  %4078 = vmatprep.subr.bf16.mxu0 %v5596_v18  ;;  %v5665_v15 = vld [vmem:[%s7757_s1 + $0xc2c] ss:$16 sps:$4 sm:$0xff]   ;;  %v5660_v18 = vld [vmem:[%s7757_s1 + $0xa28] ss:$16 sps:$4 sm:$0xff]  }
 0x1ad   :  { %4119 = vmatprep.subr.bf16.mxu1 %v5599_v19  ;;  %v5663_v19 = vld [vmem:[%s7757_s1 + $0xc28] ss:$16 sps:$4 sm:$0xff]  }
 0x1af   :  { %4079 = vmatpush2.bf16.msra.mxu0 %v5594_v21  ;;  %v5668_v21 = vld [vmem:[%s7757_s1 + $0xa0c] ss:$16 sps:$4 sm:$0xff]  }
 0x1b0   :  { %4120 = vmatpush2.bf16.msra.mxu1 %v5597_v26  ;;  %4080 = vmatprep.subr.bf16.mxu0 %v5602_v27  ;;  %v5671_v26 = vld [vmem:[%s7757_s1 + $0xc0c] ss:$16 sps:$4 sm:$0xff]   ;;  %v5666_v27 = vld [vmem:[%s7757_s1 + $0xa08] ss:$16 sps:$4 sm:$0xff]  }
 0x1b1   :  { %4121 = vmatprep.subr.bf16.mxu1 %v5605_v29  ;;  %v5669_v29 = vld [vmem:[%s7757_s1 + $0xc08] ss:$16 sps:$4 sm:$0xff]  }
 0x1b3   :  { %4081 = vmatpush2.bf16.msra.mxu0 %v5600_v30  ;;  %v5674_v30 = vld [vmem:[%s7757_s1 + $0xbec] ss:$16 sps:$4 sm:$0xff]  }
 0x1b4   :  { %4122 = vmatpush2.bf16.msra.mxu1 %v5603_v31  ;;  %4082 = vmatprep.subr.bf16.mxu0 %v5608_v32  ;;  %v5677_v31 = vld [vmem:[%s7757_s1 + $0xdec] ss:$16 sps:$4 sm:$0xff]   ;;  %v5672_v32 = vld [vmem:[%s7757_s1 + $0xbe8] ss:$16 sps:$4 sm:$0xff]  }
 0x1b5   :  { %4123 = vmatprep.subr.bf16.mxu1 %v5611_v47  ;;  %v5675_v47 = vld [vmem:[%s7757_s1 + $0xde8] ss:$16 sps:$4 sm:$0xff]  }
 0x1b7   :  { %4083 = vmatpush2.bf16.msra.mxu0 %v5606_v7  ;;  %v5680_v7 = vld [vmem:[%s7757_s1 + $0xbcc] ss:$16 sps:$4 sm:$0xff]  }
 0x1b8   :  { %4124 = vmatpush2.bf16.msra.mxu1 %v5609_v16  ;;  %4084 = vmatprep.subr.bf16.mxu0 %v5614_v33  ;;  %v5683_v16 = vld [vmem:[%s7757_s1 + $0xdcc] ss:$16 sps:$4 sm:$0xff]   ;;  %v5678_v33 = vld [vmem:[%s7757_s1 + $0xbc8] ss:$16 sps:$4 sm:$0xff]  }
 0x1b9   :  { %4125 = vmatprep.subr.bf16.mxu1 %v5617_v34  ;;  %v5681_v34 = vld [vmem:[%s7757_s1 + $0xdc8] ss:$16 sps:$4 sm:$0xff]  }
 0x1bb   :  { %4085 = vmatpush2.bf16.msra.mxu0 %v5612_v41  ;;  %v5686_v41 = vld [vmem:[%s7757_s1 + $0xbac] ss:$16 sps:$4 sm:$0xff]  }
 0x1bc   :  { %4126 = vmatpush2.bf16.msra.mxu1 %v5615_v23  ;;  %4086 = vmatprep.subr.bf16.mxu0 %v5620_v44  ;;  %v5689_v23 = vld [vmem:[%s7757_s1 + $0xdac] ss:$16 sps:$4 sm:$0xff]   ;;  %v5684_v44 = vld [vmem:[%s7757_s1 + $0xba8] ss:$16 sps:$4 sm:$0xff]  }
 0x1bd   :  { %4127 = vmatprep.subr.bf16.mxu1 %v5623_v45  ;;  %v5687_v45 = vld [vmem:[%s7757_s1 + $0xda8] ss:$16 sps:$4 sm:$0xff]  }
 0x1bf   :  { %4087 = vmatpush2.bf16.msra.mxu0 %v5618_v5  ;;  %v5692_v5 = vld [vmem:[%s7757_s1 + $0xb8c] ss:$16 sps:$4 sm:$0xff]  }
 0x1c0   :  { %4128 = vmatpush2.bf16.msra.mxu1 %v5621_v37  ;;  %4138 = vmatprep.subr.bf16.mxu0 %v5626_v24  ;;  %v5695_v37 = vld [vmem:[%s7757_s1 + $0xd8c] ss:$16 sps:$4 sm:$0xff]   ;;  %v5690_v24 = vld [vmem:[%s7757_s1 + $0xb88] ss:$16 sps:$4 sm:$0xff]  }
 0x1c1   :  { %4179 = vmatprep.subr.bf16.mxu1 %v5629_v46  ;;  %v5693_v46 = vld [vmem:[%s7757_s1 + $0xd88] ss:$16 sps:$4 sm:$0xff]  }
 0x1c2   :  { %v3844_v55 = vpop.f32.mrf.mxu0  ;;  %4089 = vmatmul.mubr.bf16.vlgmr.msra.gmra.mxu0 %v6271_v17  ;;  %v5638_v17 = vld [vmem:[%s7757_s1 + $0xaac] ss:$16 sps:$4 sm:$0xff]  }
 0x1c3   :  { %v3885_v56 = vpop.f32.mrf.mxu1  ;;  %4130 = vmatmul.mubr.bf16.vlgmr.msra.gmra.mxu1 %v6497_v38  ;;  %v3845_v1 = vadd.f32 %v3844_v55, %v7166_v3  ;;  %4139 = vmatpush1.bf16.msra.mxu0 %v5624_v48  ;;  %v5641_v38 = vld [vmem:[%s7757_s1 + $0xcac] ss:$16 sps:$4 sm:$0xff]  }
 0x1c4   :  { %4180 = vmatpush1.bf16.msra.mxu1 %v5627_v49  ;;  %v7362_v59 = vpop.f32.mrf.mxu0  ;;  %4140 = vmatprep.subr.bf16.mxu0 %v5632_v50  ;;  %v5698_v48 = vld [vmem:[%s7757_s1 + $0xb6c] ss:$16 sps:$4 sm:$0xff]   ;;  %v5696_v50 = vld [vmem:[%s7757_s1 + $0xb68] ss:$16 sps:$4 sm:$0xff]  }
 0x1c5   :  { %v7364_v60 = vpop.f32.mrf.mxu1  ;;  %4181 = vmatprep.subr.bf16.mxu1 %v5635_v54  ;;  %v7372_v3 = vadd.f32 %v3885_v56, %v3845_v1  ;;  %4170 = vmatprep.mubr.bf16.mxu0 %v6301_v25  ;;  %v5644_v25 = vld [vmem:[%s7757_s1 + $0xa8c] ss:$16 sps:$4 sm:$0xff]   ;;  %v5699_v54 = vld [vmem:[%s7757_s1 + $0xd68] ss:$16 sps:$4 sm:$0xff]  }
 0x1c6   :  { %4211 = vmatprep.mubr.bf16.mxu1 %v6519_v42  ;;  %v3848_v61 = vpop.f32.mrf.mxu0  ;;  %v5647_v42 = vld [vmem:[%s7757_s1 + $0xc8c] ss:$16 sps:$4 sm:$0xff]   ;;  %v5702_v1 = vld [vmem:[%s7757_s1 + $0xb48] ss:$16 sps:$4 sm:$0xff]  }
 0x1c7   :  { %v3889_v62 = vpop.f32.mrf.mxu1  ;;  %4141 = vmatpush1.bf16.msra.mxu0 %v5630_v57  ;;  %v5701_v49 = vld [vmem:[%s7757_s1 + $0xd6c] ss:$16 sps:$4 sm:$0xff]   ;;  %v5705_v57 = vld [vmem:[%s7757_s1 + $0xd48] ss:$16 sps:$4 sm:$0xff]  }
 0x1c8   :  { %4182 = vmatpush1.bf16.msra.mxu1 %v5633_v58  ;;  %v3849_v20 = vpop.f32.mrf.mxu0  ;;  %4142 = vmatprep.subr.bf16.mxu0 %v5638_v17  ;;  %v5704_v55 = vld [vmem:[%s7757_s1 + $0xb4c] ss:$16 sps:$4 sm:$0xff]   ;;  %v5711_v61 = vld [vmem:[%s7757_s1 + $0xd28] ss:$16 sps:$4 sm:$0xff]  }
 0x1c9   :  { %v3890_v35 = vpop.f32.mrf.mxu1  ;;  %4183 = vmatprep.subr.bf16.mxu1 %v5641_v38  ;;  %v5707_v56 = vld [vmem:[%s7757_s1 + $0xd4c] ss:$16 sps:$4 sm:$0xff]   ;;  %v5708_v38 = vld [vmem:[%s7757_s1 + $0xb28] ss:$16 sps:$4 sm:$0xff]  }
 0x1ca   :  { %v5710_v58 = vld [vmem:[%s7757_s1 + $0xb2c] ss:$16 sps:$4 sm:$0xff]   ;;  %v5717_v20 = vld [vmem:[%s7757_s1 + $0xd08] ss:$16 sps:$4 sm:$0xff]  }
 0x1cb   :  { %4143 = vmatpush1.bf16.msra.mxu0 %v5636_v2  ;;  %v5713_v17 = vld [vmem:[%s7757_s1 + $0xd2c] ss:$16 sps:$4 sm:$0xff]  }
 0x1cc   :  { %4184 = vmatpush1.bf16.msra.mxu1 %v5639_v6  ;;  %4144 = vmatprep.subr.bf16.mxu0 %v5644_v25  ;;  %v5716_v62 = vld [vmem:[%s7757_s1 + $0xb0c] ss:$16 sps:$4 sm:$0xff]   ;;  %v5714_v6 = vld [vmem:[%s7757_s1 + $0xb08] ss:$16 sps:$4 sm:$0xff]  }
 0x1cd   :  { %4185 = vmatprep.subr.bf16.mxu1 %v5647_v42  ;;  %v5719_v2 = vld [vmem:[%s7757_s1 + $0xd0c] ss:$16 sps:$4 sm:$0xff]   ;;  %v3847_v42 = vadd.f32 %v7362_v59, %v7171_v22 }
 0x1ce   :  { %v5722_v35 = vld [vmem:[%s7757_s1 + $0xeec] ss:$16 sps:$4 sm:$0xff]  }
 0x1cf   :  { %4145 = vmatpush1.bf16.msra.mxu0 %v5642_v40  ;;  %v5725_v25 = vld [vmem:[%s7757_s1 + $0x10ec] ss:$16 sps:$4 sm:$0xff]   ;;  %v5720_v40 = vld [vmem:[%s7757_s1 + $0xee8] ss:$16 sps:$4 sm:$0xff]  }
 0x1d0   :  { %4186 = vmatpush1.bf16.msra.mxu1 %v5645_v4  ;;  %4146 = vmatprep.subr.bf16.mxu0 %v5650_v9  ;;  %v5723_v4 = vld [vmem:[%s7757_s1 + $0x10e8] ss:$16 sps:$4 sm:$0xff]   ;;  %v5728_v9 = vld [vmem:[%s7757_s1 + $0xecc] ss:$16 sps:$4 sm:$0xff]  }
 0x1d1   :  { %4187 = vmatprep.subr.bf16.mxu1 %v5653_v28  ;;  %v5731_v22 = vld [vmem:[%s7757_s1 + $0x10cc] ss:$16 sps:$4 sm:$0xff]  }
 0x1d3   :  { %4147 = vmatpush1.bf16.msra.mxu0 %v5648_v10  ;;  %v3888_v10 = vadd.f32 %v7364_v60, %v3847_v42  ;;  %v5786_v42 = vld [vmem:[%s7757_s1 + $0xf88] ss:$16 sps:$4 sm:$0xff]  }
 0x1d4   :  { %4188 = vmatpush1.bf16.msra.mxu1 %v5651_v51  ;;  %4148 = vmatprep.subr.bf16.mxu0 %v5656_v36  ;;  %v5726_v36 = vld [vmem:[%s7757_s1 + $0xec8] ss:$16 sps:$4 sm:$0xff]  }
 0x1d5   :  { %4189 = vmatprep.subr.bf16.mxu1 %v5659_v11  ;;  %v5729_v11 = vld [vmem:[%s7757_s1 + $0x10c8] ss:$16 sps:$4 sm:$0xff]  }
 0x1d7   :  { %4149 = vmatpush1.bf16.msra.mxu0 %v5654_v12 }
 0x1d8   :  { %4190 = vmatpush1.bf16.msra.mxu1 %v5657_v13  ;;  %4150 = vmatprep.subr.bf16.mxu0 %v5662_v14 }
 0x1d9   :  { %4191 = vmatprep.subr.bf16.mxu1 %v5665_v15 }
 0x1db   :  { %4151 = vmatpush1.bf16.msra.mxu0 %v5660_v18  ;;  %v5732_v18 = vld [vmem:[%s7757_s1 + $0xea8] ss:$16 sps:$4 sm:$0xff]  }
 0x1dc   :  { %4192 = vmatpush1.bf16.msra.mxu1 %v5663_v19  ;;  %4152 = vmatprep.subr.bf16.mxu0 %v5668_v21  ;;  %v5735_v21 = vld [vmem:[%s7757_s1 + $0x10a8] ss:$16 sps:$4 sm:$0xff]  }
 0x1dd   :  { %4193 = vmatprep.subr.bf16.mxu1 %v5671_v26 }
 0x1df   :  { %4153 = vmatpush1.bf16.msra.mxu0 %v5666_v27 }
 0x1e0   :  { %4194 = vmatpush1.bf16.msra.mxu1 %v5669_v29  ;;  %4154 = vmatprep.subr.bf16.mxu0 %v5674_v30 }
 0x1e1   :  { %4195 = vmatprep.subr.bf16.mxu1 %v5677_v31 }
 0x1e3   :  { %4155 = vmatpush2.bf16.msra.mxu0 %v5672_v32  ;;  %v5738_v32 = vld [vmem:[%s7757_s1 + $0xe88] ss:$16 sps:$4 sm:$0xff]  }
 0x1e4   :  { %4196 = vmatpush2.bf16.msra.mxu1 %v5675_v47  ;;  %4156 = vmatprep.subr.bf16.mxu0 %v5680_v7  ;;  %v5741_v47 = vld [vmem:[%s7757_s1 + $0x1088] ss:$16 sps:$4 sm:$0xff]   ;;  %v5746_v7 = vld [vmem:[%s7757_s1 + $0xe6c] ss:$16 sps:$4 sm:$0xff]  }
 0x1e5   :  { %4197 = vmatprep.subr.bf16.mxu1 %v5683_v16  ;;  %v5749_v16 = vld [vmem:[%s7757_s1 + $0x106c] ss:$16 sps:$4 sm:$0xff]  }
 0x1e7   :  { %4157 = vmatpush2.bf16.msra.mxu0 %v5678_v33  ;;  %v5744_v33 = vld [vmem:[%s7757_s1 + $0xe68] ss:$16 sps:$4 sm:$0xff]  }
 0x1e8   :  { %4198 = vmatpush2.bf16.msra.mxu1 %v5681_v34  ;;  %4158 = vmatprep.subr.bf16.mxu0 %v5686_v41  ;;  %v5747_v34 = vld [vmem:[%s7757_s1 + $0x1068] ss:$16 sps:$4 sm:$0xff]   ;;  %v5752_v41 = vld [vmem:[%s7757_s1 + $0xe4c] ss:$16 sps:$4 sm:$0xff]  }
 0x1e9   :  { %4199 = vmatprep.subr.bf16.mxu1 %v5689_v23  ;;  %v5755_v23 = vld [vmem:[%s7757_s1 + $0x104c] ss:$16 sps:$4 sm:$0xff]  }
 0x1eb   :  { %4159 = vmatpush2.bf16.msra.mxu0 %v5684_v44  ;;  %v5750_v44 = vld [vmem:[%s7757_s1 + $0xe48] ss:$16 sps:$4 sm:$0xff]  }
 0x1ec   :  { %4200 = vmatpush2.bf16.msra.mxu1 %v5687_v45  ;;  %4160 = vmatprep.subr.bf16.mxu0 %v5692_v5  ;;  %v5753_v45 = vld [vmem:[%s7757_s1 + $0x1048] ss:$16 sps:$4 sm:$0xff]   ;;  %v5758_v5 = vld [vmem:[%s7757_s1 + $0xe2c] ss:$16 sps:$4 sm:$0xff]  }
 0x1ed   :  { %4201 = vmatprep.subr.bf16.mxu1 %v5695_v37  ;;  %v5761_v37 = vld [vmem:[%s7757_s1 + $0x102c] ss:$16 sps:$4 sm:$0xff]  }
 0x1ef   :  { %4161 = vmatpush2.bf16.msra.mxu0 %v5690_v24  ;;  %v5756_v24 = vld [vmem:[%s7757_s1 + $0xe28] ss:$16 sps:$4 sm:$0xff]  }
 0x1f0   :  { %4202 = vmatpush2.bf16.msra.mxu1 %v5693_v46  ;;  %4162 = vmatprep.subr.bf16.mxu0 %v5698_v48  ;;  %v5759_v46 = vld [vmem:[%s7757_s1 + $0x1028] ss:$16 sps:$4 sm:$0xff]   ;;  %v5764_v48 = vld [vmem:[%s7757_s1 + $0xe0c] ss:$16 sps:$4 sm:$0xff]  }
 0x1f1   :  { %4203 = vmatprep.subr.bf16.mxu1 %v5701_v49  ;;  %v5767_v49 = vld [vmem:[%s7757_s1 + $0x100c] ss:$16 sps:$4 sm:$0xff]  }
 0x1f3   :  { %4163 = vmatpush2.bf16.msra.mxu0 %v5696_v50  ;;  %v5762_v50 = vld [vmem:[%s7757_s1 + $0xe08] ss:$16 sps:$4 sm:$0xff]  }
 0x1f4   :  { %4204 = vmatpush2.bf16.msra.mxu1 %v5699_v54  ;;  %4164 = vmatprep.subr.bf16.mxu0 %v5704_v55  ;;  %v5765_v54 = vld [vmem:[%s7757_s1 + $0x1008] ss:$16 sps:$4 sm:$0xff]   ;;  %v5770_v55 = vld [vmem:[%s7757_s1 + $0xfec] ss:$16 sps:$4 sm:$0xff]  }
 0x1f5   :  { %4205 = vmatprep.subr.bf16.mxu1 %v5707_v56  ;;  %v5773_v56 = vld [vmem:[%s7757_s1 + $0x11ec] ss:$16 sps:$4 sm:$0xff]  }
 0x1f7   :  { %4165 = vmatpush2.bf16.msra.mxu0 %v5702_v1  ;;  %v5768_v1 = vld [vmem:[%s7757_s1 + $0xfe8] ss:$16 sps:$4 sm:$0xff]  }
 0x1f8   :  { %4206 = vmatpush2.bf16.msra.mxu1 %v5705_v57  ;;  %4166 = vmatprep.subr.bf16.mxu0 %v5710_v58  ;;  %v5771_v57 = vld [vmem:[%s7757_s1 + $0x11e8] ss:$16 sps:$4 sm:$0xff]   ;;  %v5776_v58 = vld [vmem:[%s7757_s1 + $0xfcc] ss:$16 sps:$4 sm:$0xff]  }
 0x1f9   :  { %4207 = vmatprep.subr.bf16.mxu1 %v5713_v17  ;;  %v5779_v17 = vld [vmem:[%s7757_s1 + $0x11cc] ss:$16 sps:$4 sm:$0xff]  }
 0x1fb   :  { %4167 = vmatpush2.bf16.msra.mxu0 %v5708_v38  ;;  %v5774_v38 = vld [vmem:[%s7757_s1 + $0xfc8] ss:$16 sps:$4 sm:$0xff]  }
 0x1fc   :  { %4208 = vmatpush2.bf16.msra.mxu1 %v5711_v61  ;;  %4168 = vmatprep.subr.bf16.mxu0 %v5716_v62  ;;  %v5777_v61 = vld [vmem:[%s7757_s1 + $0x11c8] ss:$16 sps:$4 sm:$0xff]   ;;  %v5782_v62 = vld [vmem:[%s7757_s1 + $0xfac] ss:$16 sps:$4 sm:$0xff]  }
 0x1fd   :  { %4209 = vmatprep.subr.bf16.mxu1 %v5719_v2  ;;  %v5785_v2 = vld [vmem:[%s7757_s1 + $0x11ac] ss:$16 sps:$4 sm:$0xff]  }
 0x1ff   :  { %4169 = vmatpush2.bf16.msra.mxu0 %v5714_v6  ;;  %v5780_v6 = vld [vmem:[%s7757_s1 + $0xfa8] ss:$16 sps:$4 sm:$0xff]  }
 0x200   :  { %4210 = vmatpush2.bf16.msra.mxu1 %v5717_v20  ;;  %4220 = vmatprep.subr.bf16.mxu0 %v5722_v35  ;;  %v5783_v20 = vld [vmem:[%s7757_s1 + $0x11a8] ss:$16 sps:$4 sm:$0xff]   ;;  %v5788_v35 = vld [vmem:[%s7757_s1 + $0xf8c] ss:$16 sps:$4 sm:$0xff]  }
 0x201   :  { %4261 = vmatprep.subr.bf16.mxu1 %v5725_v25  ;;  %v5791_v25 = vld [vmem:[%s7757_s1 + $0x118c] ss:$16 sps:$4 sm:$0xff]  }
 0x202   :  { %v3926_v59 = vpop.f32.mrf.mxu0  ;;  %4171 = vmatmul.mubr.bf16.vlgmr.msra.gmra.mxu0 %v6501_v39  ;;  %v5734_v39 = vld [vmem:[%s7757_s1 + $0xeac] ss:$16 sps:$4 sm:$0xff]  }
 0x203   :  { %v7558_v28 = vpop.f32.mrf.mxu1  ;;  %4212 = vmatmul.mubr.bf16.vlgmr.msra.gmra.mxu1 %v6718_v63  ;;  %v3927_v51 = vadd.f32 %v3926_v59, %v7372_v3  ;;  %4221 = vmatpush1.bf16.msra.mxu0 %v5720_v40  ;;  %v5737_v63 = vld [vmem:[%s7757_s1 + $0x10ac] ss:$16 sps:$4 sm:$0xff]   ;;  %v5789_v40 = vld [vmem:[%s7757_s1 + $0x1188] ss:$16 sps:$4 sm:$0xff]  }
 0x204   :  { %4262 = vmatpush1.bf16.msra.mxu1 %v5723_v4  ;;  %v3928_v12 = vpop.f32.mrf.mxu0  ;;  %4222 = vmatprep.subr.bf16.mxu0 %v5728_v9  ;;  %v5794_v4 = vld [vmem:[%s7757_s1 + $0xf6c] ss:$16 sps:$4 sm:$0xff]   ;;  %v5795_v59 = vld [vmem:[%s7757_s1 + $0x1168] ss:$16 sps:$4 sm:$0xff]  }
 0x205   :  { %v7570_v13 = vpop.f32.mrf.mxu1  ;;  %4263 = vmatprep.subr.bf16.mxu1 %v5731_v22  ;;  %v4306_v60 = vmul.f32 0.2, %v3927_v51  ;;  %v3929_v3 = vadd.f32 %v3928_v12, %v3888_v10  ;;  %4252 = vmatprep.mubr.bf16.mxu0 %v6523_v43  ;;  %vm4302_vm0 = vcmp.gt.f32.partialorder %v3927_v51, 0.0  ;;  %v5740_v43 = vld [vmem:[%s7757_s1 + $0xe8c] ss:$16 sps:$4 sm:$0xff]  }
 0x206   :  { %4293 = vmatprep.mubr.bf16.mxu1 %v6743_v8  ;;  %v3930_v14 = vpop.f32.mrf.mxu0  ;;  %v5743_v8 = vld [vmem:[%s7757_s1 + $0x108c] ss:$16 sps:$4 sm:$0xff]   ;;  %v5792_v22 = vld [vmem:[%s7757_s1 + $0xf68] ss:$16 sps:$4 sm:$0xff]  }
 0x207   :  { %v3971_v15 = vpop.f32.mrf.mxu1  ;;  %vm4303_vm1 = vcmp.gt.f32.partialorder %v3929_v3, 0.0  ;;  %v4307_v19 = vmul.f32 0.2, %v3929_v3  ;;  %4223 = vmatpush1.bf16.msra.mxu0 %v5726_v36  ;;  %v4310_v29 = vsel %vm4302_vm0, %v3927_v51, %v4306_v60  ;;  %v5797_v9 = vld [vmem:[%s7757_s1 + $0x116c] ss:$16 sps:$4 sm:$0xff]  }
 0x208   :  { %4264 = vmatpush1.bf16.msra.mxu1 %v5729_v11  ;;  %v3931_v26 = vpop.f32.mrf.mxu0  ;;  %4224 = vmatprep.subr.bf16.mxu0 %v5734_v39  ;;  %v5800_v10 = vld [vmem:[%s7757_s1 + $0xf4c] ss:$16 sps:$4 sm:$0xff]   ;;  %v5798_v36 = vld [vmem:[%s7757_s1 + $0xf48] ss:$16 sps:$4 sm:$0xff]   ;;  %v611_v15 = vsub.s32 2, %v6691_v53 }
 0x209   :  { %v3972_v27 = vpop.f32.mrf.mxu1  ;;  %4265 = vmatprep.subr.bf16.mxu1 %v5737_v63  ;;  %v4311_v30 = vsel %vm4303_vm1, %v3929_v3, %v4307_v19  ;;  %v5803_v51 = vld [vmem:[%s7757_s1 + $0x114c] ss:$16 sps:$4 sm:$0xff]   ;;  %v5801_v11 = vld [vmem:[%s7757_s1 + $0x1148] ss:$16 sps:$4 sm:$0xff]   ;;  %v5816_v26 = vld [vmem:[%s7759_s2] sm:$0xf] }
 0x20a   :  { %v4932_v31 = vpack.c.bf16 %v4311_v30, %v4310_v29  ;;  %v5806_v12 = vld [vmem:[%s7757_s1 + $0xf2c] ss:$16 sps:$4 sm:$0xff]   ;;  %v5804_v63 = vld [vmem:[%s7757_s1 + $0xf28] ss:$16 sps:$4 sm:$0xff]   ;;  %v612_v27 = vrot.slane %v5816_v26, %v611_v15 }
 0x20b   :  { %4225 = vmatpush1.bf16.msra.mxu0 %v5732_v18  ;;  %v5809_v39 = vld [vmem:[%s7757_s1 + $0x112c] ss:$16 sps:$4 sm:$0xff]   ;;  %v5807_v60 = vld [vmem:[%s7757_s1 + $0x1128] ss:$16 sps:$4 sm:$0xff]   ;;  %v615_v18 = vsub.s32 3, %v6691_v53 }
 0x20c   :  { %4266 = vmatpush1.bf16.msra.mxu1 %v5735_v21  ;;  %4330 = vst [vmem:[%s7760_s3] sm:$0xff] %v4932_v31  ;;  %4226 = vmatprep.subr.bf16.mxu0 %v5740_v43  ;;  %v5812_v3 = vld [vmem:[%s7757_s1 + $0xf0c] ss:$16 sps:$4 sm:$0xff]   ;;  %v5810_v19 = vld [vmem:[%s7757_s1 + $0xf08] ss:$16 sps:$4 sm:$0xff]   ;;  %v3968_v53 = vadd.f32 %v7558_v28, %v612_v27 }
 0x20d   :  { %4267 = vmatprep.subr.bf16.mxu1 %v5743_v8  ;;  %v5815_v14 = vld [vmem:[%s7757_s1 + $0x110c] ss:$16 sps:$4 sm:$0xff]   ;;  %v5813_v21 = vld [vmem:[%s7757_s1 + $0x1108] ss:$16 sps:$4 sm:$0xff]   ;;  %v616_v43 = vrot.slane %v5816_v26, %v615_v18 }
 0x20f   :  { %4227 = vmatpush1.bf16.msra.mxu0 %v5738_v32  ;;  %v3970_v30 = vadd.f32 %v7570_v13, %v616_v43 }
 0x210   :  { %4268 = vmatpush1.bf16.msra.mxu1 %v5741_v47  ;;  %4228 = vmatprep.subr.bf16.mxu0 %v5746_v7 }
 0x211   :  { %4269 = vmatprep.subr.bf16.mxu1 %v5749_v16 }
 0x213   :  { %4229 = vmatpush1.bf16.msra.mxu0 %v5744_v33 }
 0x214   :  { %4270 = vmatpush1.bf16.msra.mxu1 %v5747_v34  ;;  %4230 = vmatprep.subr.bf16.mxu0 %v5752_v41 }
 0x215   :  { %4271 = vmatprep.subr.bf16.mxu1 %v5755_v23 }
 0x217   :  { %4231 = vmatpush1.bf16.msra.mxu0 %v5750_v44 }
 0x218   :  { %4272 = vmatpush1.bf16.msra.mxu1 %v5753_v45  ;;  %4232 = vmatprep.subr.bf16.mxu0 %v5758_v5 }
 0x219   :  { %4273 = vmatprep.subr.bf16.mxu1 %v5761_v37 }
 0x21b   :  { %4233 = vmatpush1.bf16.msra.mxu0 %v5756_v24 }
 0x21c   :  { %4274 = vmatpush1.bf16.msra.mxu1 %v5759_v46  ;;  %4234 = vmatprep.subr.bf16.mxu0 %v5764_v48 }
 0x21d   :  { %4275 = vmatprep.subr.bf16.mxu1 %v5767_v49 }
 0x21f   :  { %4235 = vmatpush1.bf16.msra.mxu0 %v5762_v50 }
 0x220   :  { %4276 = vmatpush1.bf16.msra.mxu1 %v5765_v54  ;;  %4236 = vmatprep.subr.bf16.mxu0 %v5770_v55 }
 0x221   :  { %4277 = vmatprep.subr.bf16.mxu1 %v5773_v56 }
 0x223   :  { %4237 = vmatpush2.bf16.msra.mxu0 %v5768_v1 }
 0x224   :  { %4278 = vmatpush2.bf16.msra.mxu1 %v5771_v57  ;;  %4238 = vmatprep.subr.bf16.mxu0 %v5776_v58 }
 0x225   :  { %4279 = vmatprep.subr.bf16.mxu1 %v5779_v17 }
 0x227   :  { %4239 = vmatpush2.bf16.msra.mxu0 %v5774_v38 }
 0x228   :  { %4280 = vmatpush2.bf16.msra.mxu1 %v5777_v61  ;;  %4240 = vmatprep.subr.bf16.mxu0 %v5782_v62 }
 0x229   :  { %4281 = vmatprep.subr.bf16.mxu1 %v5785_v2 }
 0x22b   :  { %4241 = vmatpush2.bf16.msra.mxu0 %v5780_v6 }
 0x22c   :  { %4282 = vmatpush2.bf16.msra.mxu1 %v5783_v20  ;;  %4242 = vmatprep.subr.bf16.mxu0 %v5788_v35 }
 0x22d   :  { %4283 = vmatprep.subr.bf16.mxu1 %v5791_v25 }
 0x22f   :  { %4243 = vmatpush2.bf16.msra.mxu0 %v5786_v42 }
 0x230   :  { %4284 = vmatpush2.bf16.msra.mxu1 %v5789_v40  ;;  %4244 = vmatprep.subr.bf16.mxu0 %v5794_v4 }
 0x231   :  { %4285 = vmatprep.subr.bf16.mxu1 %v5797_v9 }
 0x233   :  { %4245 = vmatpush2.bf16.msra.mxu0 %v5792_v22 }
 0x234   :  { %4286 = vmatpush2.bf16.msra.mxu1 %v5795_v59  ;;  %4246 = vmatprep.subr.bf16.mxu0 %v5800_v10 }
 0x235   :  { %4287 = vmatprep.subr.bf16.mxu1 %v5803_v51 }
 0x237   :  { %4247 = vmatpush2.bf16.msra.mxu0 %v5798_v36 }
 0x238   :  { %4288 = vmatpush2.bf16.msra.mxu1 %v5801_v11  ;;  %4248 = vmatprep.subr.bf16.mxu0 %v5806_v12 }
 0x239   :  { %4289 = vmatprep.subr.bf16.mxu1 %v5809_v39 }
 0x23b   :  { %4249 = vmatpush2.bf16.msra.mxu0 %v5804_v63 }
 0x23c   :  { %4290 = vmatpush2.bf16.msra.mxu1 %v5807_v60  ;;  %4250 = vmatprep.subr.bf16.mxu0 %v5812_v3 }
 0x23d   :  { %4291 = vmatprep.subr.bf16.mxu1 %v5815_v14 }
 0x23f   :  { %4251 = vmatpush2.bf16.msra.mxu0 %v5810_v19 }
 0x240   :  { %4292 = vmatpush2.bf16.msra.mxu1 %v5813_v21 }
 0x242   :  { %v4008_v8 = vpop.f32.mrf.mxu0  ;;  %4253 = vmatmul.mubr.bf16.vlgmr.msra.gmra.mxu0 %v6722_v0 }
 0x243   :  { %v4049_v29 = vpop.f32.mrf.mxu1  ;;  %4294 = vmatmul.mubr.bf16.vlgmr.msra.gmra.mxu1 %v6941_v52  ;;  %v4009_v31 = vadd.f32 %v4008_v8, %v3968_v53 }
 0x244   :  { %v4010_v32 = vpop.f32.mrf.mxu0 }
 0x245   :  { %v4051_v47 = vpop.f32.mrf.mxu1  ;;  %v4050_v7 = vadd.f32 %v4049_v29, %v4009_v31  ;;  %v4011_v16 = vadd.f32 %v4010_v32, %v3970_v30 }
 0x246   :  { %v4012_v33 = vpop.f32.mrf.mxu0 }
 0x247   :  { %v4053_v34 = vpop.f32.mrf.mxu1  ;;  %v4052_v41 = vadd.f32 %v4051_v47, %v4011_v16 }
 0x248   :  { %v4013_v23 = vpop.f32.mrf.mxu0 }
 0x249   :  { %v4054_v44 = vpop.f32.mrf.mxu1 }
 0x282   :  { %v4090_v45 = vpop.f32.mrf.mxu0 }
 0x283   :  { %v4131_v28 = vpop.f32.mrf.mxu1  ;;  %v4091_v5 = vadd.f32 %v4090_v45, %v4050_v7 }
 0x284   :  { %v4092_v37 = vpop.f32.mrf.mxu0 }
 0x285   :  { %v4133_v24 = vpop.f32.mrf.mxu1  ;;  %v4132_v0 = vadd.f32 %v4131_v28, %v4091_v5  ;;  %v4093_v46 = vadd.f32 %v4092_v37, %v4052_v41 }
 0x286   :  { %v4094_v52 = vpop.f32.mrf.mxu0 }
 0x287   :  { %v4135_v48 = vpop.f32.mrf.mxu1  ;;  %v4134_v13 = vadd.f32 %v4133_v24, %v4093_v46 }
 0x288   :  { %v4095_v49 = vpop.f32.mrf.mxu0 }
 0x289   :  { %v4136_v50 = vpop.f32.mrf.mxu1 }
 0x2c2   :  { %v4172_v54 = vpop.f32.mrf.mxu0 }
 0x2c3   :  { %v4213_v55 = vpop.f32.mrf.mxu1  ;;  %v4173_v56 = vadd.f32 %v4172_v54, %v4132_v0 }
 0x2c4   :  { %v4174_v1 = vpop.f32.mrf.mxu0 }
 0x2c5   :  { %v4215_v57 = vpop.f32.mrf.mxu1  ;;  %v4214_v58 = vadd.f32 %v4213_v55, %v4173_v56  ;;  %v4175_v2 = vadd.f32 %v4174_v1, %v4134_v13 }
 0x2c6   :  { %v4176_v17 = vpop.f32.mrf.mxu0 }
 0x2c7   :  { %v4217_v38 = vpop.f32.mrf.mxu1  ;;  %v4216_v35 = vadd.f32 %v4215_v57, %v4175_v2 }
 0x2c8   :  { %v4177_v61 = vpop.f32.mrf.mxu0 }
 0x2c9   :  { %v4218_v62 = vpop.f32.mrf.mxu1 }
 0x302   :  { %v4254_v6 = vpop.f32.mrf.mxu0 }
 0x303   :  { %v4295_v20 = vpop.f32.mrf.mxu1  ;;  %v4255_v25 = vadd.f32 %v4254_v6, %v4214_v58 }
 0x304   :  { %v4256_v42 = vpop.f32.mrf.mxu0 }
 0x305   :  { %v4297_v40 = vpop.f32.mrf.mxu1  ;;  %v4296_v4 = vadd.f32 %v4295_v20, %v4255_v25  ;;  %v4257_v9 = vadd.f32 %v4256_v42, %v4216_v35 }
 0x306   :  { %v4258_v22 = vpop.f32.mrf.mxu0 }
 0x307   :  { %v4299_v59 = vpop.f32.mrf.mxu1  ;;  %v4308_v10 = vmul.f32 0.2, %v4296_v4  ;;  %v4298_v51 = vadd.f32 %v4297_v40, %v4257_v9  ;;  %vm4304_vm2 = vcmp.gt.f32.partialorder %v4296_v4, 0.0 }
 0x308   :  { %v4259_v36 = vpop.f32.mrf.mxu0 }
 0x309   :  { %v4300_v11 = vpop.f32.mrf.mxu1  ;;  %vm4305_vm3 = vcmp.gt.f32.partialorder %v4298_v51, 0.0  ;;  %v4309_v12 = vmul.f32 0.2, %v4298_v51  ;;  %v4312_v39 = vsel %vm4304_vm2, %v4296_v4, %v4308_v10 }
 0x30b   :  { %v4313_v63 = vsel %vm4305_vm3, %v4298_v51, %v4309_v12 }
 0x30c   :  { %v4933_v60 = vpack.c.bf16 %v4313_v63, %v4312_v39 }
 0x30e   :  { %4331 = vst [vmem:[%s7760_s3 + $0x8] sm:$0xff] %v4933_v60 }

</bundles_post_ra>
